<compile_context>
chip_gen: v5e
topology: v5e:2x2
jax: 0.10.0
libtpu: 0.0.40
codegen_flags: <defaults>
</compile_context>

<pallas_src>
import functools

import numpy as np
import jax
import jax.numpy as jnp
from jax.experimental import pallas as pl
from jax.experimental.pallas import tpu as pltpu

EPS = 1e-5                         # default eps of BatchNorm1d and LayerNorm
_PREC = jax.lax.Precision.HIGHEST  # exact f32 MXU matmuls (kernel + reference)


def _ru(x, m):
    return ((x + m - 1) // m) * m


# ----------------------------------------------------------------------------
# Static layout of the packed parameter slabs (pure Python, shared by the
# host-side packer and the kernel).
# ----------------------------------------------------------------------------
def _make_layout(T, H):
    C1, C2, C3 = H // 4, H // 2, H
    # Conv1d output lengths: floor((L + 2p - k)/s) + 1
    L1t = (T + 2 - 3) // 2 + 1          # temporal conv2 (k3,s2,p1)
    L2t = (L1t + 2 - 3) // 2 + 1        # temporal conv3 (k3,s2,p1)
    L1s = (T + 4 - 5) // 2 + 1          # spectral conv2 (k5,s2,p2)
    L2s = L1s // 2                      # MaxPool1d(2,2)

    w_t1, w_t2, w_t3 = C1 * T, C2 * L1t, C3 * L2t
    w_s1, w_s2 = C1 * T, C2 * L1s
    spec_flat = C2 * L2s

    # Lane-padded (128-aligned) logical widths used inside the kernel.
    Tp = _ru(T, 128)
    p_t1, p_t2, p_t3 = _ru(w_t1, 128), _ru(w_t2, 128), _ru(w_t3, 128)
    p_s1, p_s2 = _ru(w_s1, 128), _ru(w_s2, 128)
    Hp = _ru(H, 128)
    p_ts1 = p_t1 + p_s1                 # fused stage-1 output width

    ly = dict(C1=C1, C2=C2, C3=C3, L1t=L1t, L2t=L2t, L1s=L1s, L2s=L2s,
              w_t1=w_t1, w_t2=w_t2, w_t3=w_t3, w_s1=w_s1, w_s2=w_s2,
              Tp=Tp, p_t1=p_t1, p_t2=p_t2, p_t3=p_t3, p_s1=p_s1, p_s2=p_s2,
              Hp=Hp, p_ts1=p_ts1,
              total_features=w_t3 + spec_flat + H)

    ly["lanes"] = max(p_ts1, p_t2, p_t3, p_s2, Hp, 128)

    # (name, n_rows) blocks stacked along the sublane axis of Wslab; every
    # block row-offset is rounded up to a multiple of 8 sublanes.
    blocks = [("ts1", Tp), ("t2", p_t1), ("t3", p_t2), ("s2", p_s1),
              ("fit", p_t3), ("fis", p_s2), ("fie", Hp), ("cls", Hp)]
    off = 0
    for name, n in blocks:
        off = _ru(off, 8)
        ly[name] = (off, n)
        off += n
    ly["w_rows"] = _ru(off, 8)
    ly["v_rows"] = 8
    return ly


# ----------------------------------------------------------------------------
# Pallas kernel: one batch tile of the whole discriminator forward.
# ----------------------------------------------------------------------------
def _disc_kernel(H, ly, x_ref, lab_ref, tbl_ref, w_ref, v_ref, out_ref):
    def lk(v):                                     # LeakyReLU(0.2)
        return jnp.where(v > 0.0, v, 0.2 * v)

    def matW(a, name, cols):                       # 128-aligned weight slice
        off, n = ly[name]
        return jnp.dot(a, w_ref[off:off + n, :cols],
                       preferred_element_type=jnp.float32, precision=_PREC)

    def vrow(i, cols):
        return v_ref[i:i + 1, :cols]

    x = x_ref[...]                                 # (TB, Tp), padded lanes = 0

    # Label embedding: one-hot (TB, NCp) @ padded table (NCp, Hp), in-kernel.
    labels = lab_ref[...]                          # (TB, 1) int32
    ncp = tbl_ref.shape[0]
    onehot = (labels == jax.lax.broadcasted_iota(
        jnp.int32, (labels.shape[0], ncp), 1)).astype(jnp.float32)
    emb = jnp.dot(onehot, tbl_ref[...],
                  preferred_element_type=jnp.float32, precision=_PREC)  # (TB, Hp)

    # Stage 1: temporal conv1 | spectral conv1 fused into one matmul (shared
    # input x, shared contraction K=T), then split by a static lane slice.
    p_t1, p_s1 = ly["p_t1"], ly["p_s1"]
    ts = lk(matW(x, "ts1", p_t1 + p_s1) + vrow(0, p_t1 + p_s1))
    t = ts[:, :p_t1]
    s = ts[:, p_t1:p_t1 + p_s1]

    # Temporal conv2 / conv3 (Conv1d+BatchNorm(eval) folded into matmuls).
    t = lk(matW(t, "t2", ly["p_t2"]) + vrow(1, ly["p_t2"]))
    t = lk(matW(t, "t3", ly["p_t3"]) + vrow(2, ly["p_t3"]))   # temporal_flat

    # Spectral conv2, then MaxPool1d(2,2) as one XLU lane roll + maximum;
    # only the pool-window-start lanes are consumed by the expanded "fis"
    # weight block below (the rest hit zero rows).
    s = lk(matW(s, "s2", ly["p_s2"]) + vrow(3, ly["p_s2"]))
    s = jnp.maximum(s, pltpu.roll(s, shift=ly["p_s2"] - 1, axis=1))

    # feature_integration Linear over cat([temporal, spectral, emb]),
    # expressed as a sum of three matmuls (no in-kernel concat).
    Hp = ly["Hp"]
    feat = (matW(t, "fit", Hp) + matW(s, "fis", Hp) + matW(emb, "fie", Hp)
            + vrow(4, Hp))                          # (TB, Hp); cols >= H are 0

    # Classifier: LayerNorm(H) (statistics over the H real lanes only)
    # + LeakyReLU(0.2) + Linear(H, 1).
    lane = jax.lax.broadcasted_iota(jnp.int32, feat.shape, 1)
    mask = lane < H
    mean = jnp.sum(feat, axis=-1, keepdims=True) * (1.0 / H)   # padded lanes 0
    cen = jnp.where(mask, feat - mean, 0.0)
    var = jnp.sum(cen * cen, axis=-1, keepdims=True) * (1.0 / H)
    f = lk(cen * jax.lax.rsqrt(var + EPS) * vrow(5, Hp) + vrow(6, Hp))

    # Final Linear, lane-padded to a full 128-lane (unmasked) store.
    out_ref[...] = matW(f, "cls", 128) + vrow(7, 128)


# ----------------------------------------------------------------------------
# Parameter construction (PyTorch-style shapes) and host-side packing.
# ----------------------------------------------------------------------------
def init_params(key, seq_length, hidden_dim, num_classes):
    H = hidden_dim
    C1, C2, C3 = H // 4, H // 2, H
    keys = iter(jax.random.split(key, 40))

    def w(shape, scale=0.15):
        return (scale * jax.random.normal(next(keys), shape)).astype(jnp.float32)

    def bn(c):
        g = (1.0 + 0.1 * jax.random.normal(next(keys), (c,))).astype(jnp.float32)
        b = (0.1 * jax.random.normal(next(keys), (c,))).astype(jnp.float32)
        m = (0.1 * jax.random.normal(next(keys), (c,))).astype(jnp.float32)
        v = (0.5 + jax.random.uniform(next(keys), (c,))).astype(jnp.float32)
        return (g, b, m, v)

    p = {}
    p["emb_table"] = w((num_classes + 1, H), 0.5)            # nn.Embedding
    p["t_conv1"], p["t_bn1"] = (w((C1, 1, 3)), w((C1,), 0.05)), bn(C1)
    p["t_conv2"], p["t_bn2"] = (w((C2, C1, 3)), w((C2,), 0.05)), bn(C2)
    p["t_conv3"], p["t_bn3"] = (w((C3, C2, 3)), w((C3,), 0.05)), bn(C3)
    p["s_conv1"], p["s_bn1"] = (w((C1, 1, 7)), w((C1,), 0.05)), bn(C1)
    p["s_conv2"], p["s_bn2"] = (w((C2, C1, 5)), w((C2,), 0.05)), bn(C2)
    total = _make_layout(seq_length, hidden_dim)["total_features"]
    p["W_fi"], p["b_fi"] = w((total, H)), w((H,), 0.05)      # lazy Linear
    p["ln_g"] = (1.0 + 0.1 * jax.random.normal(next(keys), (H,))).astype(jnp.float32)
    p["ln_b"] = w((H,), 0.05)
    p["W_cls"], p["b_cls"] = w((H, 1)), w((1,), 0.05)
    return p


def pack_params(p, *, seq_length, hidden_dim):
    T, H = seq_length, hidden_dim
    ly = _make_layout(T, H)
    LW = ly["lanes"]
    Wslab = np.zeros((ly["w_rows"], LW), np.float32)
    Vslab = np.zeros((ly["v_rows"], LW), np.float32)

    def fold_conv_bn(conv, bnp):
        w, b = (np.asarray(a, np.float32) for a in conv)
        g, be, m, v = (np.asarray(a, np.float32) for a in bnp)
        a = g / np.sqrt(v + EPS)
        return w * a[:, None, None], a * (b - m) + be

    def unfold(w, L_in, L_out, stride, pad):
        # (C_out, C_in, K) conv weight -> (C_in*L_in, C_out*L_out) matrix,
        # c-major flattening (matches torch.nn.Flatten on (B, C, L)).
        C_out, C_in, K = w.shape
        M = np.zeros((C_in * L_in, C_out * L_out), np.float32)
        for co in range(C_out):
            for ci in range(C_in):
                for dk in range(K):
                    for lo in range(L_out):
                        li = stride * lo + dk - pad
                        if 0 <= li < L_in:
                            M[ci * L_in + li, co * L_out + lo] += w[co, ci, dk]
        return M

    def put(name, M, col_off=0):
        off, n = ly[name]
        assert M.shape[0] <= n
        Wslab[off:off + M.shape[0], col_off:col_off + M.shape[1]] = M

    def put_bias(row, b, L_out, col_off=0):
        flat = np.repeat(np.asarray(b, np.float32), L_out)
        Vslab[row, col_off:col_off + flat.shape[0]] = flat

    # Stage 1: temporal conv1 and spectral conv1 fused along lanes.
    w1, b1 = fold_conv_bn(p["t_conv1"], p["t_bn1"])
    put("ts1", unfold(w1, T, T, 1, 1), col_off=0)
    put_bias(0, b1, T, col_off=0)
    w4, b4 = fold_conv_bn(p["s_conv1"], p["s_bn1"])
    put("ts1", unfold(w4, T, T, 1, 3), col_off=ly["p_t1"])
    put_bias(0, b4, T, col_off=ly["p_t1"])

    # Temporal conv2 / conv3.
    w2, b2 = fold_conv_bn(p["t_conv2"], p["t_bn2"])
    put("t2", unfold(w2, T, ly["L1t"], 2, 1)); put_bias(1, b2, ly["L1t"])
    w3, b3 = fold_conv_bn(p["t_conv3"], p["t_bn3"])
    put("t3", unfold(w3, ly["L1t"], ly["L2t"], 2, 1)); put_bias(2, b3, ly["L2t"])

    # Spectral conv2.
    w5, b5 = fold_conv_bn(p["s_conv2"], p["s_bn2"])
    put("s2", unfold(w5, T, ly["L1s"], 2, 2)); put_bias(3, b5, ly["L1s"])

    # feature_integration Linear split into [temporal | spectral | emb] blocks.
    W_fi = np.asarray(p["W_fi"], np.float32)
    tdim = ly["w_t3"]
    sdim = ly["C2"] * ly["L2s"]
    put("fit", W_fi[:tdim])
    W_fi_s = W_fi[tdim:tdim + sdim]
    # Expand the spectral block so it consumes the rolled max-pool layout
    # directly: pooled feature (c, l') lives at lane c*L1s + 2*l' of the conv2
    # output after the roll+max.  Assert the layout coupling so a future T/H
    # change cannot silently read across a channel boundary or the lane wrap.
    assert ly["L1s"] >= 2 and 2 * (ly["L2s"] - 1) + 1 <= ly["L1s"] - 1
    exp = np.zeros((ly["w_s2"], H), np.float32)
    for c in range(ly["C2"]):
        for l in range(ly["L2s"]):
            assert 2 * l + 1 < ly["L1s"]
            exp[c * ly["L1s"] + 2 * l] = W_fi_s[c * ly["L2s"] + l]
    put("fis", exp)
    put("fie", W_fi[tdim + sdim:])
    Vslab[4, :H] = np.asarray(p["b_fi"], np.float32)
    Vslab[5, :H] = np.asarray(p["ln_g"], np.float32)
    Vslab[6, :H] = np.asarray(p["ln_b"], np.float32)

    # Classifier Linear(H, 1), lane-padded for a dense 128-wide store.
    Wc = np.zeros((H, 128), np.float32)
    Wc[:, 0] = np.asarray(p["W_cls"], np.float32)[:, 0]
    put("cls", Wc)
    Vslab[7, 0] = float(np.asarray(p["b_cls"])[0])

    # Embedding table padded to (multiple-of-128 rows, Hp lanes) so the
    # in-kernel one-hot matmul is fully tile-aligned.
    tbl = np.asarray(p["emb_table"], np.float32)
    NC = tbl.shape[0]
    tbl_p = np.zeros((_ru(NC, 128), ly["Hp"]), np.float32)
    tbl_p[:NC, :H] = tbl

    return {"emb_tbl": jnp.asarray(tbl_p),
            "Wslab": jnp.asarray(Wslab),
            "Vslab": jnp.asarray(Vslab)}


# ----------------------------------------------------------------------------
# Wrapper: batch-tiled grid, resident weight slabs, megacore-parallel batch.
# ----------------------------------------------------------------------------
def bvp_discriminator_forward(packed, x, labels, *, seq_length, hidden_dim,
                              block_batch=256):
    B = x.shape[0]
    T, H = seq_length, hidden_dim
    ly = _make_layout(T, H)
    Tp = ly["Tp"]

    TB = _ru(min(block_batch, _ru(B, 8)), 8)       # batch tile (sublane mult of 8)
    Bp = _ru(B, TB)

    xs = x.reshape(B, T).astype(jnp.float32)
    xs = jnp.pad(xs, ((0, Bp - B), (0, Tp - T)))
    lab = labels.reshape(B, 1).astype(jnp.int32)
    lab = jnp.pad(lab, ((0, Bp - B), (0, 0)))

    grid = (Bp // TB,)
    out = pl.pallas_call(
        functools.partial(_disc_kernel, H, ly),
        grid=grid,
        out_shape=jax.ShapeDtypeStruct((Bp, 128), jnp.float32),
        in_specs=[
            pl.BlockSpec((TB, Tp), lambda i: (i, 0)),               # x tile
            pl.BlockSpec((TB, 1), lambda i: (i, 0)),                # labels tile
            pl.BlockSpec(packed["emb_tbl"].shape, lambda i: (0, 0)),  # resident
            pl.BlockSpec(packed["Wslab"].shape, lambda i: (0, 0)),    # resident
            pl.BlockSpec(packed["Vslab"].shape, lambda i: (0, 0)),    # resident
        ],
        out_specs=pl.BlockSpec((TB, 128), lambda i: (i, 0)),
        compiler_params=pltpu.CompilerParams(
            dimension_semantics=("parallel",),
            vmem_limit_bytes=32 * 1024 * 1024),
    )(xs, lab, packed["emb_tbl"], packed["Wslab"], packed["Vslab"])
    return out[:B, :1]                             # PyTorch returns (B, 1)


# ----------------------------------------------------------------------------
# Plain-JAX reference (direct transcription of the PyTorch module, eval BN).
# ----------------------------------------------------------------------------
def reference_forward(p, x, labels, *, seq_length, hidden_dim):
    emb = jnp.take(p["emb_table"], labels, axis=0)
    h = jnp.transpose(x, (0, 2, 1))                 # TransposeLayer(1,2)

    def conv(v, wb, stride, pad):
        w, b = wb
        y = jax.lax.conv_general_dilated(
            v, w, window_strides=(stride,), padding=[(pad, pad)],
            dimension_numbers=("NCH", "OIH", "NCH"), precision=_PREC)
        return y + b[None, :, None]

    def bn(v, prm):
        g, be, m, var = prm
        return ((v - m[None, :, None]) * jax.lax.rsqrt(var[None, :, None] + EPS)
                * g[None, :, None] + be[None, :, None])

    def lk(v):
        return jnp.where(v > 0, v, 0.2 * v)

    t = lk(bn(conv(h, p["t_conv1"], 1, 1), p["t_bn1"]))
    t = lk(bn(conv(t, p["t_conv2"], 2, 1), p["t_bn2"]))
    t = lk(bn(conv(t, p["t_conv3"], 2, 1), p["t_bn3"]))
    s = lk(bn(conv(h, p["s_conv1"], 1, 3), p["s_bn1"]))
    s = lk(bn(conv(s, p["s_conv2"], 2, 2), p["s_bn2"]))
    B, C, L = s.shape
    s = jnp.max(s[:, :, :(L // 2) * 2].reshape(B, C, L // 2, 2), axis=-1)

    combined = jnp.concatenate([t.reshape(B, -1), s.reshape(B, -1), emb], axis=1)
    feat = jnp.dot(combined, p["W_fi"], precision=_PREC) + p["b_fi"]
    mu = jnp.mean(feat, axis=-1, keepdims=True)
    var = jnp.mean((feat - mu) ** 2, axis=-1, keepdims=True)
    f = lk((feat - mu) * jax.lax.rsqrt(var + EPS) * p["ln_g"] + p["ln_b"])
    return jnp.dot(f, p["W_cls"], precision=_PREC) + p["b_cls"]


if __name__ == "__main__":
    seq_length, hidden_dim, num_classes = 16, 32, 3
    B = 4
    key = jax.random.PRNGKey(0)
    kp, kx = jax.random.split(key)

    params = init_params(kp, seq_length, hidden_dim, num_classes)
    packed = pack_params(params, seq_length=seq_length, hidden_dim=hidden_dim)

    x = jax.random.normal(kx, (B, seq_length, 1), jnp.float32)
    labels = jnp.array([0, 1, 2, 3], jnp.int32)

    out = bvp_discriminator_forward(packed, x, labels,
                                    seq_length=seq_length, hidden_dim=hidden_dim)
    out = jax.block_until_ready(out)
    assert out.shape == (B, 1)

    ref = reference_forward(params, x, labels,
                            seq_length=seq_length, hidden_dim=hidden_dim)
    err = float(jnp.max(jnp.abs(out - ref)))
    if err < 1e-3:
        print("KERNEL_OK")
    else:
        print(f"MISMATCH max_abs_err={err}")
</pallas_src>

<mosaic_0001>
module attributes {stable_mosaic.version = 11 : i64} {
  func.func @_disc_kernel(%arg0: i32, %arg1: memref<8x128xf32, #tpu.memory_space<vmem>>, %arg2: memref<8x1xi32, #tpu.memory_space<vmem>>, %arg3: memref<128x128xf32, #tpu.memory_space<vmem>>, %arg4: memref<1024x256xf32, #tpu.memory_space<vmem>>, %arg5: memref<8x256xf32, #tpu.memory_space<vmem>>, %arg6: memref<8x128xf32, #tpu.memory_space<vmem>>) attributes {dimension_semantics = [#tpu.dimension_semantics<parallel>], iteration_bounds = array<i64: 1>, scalar_prefetch = 0 : i64, scratch_operands = 0 : i64, tpu.core_type = #tpu.core_type<tc>, window_params = [{transform_indices = @transform_0, window_bounds = array<i64: 8, 128>}, {transform_indices = @transform_1, window_bounds = array<i64: 8, 1>}, {pipeline_mode = #tpu.pipeline_mode<synchronous>, transform_indices = @transform_2, window_bounds = array<i64: 128, 128>}, {pipeline_mode = #tpu.pipeline_mode<synchronous>, transform_indices = @transform_3, window_bounds = array<i64: 1024, 256>}, {pipeline_mode = #tpu.pipeline_mode<synchronous>, transform_indices = @transform_4, window_bounds = array<i64: 8, 256>}, {transform_indices = @transform_5, window_bounds = array<i64: 8, 128>}]} {
    %c0 = arith.constant 0 : index
    %c0_0 = arith.constant 0 : index
    %0 = vector.load %arg1[%c0, %c0_0] : memref<8x128xf32, #tpu.memory_space<vmem>>, vector<8x128xf32>
    %c0_1 = arith.constant 0 : index
    %c0_2 = arith.constant 0 : index
    %1 = vector.load %arg2[%c0_1, %c0_2] : memref<8x1xi32, #tpu.memory_space<vmem>>, vector<8x1xi32>
    %2 = tpu.iota {dimensions = array<i32: 1>} : vector<8x128xi32>
    %3 = vector.broadcast %1 : vector<8x1xi32> to vector<8x128xi32>
    %4 = arith.cmpi eq, %3, %2 : vector<8x128xi32>
    %5 = arith.extui %4 : vector<8x128xi1> to vector<8x128xi32>
    %6 = arith.sitofp %5 : vector<8x128xi32> to vector<8x128xf32>
    %c0_3 = arith.constant 0 : index
    %c0_4 = arith.constant 0 : index
    %7 = vector.load %arg3[%c0_3, %c0_4] : memref<128x128xf32, #tpu.memory_space<vmem>>, vector<128x128xf32>
    %cst = arith.constant dense<0.000000e+00> : vector<8x128xf32>
    %8 = tpu.matmul %6, %7, %cst {dimension_numbers = #tpu.dot_dimension_numbers<[1], [0], [0], [1], [0, 0, 1, 1], [], []>, precision = #tpu.contract_precision<fp32>} : vector<8x128xf32>, vector<128x128xf32>, vector<8x128xf32> -> vector<8x128xf32>
    %c0_5 = arith.constant 0 : index
    %c0_6 = arith.constant 0 : index
    %9 = vector.load %arg4[%c0_5, %c0_6] : memref<1024x256xf32, #tpu.memory_space<vmem>>, vector<128x256xf32>
    %cst_7 = arith.constant dense<0.000000e+00> : vector<8x256xf32>
    %10 = tpu.matmul %0, %9, %cst_7 {dimension_numbers = #tpu.dot_dimension_numbers<[1], [0], [0], [1], [0, 0, 1, 1], [], []>, precision = #tpu.contract_precision<fp32>} : vector<8x128xf32>, vector<128x256xf32>, vector<8x256xf32> -> vector<8x256xf32>
    %c0_8 = arith.constant 0 : index
    %c0_9 = arith.constant 0 : index
    %11 = vector.load %arg5[%c0_8, %c0_9] : memref<8x256xf32, #tpu.memory_space<vmem>>, vector<1x256xf32>
    %12 = vector.broadcast %11 : vector<1x256xf32> to vector<8x256xf32>
    %13 = arith.addf %10, %12 : vector<8x256xf32>
    %cst_10 = arith.constant 0.000000e+00 : f32
    %14 = vector.broadcast %cst_10 : f32 to vector<8x256xf32>
    %15 = arith.cmpf ogt, %13, %14 : vector<8x256xf32>
    %cst_11 = arith.constant 2.000000e-01 : f32
    %16 = vector.broadcast %cst_11 : f32 to vector<8x256xf32>
    %17 = arith.mulf %16, %13 : vector<8x256xf32>
    %18 = arith.select %15, %13, %17 : vector<8x256xi1>, vector<8x256xf32>
    %19 = vector.extract_strided_slice %18 {offsets = [0, 0], sizes = [8, 128], strides = [1, 1]} : vector<8x256xf32> to vector<8x128xf32>
    %20 = vector.extract_strided_slice %18 {offsets = [0, 128], sizes = [8, 128], strides = [1, 1]} : vector<8x256xf32> to vector<8x128xf32>
    %c128 = arith.constant 128 : index
    %c0_12 = arith.constant 0 : index
    %21 = vector.load %arg4[%c128, %c0_12] : memref<1024x256xf32, #tpu.memory_space<vmem>>, vector<128x128xf32>
    %cst_13 = arith.constant dense<0.000000e+00> : vector<8x128xf32>
    %22 = tpu.matmul %19, %21, %cst_13 {dimension_numbers = #tpu.dot_dimension_numbers<[1], [0], [0], [1], [0, 0, 1, 1], [], []>, precision = #tpu.contract_precision<fp32>} : vector<8x128xf32>, vector<128x128xf32>, vector<8x128xf32> -> vector<8x128xf32>
    %c1 = arith.constant 1 : index
    %c0_14 = arith.constant 0 : index
    %23 = vector.load %arg5[%c1, %c0_14] : memref<8x256xf32, #tpu.memory_space<vmem>>, vector<1x128xf32>
    %24 = vector.broadcast %23 : vector<1x128xf32> to vector<8x128xf32>
    %25 = arith.addf %22, %24 : vector<8x128xf32>
    %cst_15 = arith.constant 0.000000e+00 : f32
    %26 = vector.broadcast %cst_15 : f32 to vector<8x128xf32>
    %27 = arith.cmpf ogt, %25, %26 : vector<8x128xf32>
    %cst_16 = arith.constant 2.000000e-01 : f32
    %28 = vector.broadcast %cst_16 : f32 to vector<8x128xf32>
    %29 = arith.mulf %28, %25 : vector<8x128xf32>
    %30 = arith.select %27, %25, %29 : vector<8x128xi1>, vector<8x128xf32>
    %c256 = arith.constant 256 : index
    %c0_17 = arith.constant 0 : index
    %31 = vector.load %arg4[%c256, %c0_17] : memref<1024x256xf32, #tpu.memory_space<vmem>>, vector<128x128xf32>
    %cst_18 = arith.constant dense<0.000000e+00> : vector<8x128xf32>
    %32 = tpu.matmul %30, %31, %cst_18 {dimension_numbers = #tpu.dot_dimension_numbers<[1], [0], [0], [1], [0, 0, 1, 1], [], []>, precision = #tpu.contract_precision<fp32>} : vector<8x128xf32>, vector<128x128xf32>, vector<8x128xf32> -> vector<8x128xf32>
    %c2 = arith.constant 2 : index
    %c0_19 = arith.constant 0 : index
    %33 = vector.load %arg5[%c2, %c0_19] : memref<8x256xf32, #tpu.memory_space<vmem>>, vector<1x128xf32>
    %34 = vector.broadcast %33 : vector<1x128xf32> to vector<8x128xf32>
    %35 = arith.addf %32, %34 : vector<8x128xf32>
    %cst_20 = arith.constant 0.000000e+00 : f32
    %36 = vector.broadcast %cst_20 : f32 to vector<8x128xf32>
    %37 = arith.cmpf ogt, %35, %36 : vector<8x128xf32>
    %cst_21 = arith.constant 2.000000e-01 : f32
    %38 = vector.broadcast %cst_21 : f32 to vector<8x128xf32>
    %39 = arith.mulf %38, %35 : vector<8x128xf32>
    %40 = arith.select %37, %35, %39 : vector<8x128xi1>, vector<8x128xf32>
    %c384 = arith.constant 384 : index
    %c0_22 = arith.constant 0 : index
    %41 = vector.load %arg4[%c384, %c0_22] : memref<1024x256xf32, #tpu.memory_space<vmem>>, vector<128x128xf32>
    %cst_23 = arith.constant dense<0.000000e+00> : vector<8x128xf32>
    %42 = tpu.matmul %20, %41, %cst_23 {dimension_numbers = #tpu.dot_dimension_numbers<[1], [0], [0], [1], [0, 0, 1, 1], [], []>, precision = #tpu.contract_precision<fp32>} : vector<8x128xf32>, vector<128x128xf32>, vector<8x128xf32> -> vector<8x128xf32>
    %c3 = arith.constant 3 : index
    %c0_24 = arith.constant 0 : index
    %43 = vector.load %arg5[%c3, %c0_24] : memref<8x256xf32, #tpu.memory_space<vmem>>, vector<1x128xf32>
    %44 = vector.broadcast %43 : vector<1x128xf32> to vector<8x128xf32>
    %45 = arith.addf %42, %44 : vector<8x128xf32>
    %cst_25 = arith.constant 0.000000e+00 : f32
    %46 = vector.broadcast %cst_25 : f32 to vector<8x128xf32>
    %47 = arith.cmpf ogt, %45, %46 : vector<8x128xf32>
    %cst_26 = arith.constant 2.000000e-01 : f32
    %48 = vector.broadcast %cst_26 : f32 to vector<8x128xf32>
    %49 = arith.mulf %48, %45 : vector<8x128xf32>
    %50 = arith.select %47, %45, %49 : vector<8x128xi1>, vector<8x128xf32>
    %c127_i32 = arith.constant 127 : i32
    %51 = tpu.dynamic_rotate %50 by %c127_i32 dim 1 : vector<8x128xf32>, i32 -> vector<8x128xf32>
    %52 = arith.maximumf %50, %51 : vector<8x128xf32>
    %c512 = arith.constant 512 : index
    %c0_27 = arith.constant 0 : index
    %53 = vector.load %arg4[%c512, %c0_27] : memref<1024x256xf32, #tpu.memory_space<vmem>>, vector<128x128xf32>
    %cst_28 = arith.constant dense<0.000000e+00> : vector<8x128xf32>
    %54 = tpu.matmul %40, %53, %cst_28 {dimension_numbers = #tpu.dot_dimension_numbers<[1], [0], [0], [1], [0, 0, 1, 1], [], []>, precision = #tpu.contract_precision<fp32>} : vector<8x128xf32>, vector<128x128xf32>, vector<8x128xf32> -> vector<8x128xf32>
    %c640 = arith.constant 640 : index
    %c0_29 = arith.constant 0 : index
    %55 = vector.load %arg4[%c640, %c0_29] : memref<1024x256xf32, #tpu.memory_space<vmem>>, vector<128x128xf32>
    %cst_30 = arith.constant dense<0.000000e+00> : vector<8x128xf32>
    %56 = tpu.matmul %52, %55, %cst_30 {dimension_numbers = #tpu.dot_dimension_numbers<[1], [0], [0], [1], [0, 0, 1, 1], [], []>, precision = #tpu.contract_precision<fp32>} : vector<8x128xf32>, vector<128x128xf32>, vector<8x128xf32> -> vector<8x128xf32>
    %57 = arith.addf %54, %56 : vector<8x128xf32>
    %c768 = arith.constant 768 : index
    %c0_31 = arith.constant 0 : index
    %58 = vector.load %arg4[%c768, %c0_31] : memref<1024x256xf32, #tpu.memory_space<vmem>>, vector<128x128xf32>
    %cst_32 = arith.constant dense<0.000000e+00> : vector<8x128xf32>
    %59 = tpu.matmul %8, %58, %cst_32 {dimension_numbers = #tpu.dot_dimension_numbers<[1], [0], [0], [1], [0, 0, 1, 1], [], []>, precision = #tpu.contract_precision<fp32>} : vector<8x128xf32>, vector<128x128xf32>, vector<8x128xf32> -> vector<8x128xf32>
    %60 = arith.addf %57, %59 : vector<8x128xf32>
    %c4 = arith.constant 4 : index
    %c0_33 = arith.constant 0 : index
    %61 = vector.load %arg5[%c4, %c0_33] : memref<8x256xf32, #tpu.memory_space<vmem>>, vector<1x128xf32>
    %62 = vector.broadcast %61 : vector<1x128xf32> to vector<8x128xf32>
    %63 = arith.addf %60, %62 : vector<8x128xf32>
    %64 = tpu.iota {dimensions = array<i32: 1>} : vector<8x128xi32>
    %c32_i32 = arith.constant 32 : i32
    %65 = vector.broadcast %c32_i32 : i32 to vector<8x128xi32>
    %66 = arith.cmpi slt, %64, %65 : vector<8x128xi32>
    %cst_34 = arith.constant dense<0.000000e+00> : vector<8xf32>
    %67 = vector.multi_reduction <add>, %63, %cst_34 [1] : vector<8x128xf32> to vector<8xf32>
    %68 = vector.shape_cast %67 : vector<8xf32> to vector<8x1xf32>
    %cst_35 = arith.constant 3.125000e-02 : f32
    %69 = vector.broadcast %cst_35 : f32 to vector<8x1xf32>
    %70 = arith.mulf %68, %69 : vector<8x1xf32>
    %71 = vector.broadcast %70 : vector<8x1xf32> to vector<8x128xf32>
    %72 = arith.subf %63, %71 : vector<8x128xf32>
    %cst_36 = arith.constant 0.000000e+00 : f32
    %73 = vector.broadcast %cst_36 : f32 to vector<8x128xf32>
    %74 = arith.select %66, %72, %73 : vector<8x128xi1>, vector<8x128xf32>
    %75 = arith.mulf %74, %74 : vector<8x128xf32>
    %cst_37 = arith.constant dense<0.000000e+00> : vector<8xf32>
    %76 = vector.multi_reduction <add>, %75, %cst_37 [1] : vector<8x128xf32> to vector<8xf32>
    %77 = vector.shape_cast %76 : vector<8xf32> to vector<8x1xf32>
    %cst_38 = arith.constant 3.125000e-02 : f32
    %78 = vector.broadcast %cst_38 : f32 to vector<8x1xf32>
    %79 = arith.mulf %77, %78 : vector<8x1xf32>
    %cst_39 = arith.constant 9.99999974E-6 : f32
    %80 = vector.broadcast %cst_39 : f32 to vector<8x1xf32>
    %81 = arith.addf %79, %80 : vector<8x1xf32>
    %82 = math.rsqrt %81 : vector<8x1xf32>
    %83 = vector.broadcast %82 : vector<8x1xf32> to vector<8x128xf32>
    %84 = arith.mulf %74, %83 : vector<8x128xf32>
    %c5 = arith.constant 5 : index
    %c0_40 = arith.constant 0 : index
    %85 = vector.load %arg5[%c5, %c0_40] : memref<8x256xf32, #tpu.memory_space<vmem>>, vector<1x128xf32>
    %86 = vector.broadcast %85 : vector<1x128xf32> to vector<8x128xf32>
    %87 = arith.mulf %84, %86 : vector<8x128xf32>
    %c6 = arith.constant 6 : index
    %c0_41 = arith.constant 0 : index
    %88 = vector.load %arg5[%c6, %c0_41] : memref<8x256xf32, #tpu.memory_space<vmem>>, vector<1x128xf32>
    %89 = vector.broadcast %88 : vector<1x128xf32> to vector<8x128xf32>
    %90 = arith.addf %87, %89 : vector<8x128xf32>
    %cst_42 = arith.constant 0.000000e+00 : f32
    %91 = vector.broadcast %cst_42 : f32 to vector<8x128xf32>
    %92 = arith.cmpf ogt, %90, %91 : vector<8x128xf32>
    %cst_43 = arith.constant 2.000000e-01 : f32
    %93 = vector.broadcast %cst_43 : f32 to vector<8x128xf32>
    %94 = arith.mulf %93, %90 : vector<8x128xf32>
    %95 = arith.select %92, %90, %94 : vector<8x128xi1>, vector<8x128xf32>
    %c896 = arith.constant 896 : index
    %c0_44 = arith.constant 0 : index
    %96 = vector.load %arg4[%c896, %c0_44] : memref<1024x256xf32, #tpu.memory_space<vmem>>, vector<128x128xf32>
    %cst_45 = arith.constant dense<0.000000e+00> : vector<8x128xf32>
    %97 = tpu.matmul %95, %96, %cst_45 {dimension_numbers = #tpu.dot_dimension_numbers<[1], [0], [0], [1], [0, 0, 1, 1], [], []>, precision = #tpu.contract_precision<fp32>} : vector<8x128xf32>, vector<128x128xf32>, vector<8x128xf32> -> vector<8x128xf32>
    %c7 = arith.constant 7 : index
    %c0_46 = arith.constant 0 : index
    %98 = vector.load %arg5[%c7, %c0_46] : memref<8x256xf32, #tpu.memory_space<vmem>>, vector<1x128xf32>
    %99 = vector.broadcast %98 : vector<1x128xf32> to vector<8x128xf32>
    %100 = arith.addf %97, %99 : vector<8x128xf32>
    %c0_47 = arith.constant 0 : index
    %c0_48 = arith.constant 0 : index
    %101 = vector.load %arg6[%c0_47, %c0_48] : memref<8x128xf32, #tpu.memory_space<vmem>>, vector<8x128xf32>
    tpu.vector_store %arg6[%c0_47, %c0_48], %100 {strides = array<i32>} : memref<8x128xf32, #tpu.memory_space<vmem>>, vector<8x128xf32>,
    return
  }
  func.func @transform_0(%arg0: i32) -> (i32, i32) {
    %c0_i32 = arith.constant 0 : i32
    %c0_i32_0 = arith.constant 0 : i32
    return %arg0, %c0_i32 : i32, i32
  }
  func.func @transform_1(%arg0: i32) -> (i32, i32) {
    %c0_i32 = arith.constant 0 : i32
    %c0_i32_0 = arith.constant 0 : i32
    return %arg0, %c0_i32 : i32, i32
  }
  func.func @transform_2(%arg0: i32) -> (i32, i32) {
    %c0_i32 = arith.constant 0 : i32
    %c0_i32_0 = arith.constant 0 : i32
    %c0_i32_1 = arith.constant 0 : i32
    return %c0_i32, %c0_i32_0 : i32, i32
  }
  func.func @transform_3(%arg0: i32) -> (i32, i32) {
    %c0_i32 = arith.constant 0 : i32
    %c0_i32_0 = arith.constant 0 : i32
    %c0_i32_1 = arith.constant 0 : i32
    return %c0_i32, %c0_i32_0 : i32, i32
  }
  func.func @transform_4(%arg0: i32) -> (i32, i32) {
    %c0_i32 = arith.constant 0 : i32
    %c0_i32_0 = arith.constant 0 : i32
    %c0_i32_1 = arith.constant 0 : i32
    return %c0_i32, %c0_i32_0 : i32, i32
  }
  func.func @transform_5(%arg0: i32) -> (i32, i32) {
    %c0_i32 = arith.constant 0 : i32
    %c0_i32_0 = arith.constant 0 : i32
    return %arg0, %c0_i32 : i32, i32
  }
}

</mosaic_0001>

<bundles_post_ra>
// kernel: tpu_custom_call.1
= control target key start
LH: loop header
LB: loop body
LE: loop exit
PB: predicated region body
PF: predicated region fallthrough
CT: control target
= control target key end

     0   :  { %10 = vsyncpa [#allocation3], 0  ;;  %s6344_s0 = inlined_call_operand.vmem [shape: f32[8,128], index: 0, kind: input, shape index: {}]   ;;  %s6345_s1 = inlined_call_operand.vmem [shape: s32[8,1], index: 1, kind: input, shape index: {}]   ;;  %s6346_s2 = inlined_call_operand.hbm [shape: f32[128,128], index: 2, kind: input, shape index: {}]   ;;  %s6347_s3 = inlined_call_operand.hbm [shape: f32[1024,256], index: 3, kind: input, shape index: {}]   ;;  %s6348_s4 = inlined_call_operand.hbm [shape: f32[8,256], index: 4, kind: input, shape index: {}]   ;;  %s6349_s5 = inlined_call_operand.hbm [shape: f32[8,128], index: 5, kind: output, shape index: {}]  }
   0x1   :  { %11 = vsyncpa [#allocation6], 0  ;;  %s34_s20 = sshll.u32 %s6347_s3, 4  ;;  %s35_s20 = int_to_ptr.hbm [resolvable:$true] %s34_s20 }
   0x2   :  { %12 = vsyncpa [#allocation4], 0  ;;  %s3846_s21 = smov [#allocation5]   ;;  %s21_s25 = sshll.u32 %s6346_s2, 4  ;;  %s22_s25 = int_to_ptr.hbm [resolvable:$true] %s21_s25 }
   0x3   :  { %s36_s22 = sshll.u32 %s3846_s21, 4  ;;  %s3847_s26 = smov 256   ;;  %s37_s22 = int_to_ptr.vmem [resolvable:$true] %s36_s22 }
   0x4   :  { %s3848_s27 = smov 16   ;;  %s3849_s28 = smov [#allocation2]  }
   0x5   :  { %42 = dma.hbm_to_vmem [thread:$0]  %s35_s20, 32768, %s37_s22, [#allocation6], %s3847_s26, %s3847_s26, %s3848_s27  }
   0x6   :  { %s23_s29 = sshll.u32 %s3849_s28, 4  ;;  %s3850_s30 = smov 128   ;;  %s24_s29 = int_to_ptr.vmem [resolvable:$true] %s23_s29 }
   0x7   :  { %s3851_s6 = smov 8   ;;  %s48_s8 = sshll.u32 %s6348_s4, 4  ;;  %s49_s8 = int_to_ptr.hbm [resolvable:$true] %s48_s8 }
   0x8   :  { %29 = dma.hbm_to_vmem [thread:$0]  %s22_s25, 2048, %s24_s29, [#allocation3], %s3850_s30, %s3850_s30, %s3851_s6  }
   0x9   :  { %s3852_s9 = smov [#allocation7]  }
   0xa   :  { %s50_s10 = sshll.u32 %s3852_s9, 4  ;;  %s51_s10 = int_to_ptr.vmem [resolvable:$true] %s50_s10 }
   0xb   :  { %53 = dma.hbm_to_vmem [thread:$0]  %s49_s8, 256, %s51_s10, [#allocation6]  }
   0xc   :  { %3840 = dma.done.wait [#allocation3], 2048  }
   0xd   :  { %3841 = vsyncadd [#allocation3], 4294965248 }
   0xe   :  { %3842 = dma.done.wait [#allocation6], 33024  }
   0xf   :  { %3843 = vsyncadd [#allocation6], 4294934272  ;;  %v3853_v0 = vmov 0   ;;  %v67_v1 = vld [vmem:[%s6345_s1] sm:$0xff]  ;;  %v91_v2 = vld [vmem:[#allocation2 + $0x78] sm:$0xff]  ;;  %s3857_s12 = smov [#allocation8]  }
  0x10   :  { %3741 = vset.pattern.permute.xlu0 %v3853_v0  ;;  %v90_v3 = vld [vmem:[#allocation2 + $0x70] sm:$0xff]  ;;  %v3900_v4 = vand.u32 4294901760, %v91_v2  ;;  %v89_v6 = vld [vmem:[#allocation2 + $0x68] sm:$0xff]  ;;  %v88_v7 = vld [vmem:[#allocation2 + $0x60] sm:$0xff]  ;;  %s3712_s13 = sshll.u32 %s3857_s12, 4  ;;  %s3714_s16 = sshll.u32 %s6349_s5, 4  ;;  %s3713_s13 = int_to_ptr.vmem [resolvable:$true] %s3712_s13  ;;  %s3715_s16 = int_to_ptr.hbm [resolvable:$true] %s3714_s16 }
  0x11   :  { %71 = vperm.xlu0 %3741, %v67_v1   ;;  %v3902_v5 = vand.u32 4294901760, %v90_v3  ;;  %v87_v8 = vld [vmem:[#allocation2 + $0x58] sm:$0xff]  ;;  %v3904_v9 = vand.u32 4294901760, %v89_v6  ;;  %v3906_v10 = vand.u32 4294901760, %v88_v7  ;;  %v86_v12 = vld [vmem:[#allocation2 + $0x50] sm:$0xff]  ;;  %v85_v13 = vld [vmem:[#allocation2 + $0x48] sm:$0xff] }
  0x12   :  { %v3908_v11 = vand.u32 4294901760, %v87_v8  ;;  %v84_v14 = vld [vmem:[#allocation2 + $0x40] sm:$0xff]  ;;  %v3911_v15 = vsub.f32 %v91_v2, %v3900_v4  ;;  %93 = vmatpush.msra.mxu0 %v3900_v4  ;;  %289 = vmatpush.msra.mxu3 %v3900_v4  ;;  %v3918_v17 = vand.u32 4294901760, %v86_v12  ;;  %v3920_v18 = vand.u32 4294901760, %v85_v13  ;;  %v83_v34 = vld [vmem:[#allocation2 + $0x38] sm:$0xff]  ;;  %v82_v35 = vld [vmem:[#allocation2 + $0x30] sm:$0xff] }
  0x13   :  { %v3915_v16 = vsub.f32 %v90_v3, %v3902_v5  ;;  %v3923_v19 = vsub.f32 %v89_v6, %v3904_v9  ;;  %v3926_v20 = vsub.f32 %v88_v7, %v3906_v10  ;;  %v3931_v22 = vand.u32 4294901760, %v84_v14  ;;  %v81_v40 = vld [vmem:[#allocation2 + $0x28] sm:$0xff]  ;;  %v80_v41 = vld [vmem:[#allocation2 + $0x20] sm:$0xff]  ;;  %v79_v47 = vld [vmem:[#allocation2 + $0x18] sm:$0xff] }
  0x14   :  { %v3929_v21 = vsub.f32 %v87_v8, %v3908_v11  ;;  %236 = vmatpush.msra.mxu2 %v3911_v15  ;;  %v6364_v23 = vand.u32 4294901760, %v3911_v15  ;;  %95 = vmatpush.msra.mxu0 %v3902_v5  ;;  %v3938_v25 = vsub.f32 %v86_v12, %v3918_v17  ;;  %v3944_v28 = vsub.f32 %v85_v13, %v3920_v18  ;;  %v78_v55 = vld [vmem:[#allocation2 + $0x10] sm:$0xff]  ;;  %v77_v61 = vld [vmem:[#allocation2 + $0x8] sm:$0xff]  ;;  %v76_v3 = vld [vmem:[#allocation2] sm:$0xff] }
  0x15   :  { %v6363_v24 = vand.u32 4294901760, %v3915_v16  ;;  %291 = vmatpush.msra.mxu3 %v3902_v5  ;;  %v6361_v26 = vand.u32 4294901760, %v3923_v19  ;;  %v6359_v27 = vand.u32 4294901760, %v3926_v20  ;;  %v3960_v33 = vsub.f32 %v84_v14, %v3931_v22  ;;  %v463_v12 = vld [vmem:[#allocation5 + $0xf0] sm:$0xff]  ;;  %v461_v13 = vld [vmem:[#allocation5 + $0xe0] sm:$0xff] }
  0x16   :  { %v136_v29 = vsub.f32 %v3911_v15, %v6364_v23  ;;  %239 = vmatpush.msra.mxu2 %v3915_v16  ;;  %97 = vmatpush.msra.mxu0 %v3904_v9  ;;  %v6358_v31 = vand.u32 4294901760, %v3929_v21  ;;  %v6356_v39 = vand.u32 4294901760, %v3938_v25  ;;  %v6355_v42 = vand.u32 4294901760, %v3944_v28 }
  0x17   :  { %v142_v30 = vsub.f32 %v3915_v16, %v6363_v24  ;;  %v148_v32 = vsub.f32 %v3923_v19, %v6361_v26  ;;  %293 = vmatpush.msra.mxu3 %v3904_v9  ;;  %v154_v38 = vsub.f32 %v3926_v20, %v6359_v27  ;;  %v3974_v45 = vand.u32 4294901760, %v83_v34 }
  0x18   :  { %v137_v36 = vand.u32 4294901760, %v136_v29  ;;  %242 = vmatpush.msra.mxu2 %v3923_v19  ;;  %99 = vmatpush.msra.mxu0 %v3906_v10  ;;  %v160_v44 = vsub.f32 %v3929_v21, %v6358_v31  ;;  %v3976_v46 = vand.u32 4294901760, %v82_v35  ;;  %v6354_v48 = vand.u32 4294901760, %v3960_v33 }
  0x19   :  { %v143_v37 = vand.u32 4294901760, %v142_v30  ;;  %295 = vmatpush.msra.mxu3 %v3906_v10  ;;  %v149_v43 = vand.u32 4294901760, %v148_v32  ;;  %v3981_v49 = vand.u32 4294901760, %v81_v40  ;;  %v3983_v50 = vand.u32 4294901760, %v80_v41  ;;  %v459_v30 = vld [vmem:[#allocation5 + $0xd0] sm:$0xff] }
  0x1a   :  { %138 = vmatpush.msra.mxu1 %v137_v36  ;;  %245 = vmatpush.msra.mxu2 %v3926_v20  ;;  %v155_v51 = vand.u32 4294901760, %v154_v38  ;;  %v166_v52 = vsub.f32 %v3938_v25, %v6356_v39  ;;  %v3990_v53 = vsub.f32 %v83_v34, %v3974_v45  ;;  %v3993_v54 = vsub.f32 %v82_v35, %v3976_v46  ;;  %v457_v36 = vld [vmem:[#allocation5 + $0xc0] sm:$0xff] }
  0x1b   :  { %101 = vmatpush.msra.mxu0 %v3908_v11  ;;  %297 = vmatpush.msra.mxu3 %v3908_v11  ;;  %v3998_v56 = vsub.f32 %v81_v40, %v3981_v49  ;;  %v4000_v57 = vand.u32 4294901760, %v79_v47  ;;  %v161_v58 = vand.u32 4294901760, %v160_v44  ;;  %v172_v59 = vsub.f32 %v3944_v28, %v6355_v42  ;;  %v449_v39 = vld [vmem:[#allocation5 + $0x80] sm:$0xff] }
  0x1c   :  { %144 = vmatpush.msra.mxu1 %v143_v37  ;;  %248 = vmatpush.msra.mxu2 %v3929_v21  ;;  %v6352_v60 = vand.u32 4294901760, %v3990_v53  ;;  %v4010_v62 = vsub.f32 %v80_v41, %v3983_v50  ;;  %v4012_v63 = vand.u32 4294901760, %v78_v55  ;;  %v167_v0 = vand.u32 4294901760, %v166_v52  ;;  %v455_v52 = vld [vmem:[#allocation5 + $0xb0] sm:$0xff] }
  0x1d   :  { %103 = vmatpush.msra.mxu0 %v3918_v17  ;;  %299 = vmatpush.msra.mxu3 %v3918_v17  ;;  %v178_v1 = vsub.f32 %v3960_v33, %v6354_v48  ;;  %v6351_v2 = vand.u32 4294901760, %v3993_v54  ;;  %v6350_v6 = vand.u32 4294901760, %v3998_v56  ;;  %v4023_v7 = vsub.f32 %v79_v47, %v4000_v57 }
  0x1e   :  { %150 = vmatpush.msra.mxu1 %v149_v43  ;;  %251 = vmatpush.msra.mxu2 %v3938_v25  ;;  %v4025_v8 = vand.u32 4294901760, %v77_v61  ;;  %v173_v14 = vand.u32 4294901760, %v172_v59  ;;  %v184_v29 = vsub.f32 %v3990_v53, %v6352_v60  ;;  %v6353_v32 = vand.u32 4294901760, %v4010_v62  ;;  %v451_v60 = vld [vmem:[#allocation5 + $0x90] sm:$0xff] }
  0x1f   :  { %105 = vmatpush.msra.mxu0 %v3920_v18  ;;  %301 = vmatpush.msra.mxu3 %v3920_v18  ;;  %v4035_v34 = vsub.f32 %v78_v55, %v4012_v63  ;;  %v4037_v35 = vand.u32 4294901760, %v76_v3  ;;  %v179_v37 = vand.u32 4294901760, %v178_v1  ;;  %v190_v38 = vsub.f32 %v3993_v54, %v6351_v2  ;;  %v453_v1 = vld [vmem:[#allocation5 + $0xa0] sm:$0xff] }
  0x20   :  { %156 = vmatpush.msra.mxu1 %v155_v51  ;;  %254 = vmatpush.msra.mxu2 %v3944_v28  ;;  %v4043_v40 = vand.u32 4294901760, %v463_v12  ;;  %v4045_v41 = vand.u32 4294901760, %v461_v13  ;;  %v196_v43 = vsub.f32 %v3998_v56, %v6350_v6  ;;  %v6357_v44 = vand.u32 4294901760, %v4023_v7 }
  0x21   :  { %107 = vmatpush.msra.mxu0 %v3931_v22  ;;  %303 = vmatpush.msra.mxu3 %v3931_v22  ;;  %v4054_v47 = vsub.f32 %v77_v61, %v4025_v8  ;;  %v4056_v51 = vand.u32 4294901760, %v459_v30  ;;  %v185_v55 = vand.u32 4294901760, %v184_v29  ;;  %v202_v61 = vsub.f32 %v4010_v62, %v6353_v32 }
  0x22   :  { %162 = vmatpush.msra.mxu1 %v161_v58  ;;  %257 = vmatpush.msra.mxu2 %v3960_v33  ;;  %v4060_v58 = vsub.f32 %v463_v12, %v4043_v40  ;;  %v4063_v59 = vsub.f32 %v461_v13, %v4045_v41  ;;  %v4074_v29 = vsub.f32 %v76_v3, %v4037_v35  ;;  %v191_v12 = vand.u32 4294901760, %v190_v38 }
  0x23   :  { %109 = vmatpush.msra.mxu0 %v3974_v45  ;;  %305 = vmatpush.msra.mxu3 %v3974_v45  ;;  %v4079_v6 = vsub.f32 %v459_v30, %v4056_v51  ;;  %v4081_v2 = vand.u32 4294901760, %v455_v52  ;;  %v6366_v32 = vand.u32 4294901760, %v4054_v47  ;;  %v4086_v3 = vand.u32 4294901760, %v453_v1 }
  0x24   :  { %168 = vmatpush.msra.mxu1 %v167_v0  ;;  %260 = vmatpush.msra.mxu2 %v3990_v53  ;;  %6411 = vst [vmem:[#allocation12_spill] sm:$0xff] %v4060_v58  ;;  %v4065_v0 = vand.u32 4294901760, %v457_v36  ;;  %v6362_v13 = vand.u32 4294901760, %v4060_v58  ;;  %v208_v30 = vsub.f32 %v4023_v7, %v6357_v44  ;;  %v6365_v38 = vand.u32 4294901760, %v4063_v59 }
  0x25   :  { %111 = vmatpush.msra.mxu0 %v3976_v46  ;;  %307 = vmatpush.msra.mxu3 %v3976_v46  ;;  %6412 = vst [vmem:[#allocation13_spill] sm:$0xff] %v4063_v59  ;;  %v4102_v42 = vand.u32 4294901760, %v451_v60  ;;  %v203_v44 = vand.u32 4294901760, %v202_v61  ;;  %v6370_v31 = vand.u32 4294901760, %v4079_v6  ;;  %v4110_v27 = vsub.f32 %v455_v52, %v4081_v2 }
  0x26   :  { %174 = vmatpush.msra.mxu1 %v173_v14  ;;  %263 = vmatpush.msra.mxu2 %v3993_v54  ;;  %v6360_v14 = vand.u32 4294901760, %v4035_v34  ;;  %6413 = vst [vmem:[#allocation14_spill] sm:$0xff] %v4079_v6  ;;  %v4094_v48 = vsub.f32 %v457_v36, %v4065_v0  ;;  %v515_v36 = vsub.f32 %v4060_v58, %v6362_v13  ;;  %v209_v26 = vand.u32 4294901760, %v208_v30  ;;  %v445_v30 = vld [vmem:[#allocation5 + $0x60] sm:$0xff] }
  0x27   :  { %113 = vmatpush.msra.mxu0 %v3981_v49  ;;  %309 = vmatpush.msra.mxu3 %v3981_v49  ;;  %v4118_v61 = vsub.f32 %v453_v1, %v4086_v3  ;;  %v521_v52 = vsub.f32 %v4063_v59, %v6365_v38  ;;  %v4125_v24 = vand.u32 4294901760, %v449_v39  ;;  %v6416_v58 = vand.u32 4294901760, %v3911_v15 }
  0x28   :  { %180 = vmatpush.msra.mxu1 %v179_v37  ;;  %266 = vmatpush.msra.mxu2 %v3998_v56  ;;  %v197_v37 = vand.u32 4294901760, %v196_v43  ;;  %6414 = vst [vmem:[#allocation15_spill] sm:$0xff] %v4094_v48  ;;  %v6369_v43 = vand.u32 4294901760, %v4074_v29  ;;  %v516_v38 = vand.u32 4294901760, %v515_v36  ;;  %v6415_v36 = vand.u32 4294901760, %v4094_v48 }
  0x29   :  { %115 = vmatpush.msra.mxu0 %v3983_v50  ;;  %311 = vmatpush.msra.mxu3 %v3983_v50 }
  0x2a   :  { %186 = vmatpush.msra.mxu1 %v185_v55  ;;  %269 = vmatpush.msra.mxu2 %v4010_v62  ;;  %v214_v55 = vsub.f32 %v4035_v34, %v6360_v14  ;;  %v447_v14 = vld [vmem:[#allocation5 + $0x70] sm:$0xff]  ;;  %v226_v1 = vsub.f32 %v4074_v29, %v6369_v43 }
  0x2b   :  { %117 = vmatpush.msra.mxu0 %v4000_v57  ;;  %313 = vmatpush.msra.mxu3 %v4000_v57  ;;  %v4140_v13 = vand.u32 4294901760, %v447_v14  ;;  %v443_v43 = vld [vmem:[#allocation5 + $0x50] sm:$0xff] }
  0x2c   :  { %192 = vmatpush.msra.mxu1 %v191_v12  ;;  %272 = vmatpush.msra.mxu2 %v4023_v7  ;;  %v220_v12 = vsub.f32 %v4054_v47, %v6366_v32  ;;  %v215_v23 = vand.u32 4294901760, %v214_v55  ;;  %v527_v55 = vsub.f32 %v4079_v6, %v6370_v31  ;;  %v533_v31 = vsub.f32 %v4094_v48, %v6415_v36 }
  0x2d   :  { %119 = vmatpush.msra.mxu0 %v4012_v63  ;;  %315 = vmatpush.msra.mxu3 %v4012_v63  ;;  %v4150_v32 = vsub.f32 %v449_v39, %v4125_v24  ;;  %v4152_v6 = vand.u32 4294901760, %v445_v30  ;;  %v4162_v39 = vsub.f32 %v447_v14, %v4140_v13  ;;  %v4164_v48 = vand.u32 4294901760, %v443_v43 }
  0x2e   :  { %198 = vmatpush.msra.mxu1 %v197_v37  ;;  %275 = vmatpush.msra.mxu2 %v4035_v34  ;;  %v4133_v37 = vsub.f32 %v451_v60, %v4102_v42  ;;  %v221_v59 = vand.u32 4294901760, %v220_v12  ;;  %v227_v12 = vand.u32 4294901760, %v226_v1  ;;  %v6417_v60 = vand.u32 4294901760, %v4110_v27 }
  0x2f   :  { %121 = vmatpush.msra.mxu0 %v4025_v8  ;;  %317 = vmatpush.msra.mxu3 %v4025_v8  ;;  %v6418_v1 = vand.u32 4294901760, %v3915_v16  ;;  %v534_v15 = vand.u32 4294901760, %v533_v31  ;;  %v6420_v14 = vand.u32 4294901760, %v3923_v19 }
  0x30   :  { %204 = vmatpush.msra.mxu1 %v203_v44  ;;  %278 = vmatpush.msra.mxu2 %v4054_v47  ;;  %v522_v44 = vand.u32 4294901760, %v521_v52  ;;  %v528_v52 = vand.u32 4294901760, %v527_v55  ;;  %v539_v36 = vsub.f32 %v4110_v27, %v6417_v60  ;;  %v4174_v55 = vsub.f32 %v445_v30, %v4152_v6 }
  0x31   :  { %123 = vmatpush.msra.mxu0 %v4037_v35  ;;  %319 = vmatpush.msra.mxu3 %v4037_v35  ;;  %v4184_v60 = vsub.f32 %v443_v43, %v4164_v48  ;;  %v6421_v30 = vand.u32 4294901760, %v3926_v20  ;;  %v6422_v43 = vand.u32 4294901760, %v3929_v21 }
  0x32   :  { %210 = vmatpush.msra.mxu1 %v209_v26  ;;  %281 = vmatpush.msra.mxu2 %v4074_v29  ;;  %v550_v26 = vand.u32 4294901760, %v4133_v37  ;;  %v540_v16 = vand.u32 4294901760, %v539_v36  ;;  %v6423_v36 = vand.u32 4294901760, %v3938_v25 }
  0x33   :  { %330 = vmatpush.msrb.mxu0 %v6416_v58  ;;  %517 = vmatpush.msrb.mxu3 %v516_v38  ;;  %v556_v38 = vand.u32 4294901760, %v4150_v32 }
  0x34   :  { %472 = vmatpush.msrb.mxu2 %v4043_v40  ;;  %216 = vmatpush.msra.mxu1 %v215_v23  ;;  %v6419_v23 = vand.u32 4294901760, %v4118_v61  ;;  %v551_v31 = vsub.f32 %v4133_v37, %v550_v26 }
  0x35   :  { %334 = vmatpush.msrb.mxu0 %v6418_v1  ;;  %523 = vmatpush.msrb.mxu3 %v522_v44  ;;  %v557_v44 = vsub.f32 %v4150_v32, %v556_v38  ;;  %v6424_v1 = vand.u32 4294901760, %v3944_v28  ;;  %v6426_v28 = vand.u32 4294901760, %v3990_v53  ;;  %v6430_v53 = vand.u32 4294901760, %v4023_v7 }
  0x36   :  { %474 = vmatpush.msrb.mxu2 %v4045_v41  ;;  %222 = vmatpush.msra.mxu1 %v221_v59  ;;  %v545_v58 = vsub.f32 %v4118_v61, %v6419_v23  ;;  %v562_v59 = vand.u32 4294901760, %v4162_v39  ;;  %v441_v23 = vld [vmem:[#allocation5 + $0x40] sm:$0xff] }
  0x37   :  { %338 = vmatpush.msrb.mxu0 %v6420_v14  ;;  %529 = vmatpush.msrb.mxu3 %v528_v52  ;;  %v574_v52 = vand.u32 4294901760, %v4184_v60 }
  0x38   :  { %476 = vmatpush.msrb.mxu2 %v4056_v51  ;;  %228 = vmatpush.msra.mxu1 %v227_v12  ;;  %v546_v19 = vand.u32 4294901760, %v545_v58  ;;  %v568_v12 = vand.u32 4294901760, %v4174_v55  ;;  %v563_v20 = vsub.f32 %v4162_v39, %v562_v59 }
  0x39   :  { %342 = vmatpush.msrb.mxu0 %v6421_v30  ;;  %535 = vmatpush.msrb.mxu3 %v534_v15  ;;  %v575_v25 = vsub.f32 %v4184_v60, %v574_v52  ;;  %v6425_v15 = vand.u32 4294901760, %v3960_v33  ;;  %v6428_v33 = vand.u32 4294901760, %v3998_v56 }
  0x3a   :  { %397 = vmatpush.msrb.mxu1 %v3900_v4  ;;  %478 = vmatpush.msrb.mxu2 %v4065_v0  ;;  %v552_v4 = vand.u32 4294901760, %v551_v31  ;;  %v569_v21 = vsub.f32 %v4174_v55, %v568_v12 }
  0x3b   :  { %346 = vmatpush.msrb.mxu0 %v6422_v43  ;;  %541 = vmatpush.msrb.mxu3 %v540_v16  ;;  %v576_v58 = vand.u32 4294901760, %v575_v25 }
  0x3c   :  { %399 = vmatpush.msrb.mxu1 %v3902_v5  ;;  %480 = vmatpush.msrb.mxu2 %v4081_v2  ;;  %v558_v5 = vand.u32 4294901760, %v557_v44 }
  0x3d   :  { %350 = vmatpush.msrb.mxu0 %v6423_v36  ;;  %547 = vmatpush.msrb.mxu3 %v546_v19 }
  0x3e   :  { %401 = vmatpush.msrb.mxu1 %v3904_v9  ;;  %482 = vmatpush.msrb.mxu2 %v4086_v3  ;;  %v564_v9 = vand.u32 4294901760, %v563_v20 }
  0x3f   :  { %354 = vmatpush.msrb.mxu0 %v6424_v1  ;;  %553 = vmatpush.msrb.mxu3 %v552_v4 }
  0x40   :  { %403 = vmatpush.msrb.mxu1 %v3906_v10  ;;  %484 = vmatpush.msrb.mxu2 %v4102_v42  ;;  %v570_v10 = vand.u32 4294901760, %v569_v21 }
  0x41   :  { %358 = vmatpush.msrb.mxu0 %v6425_v15  ;;  %559 = vmatpush.msrb.mxu3 %v558_v5  ;;  %v68_v15 = vlaneseq }
  0x42   :  { %405 = vmatpush.msrb.mxu1 %v3908_v11  ;;  %486 = vmatpush.msrb.mxu2 %v4125_v24  ;;  %v6427_v11 = vand.u32 4294901760, %v3993_v54  ;;  %v6432_v54 = vand.u32 4294901760, %v4054_v47 }
  0x43   :  { %362 = vmatpush.msrb.mxu0 %v6426_v28  ;;  %565 = vmatpush.msrb.mxu3 %v564_v9 }
  0x44   :  { %407 = vmatpush.msrb.mxu1 %v3918_v17  ;;  %488 = vmatpush.msrb.mxu2 %v4140_v13  ;;  %v4230_v17 = vand.u32 4294901760, %v441_v23 }
  0x45   :  { %366 = vmatpush.msrb.mxu0 %v6427_v11  ;;  %571 = vmatpush.msrb.mxu3 %v570_v10  ;;  %v4300_v10 = vand.u32 127, %v68_v15 }
  0x46   :  { %409 = vmatpush.msrb.mxu1 %v3920_v18  ;;  %490 = vmatpush.msrb.mxu2 %v4152_v6  ;;  %v6429_v18 = vand.u32 4294901760, %v4010_v62  ;;  %v4256_v56 = vsub.f32 %v441_v23, %v4230_v17  ;;  %v3854_v23 = vmov 1.0  }
  0x47   :  { %370 = vmatpush.msrb.mxu0 %v6428_v33  ;;  %577 = vmatpush.msrb.mxu3 %v576_v58  ;;  %6434 = vst [vmem:[#allocation16_spill] sm:$0xff] %v4300_v10  ;;  %v3855_v58 = vmov 0.0  }
  0x48   :  { %411 = vmatpush.msrb.mxu1 %v3931_v22  ;;  %492 = vmatpush.msrb.mxu2 %v4164_v48  ;;  %v6431_v22 = vand.u32 4294901760, %v4035_v34 }
  0x49   :  { %374 = vmatpush.msrb.mxu0 %v6429_v18  ;;  %v66_v18 = vld [vmem:[%s6344_s0] sm:$0xff]  ;;  %s3856_s0 = smov 127  }
  0x4a   :  { %413 = vmatpush.msrb.mxu1 %v3974_v45  ;;  %494 = vmatpush.msrb.mxu2 %v4230_v17  ;;  %v6433_v45 = vand.u32 4294901760, %v4074_v29  ;;  %v433_v29 = vld [vmem:[#allocation5] sm:$0xff] }
  0x4b   :  { %378 = vmatpush.msrb.mxu0 %v6430_v53  ;;  %v4280_v30 = vand.u32 4294901760, %v433_v29 }
  0x4c   :  { %415 = vmatpush.msrb.mxu1 %v3976_v46  ;;  %v439_v46 = vld [vmem:[#allocation5 + $0x30] sm:$0xff] }
  0x4d   :  { %382 = vmatpush.msrb.mxu0 %v6431_v22  ;;  %v4290_v4 = vsub.f32 %v433_v29, %v4280_v30  ;;  %v6435_v22 = vld [vmem:[#allocation12_spill] sm:$0xff]  ;;  %v6439_v29 = vld [vmem:[#allocation14_spill] sm:$0xff] }
  0x4e   :  { %417 = vmatpush.msrb.mxu1 %v3981_v49  ;;  %v4253_v49 = vand.u32 4294901760, %v439_v46 }
  0x4f   :  { %386 = vmatpush.msrb.mxu0 %v6432_v54  ;;  %v604_v5 = vand.u32 4294901760, %v4290_v4  ;;  %v6436_v54 = vand.u32 4294901760, %v6435_v22 }
  0x50   :  { %419 = vmatpush.msrb.mxu1 %v3983_v50  ;;  %v437_v50 = vld [vmem:[#allocation5 + $0x20] sm:$0xff]  ;;  %496 = vmatpush.msrb.mxu2 %v4253_v49  ;;  %v4263_v7 = vsub.f32 %v439_v46, %v4253_v49  ;;  %v4315_v46 = vand.u32 4294901760, %v66_v18 }
  0x51   :  { %390 = vmatpush.msrb.mxu0 %v6433_v45  ;;  %v4260_v62 = vand.u32 4294901760, %v437_v50  ;;  %v605_v1 = vsub.f32 %v4290_v4, %v604_v5 }
  0x52   :  { %421 = vmatpush.msrb.mxu1 %v4000_v57  ;;  %v580_v57 = vand.u32 4294901760, %v4256_v56  ;;  %v586_v34 = vand.u32 4294901760, %v4263_v7 }
  0x53   :  { %498 = vmatpush.msrb.mxu2 %v4260_v62  ;;  %v4273_v47 = vsub.f32 %v437_v50, %v4260_v62  ;;  %v606_v25 = vand.u32 4294901760, %v605_v1  ;;  %v6437_v50 = vld [vmem:[#allocation13_spill] sm:$0xff] }
  0x54   :  { %423 = vmatpush.msrb.mxu1 %v4012_v63  ;;  %v435_v63 = vld [vmem:[#allocation5 + $0x10] sm:$0xff]  ;;  %v587_v16 = vsub.f32 %v4263_v7, %v586_v34 }
  0x55   :  { %v592_v31 = vand.u32 4294901760, %v4273_v47 }
  0x56   :  { %425 = vmatpush.msrb.mxu1 %v4025_v8  ;;  %v581_v8 = vsub.f32 %v4256_v56, %v580_v57  ;;  %v588_v44 = vand.u32 4294901760, %v587_v16  ;;  %v4327_v16 = vsub.f32 %v66_v18, %v4315_v46  ;;  %v442_v18 = vld [vmem:[#allocation5 + $0x48] sm:$0xff] }
  0x57   :  { %v593_v43 = vsub.f32 %v4273_v47, %v592_v31 }
  0x58   :  { %427 = vmatpush.msrb.mxu1 %v4037_v35  ;;  %v4270_v35 = vand.u32 4294901760, %v435_v63  ;;  %v582_v14 = vand.u32 4294901760, %v581_v8 }
  0x59   :  { %v594_v36 = vand.u32 4294901760, %v593_v43 }
  0x5a   :  { %500 = vmatpush.msrb.mxu2 %v4270_v35  ;;  %v4283_v19 = vsub.f32 %v435_v63, %v4270_v35  ;;  %583 = vmatpush.msrb.mxu3 %v582_v14  ;;  %v6438_v63 = vand.u32 4294901760, %v6437_v50  ;;  %v6440_v14 = vand.u32 4294901760, %v6439_v29 }
  0x5c   :  { %502 = vmatpush.msrb.mxu2 %v4280_v30  ;;  %v598_v20 = vand.u32 4294901760, %v4283_v19  ;;  %589 = vmatpush.msrb.mxu3 %v588_v44  ;;  %v6441_v44 = vld [vmem:[#allocation15_spill] sm:$0xff] }
  0x5d   :  { %v6442_v43 = vand.u32 4294901760, %v6441_v44 }
  0x5e   :  { %v599_v21 = vsub.f32 %v4283_v19, %v598_v20  ;;  %595 = vmatpush.msrb.mxu3 %v594_v36  ;;  %v6444_v36 = vand.u32 4294901760, %v4118_v61 }
  0x60   :  { %v600_v9 = vand.u32 4294901760, %v599_v21 }
  0x62   :  { %601 = vmatpush.msrb.mxu3 %v600_v9 }
  0x64   :  { %607 = vmatpush.msrb.mxu3 %v606_v25 }
  0x83   :  { %v72_v28 = vpop.permute.xlu0 %71 }
  0x84   :  { %vm73_vm0 = vcmp.eq.s32.totalorder %v72_v28, %v4300_v10 }
  0x85   :  { %3726 = vmatmul.msk.f32.vlgmr.msra.gmra.mxu1 %vm73_vm0, %v3854_v23  ;;  %v3725_v11 = vsel %vm73_vm0, 1.0, %v3855_v58 }
  0x86   :  { %v125_v33 = vsub.f32 %v3725_v11, %v3725_v11  ;;  %668 = vmatpush.msra.mxu1 %v4043_v40 }
  0x88   :  { %284 = vmatmul.f32.vlgmr.msra.gmra.mxu2 %v125_v33  ;;  %v126_v53 = vand.u32 4294901760, %v125_v33  ;;  %670 = vmatpush.msra.mxu1 %v4045_v41 }
  0x89   :  { %709 = vmatpush.msra.mxu2 %v6436_v54 }
  0x8a   :  { %323 = vmatmul.f32.vlgmr.msra.gmra.mxu3 %v126_v53  ;;  %v127_v45 = vsub.f32 %v125_v33, %v126_v53  ;;  %672 = vmatpush.msra.mxu1 %v4056_v51 }
  0x8b   :  { %713 = vmatpush.msra.mxu2 %v6438_v63  ;;  %776 = vmatpush.msra.mxu3 %v4043_v40  ;;  %v6443_v40 = vand.u32 4294901760, %v4110_v27 }
  0x8c   :  { %v128_v8 = vand.u32 4294901760, %v127_v45  ;;  %674 = vmatpush.msra.mxu1 %v4065_v0  ;;  %v440_v45 = vld [vmem:[#allocation5 + $0x38] sm:$0xff] }
  0x8d   :  { %3728 = vmatmul.msk.f32.vlgmr.msrb.gmra.mxu1 %vm73_vm0, %v3854_v23  ;;  %717 = vmatpush.msra.mxu2 %v6440_v14 }
  0x8e   :  { %129 = vmatmul.f32.vlgmr.msra.gmra.mxu0 %v128_v8  ;;  %778 = vmatpush.msra.mxu3 %v4045_v41  ;;  %v4340_v41 = vand.u32 4294901760, %v4327_v16 }
  0x8f   :  { %615 = vmatpush.msra.mxu0 %v6435_v22  ;;  %721 = vmatpush.msra.mxu2 %v6442_v43 }
  0x90   :  { %780 = vmatpush.msra.mxu3 %v4056_v51  ;;  %676 = vmatpush.msra.mxu1 %v4081_v2  ;;  %v506_v51 = vsub.f32 %v4327_v16, %v4340_v41 }
  0x91   :  { %618 = vmatpush.msra.mxu0 %v6437_v50  ;;  %725 = vmatpush.msra.mxu2 %v6443_v40 }
  0x92   :  { %782 = vmatpush.msra.mxu3 %v4065_v0  ;;  %678 = vmatpush.msra.mxu1 %v4086_v3  ;;  %v462_v0 = vld [vmem:[#allocation5 + $0xe8] sm:$0xff] }
  0x93   :  { %621 = vmatpush.msra.mxu0 %v6439_v29  ;;  %729 = vmatpush.msra.mxu2 %v6444_v36  ;;  %v4494_v29 = vand.u32 4294901760, %v442_v18 }
  0x94   :  { %784 = vmatpush.msra.mxu3 %v4081_v2  ;;  %680 = vmatpush.msra.mxu1 %v4102_v42  ;;  %v464_v2 = vld [vmem:[#allocation5 + $0xf8] sm:$0xff] }
  0x95   :  { %624 = vmatpush.msra.mxu0 %v6441_v44  ;;  %733 = vmatpush.msra.mxu2 %v550_v26  ;;  %v438_v44 = vld [vmem:[#allocation5 + $0x28] sm:$0xff] }
  0x96   :  { %3727 = vmatmul.msk.f32.vlgmr.msrb.gmra.mxu0 %vm73_vm0, %v3854_v23  ;;  %786 = vmatpush.msra.mxu3 %v4086_v3  ;;  %v4365_v3 = vand.u32 4294901760, %v506_v51  ;;  %v444_v23 = vld [vmem:[#allocation5 + $0x58] sm:$0xff]  ;;  %v4506_v51 = vand.u32 4294901760, %v440_v45 }
  0x97   :  { %627 = vmatpush.msra.mxu0 %v4110_v27  ;;  %737 = vmatpush.msra.mxu2 %v556_v38  ;;  %v4367_v27 = vand.u32 4294901760, %v464_v2  ;;  %v454_v38 = vld [vmem:[#allocation5 + $0xa8] sm:$0xff]  ;;  %v4482_v54 = vand.u32 4294901760, %v444_v23 }
  0x98   :  { %788 = vmatpush.msra.mxu3 %v4102_v42  ;;  %682 = vmatpush.msra.mxu1 %v4125_v24  ;;  %v460_v42 = vld [vmem:[#allocation5 + $0xd8] sm:$0xff] }
  0x99   :  { %630 = vmatpush.msra.mxu0 %v4118_v61  ;;  %741 = vmatpush.msra.mxu2 %v562_v59  ;;  %v4374_v61 = vand.u32 4294901760, %v462_v0  ;;  %v4384_v26 = vand.u32 4294901760, %v460_v42  ;;  %v4504_v36 = vsub.f32 %v444_v23, %v4482_v54 }
  0x9a   :  { %790 = vmatpush.msra.mxu3 %v4125_v24  ;;  %684 = vmatpush.msra.mxu1 %v4140_v13  ;;  %v458_v24 = vld [vmem:[#allocation5 + $0xc8] sm:$0xff] }
  0x9b   :  { %633 = vmatpush.msra.mxu0 %v4133_v37  ;;  %745 = vmatpush.msra.mxu2 %v568_v12  ;;  %v4382_v37 = vsub.f32 %v464_v2, %v4367_v27  ;;  %v4403_v59 = vsub.f32 %v460_v42, %v4384_v26  ;;  %v452_v12 = vld [vmem:[#allocation5 + $0x98] sm:$0xff] }
  0x9c   :  { %792 = vmatpush.msra.mxu3 %v4140_v13  ;;  %686 = vmatpush.msra.mxu1 %v4152_v6  ;;  %v456_v13 = vld [vmem:[#allocation5 + $0xb8] sm:$0xff] }
  0x9d   :  { %636 = vmatpush.msra.mxu0 %v4150_v32  ;;  %749 = vmatpush.msra.mxu2 %v574_v52  ;;  %v4392_v32 = vsub.f32 %v462_v0, %v4374_v61  ;;  %v436_v0 = vld [vmem:[#allocation5 + $0x18] sm:$0xff] }
  0x9e   :  { %794 = vmatpush.msra.mxu3 %v4152_v6  ;;  %508 = vmatmul.f32.vlgmr.msrb.gmra.mxu2 %v4365_v3  ;;  %v4394_v6 = vand.u32 4294901760, %v458_v24 }
  0x9f   :  { %639 = vmatpush.msra.mxu0 %v4162_v39  ;;  %753 = vmatpush.msra.mxu2 %v580_v57  ;;  %v855_v39 = vand.u32 4294901760, %v4382_v37  ;;  %v450_v57 = vld [vmem:[#allocation5 + $0x88] sm:$0xff] }
  0xa0   :  { %796 = vmatpush.msra.mxu3 %v4164_v48  ;;  %688 = vmatpush.msra.mxu1 %v4164_v48  ;;  %v4405_v48 = vand.u32 4294901760, %v456_v13  ;;  %v4414_v52 = vsub.f32 %v458_v24, %v4394_v6 }
  0xa1   :  { %642 = vmatpush.msra.mxu0 %v4174_v55  ;;  %757 = vmatpush.msra.mxu2 %v586_v34  ;;  %v861_v55 = vand.u32 4294901760, %v4392_v32  ;;  %v856_v34 = vsub.f32 %v4382_v37, %v855_v39 }
  0xa2   :  { %798 = vmatpush.msra.mxu3 %v4230_v17  ;;  %690 = vmatpush.msra.mxu1 %v4230_v17  ;;  %v4416_v17 = vand.u32 4294901760, %v454_v38  ;;  %v4430_v21 = vsub.f32 %v456_v13, %v4405_v48  ;;  %v873_v1 = vand.u32 4294901760, %v4414_v52  ;;  %v4516_v13 = vsub.f32 %v442_v18, %v4494_v29 }
  0xa3   :  { %645 = vmatpush.msra.mxu0 %v4184_v60  ;;  %609 = vmatmul.f32.vlgmr.msrb.gmra.mxu3 %v4315_v46  ;;  %v4420_v60 = vand.u32 4294901760, %v452_v12 }
  0xa4   :  { %761 = vmatpush.msra.mxu2 %v592_v31  ;;  %800 = vmatpush.msra.mxu3 %v4253_v49  ;;  %v867_v31 = vand.u32 4294901760, %v4403_v59  ;;  %v4444_v9 = vsub.f32 %v454_v38, %v4416_v17  ;;  %v879_v15 = vand.u32 4294901760, %v4430_v21  ;;  %v874_v58 = vsub.f32 %v4414_v52, %v873_v1 }
  0xa5   :  { %648 = vmatpush.msra.mxu0 %v4256_v56  ;;  %692 = vmatpush.msra.mxu1 %v4253_v49  ;;  %v4434_v49 = vand.u32 4294901760, %v450_v57  ;;  %v448_v56 = vld [vmem:[#allocation5 + $0x78] sm:$0xff]  ;;  %v4518_v38 = vand.u32 4294901760, %v438_v44  ;;  %v921_v23 = vand.u32 4294901760, %v4516_v13 }
  0xa6   :  { %765 = vmatpush.msra.mxu2 %v598_v20  ;;  %802 = vmatpush.msra.mxu3 %v4260_v62  ;;  %v862_v20 = vsub.f32 %v4392_v32, %v861_v55  ;;  %v868_v25 = vsub.f32 %v4403_v59, %v867_v31  ;;  %v4457_v28 = vand.u32 4294901760, %v448_v56  ;;  %v885_v11 = vand.u32 4294901760, %v4444_v9 }
  0xa7   :  { %651 = vmatpush.msra.mxu0 %v4263_v7  ;;  %694 = vmatpush.msra.mxu1 %v4260_v62  ;;  %v4449_v62 = vsub.f32 %v452_v12, %v4420_v60  ;;  %v446_v7 = vld [vmem:[#allocation5 + $0x68] sm:$0xff]  ;;  %v880_v53 = vsub.f32 %v4430_v21, %v879_v15  ;;  %v875_v50 = vand.u32 4294901760, %v874_v58 }
  0xa8   :  { %769 = vmatpush.msra.mxu2 %v604_v5  ;;  %804 = vmatpush.msra.mxu3 %v4270_v35  ;;  %v857_v5 = vand.u32 4294901760, %v856_v34  ;;  %v4470_v33 = vand.u32 4294901760, %v446_v7  ;;  %v4480_v22 = vsub.f32 %v448_v56, %v4457_v28  ;;  %v886_v63 = vsub.f32 %v4444_v9, %v885_v11 }
  0xa9   :  { %654 = vmatpush.msra.mxu0 %v4273_v47  ;;  %771 = vmatmul.f32.vlgmr.msra.gmra.mxu2 %v4315_v46  ;;  %v4462_v47 = vsub.f32 %v450_v57, %v4434_v49  ;;  %v881_v43 = vand.u32 4294901760, %v880_v53  ;;  %v434_v57 = vld [vmem:[#allocation5 + $0x8] sm:$0xff]  ;;  %v915_v56 = vand.u32 4294901760, %v4504_v36 }
  0xaa   :  { %696 = vmatpush.msra.mxu1 %v4270_v35  ;;  %806 = vmatpush.msra.mxu3 %v4280_v30  ;;  %v863_v35 = vand.u32 4294901760, %v862_v20  ;;  %v4492_v8 = vsub.f32 %v446_v7, %v4470_v33  ;;  %v903_v40 = vand.u32 4294901760, %v4480_v22  ;;  %v887_v42 = vand.u32 4294901760, %v886_v63 }
  0xab   :  { %657 = vmatpush.msra.mxu0 %v4283_v19  ;;  %808 = vmatmul.f32.vlgmr.msra.gmra.mxu3 %v4315_v46  ;;  %v891_v19 = vand.u32 4294901760, %v4449_v62  ;;  %v4528_v20 = vsub.f32 %v440_v45, %v4506_v51  ;;  %v4530_v7 = vand.u32 4294901760, %v436_v0  ;;  %v4542_v58 = vand.u32 4294901760, %v434_v57 }
  0xac   :  { %698 = vmatpush.msra.mxu1 %v4280_v30  ;;  %1009 = vmatpush.msrb.mxu3 %v4367_v27  ;;  %v869_v30 = vand.u32 4294901760, %v868_v25  ;;  %v909_v24 = vand.u32 4294901760, %v4492_v8  ;;  %v904_v34 = vsub.f32 %v4480_v22, %v903_v40  ;;  %v922_v63 = vsub.f32 %v4516_v13, %v921_v23 }
  0xad   :  { %660 = vmatpush.msra.mxu0 %v4290_v4  ;;  %702 = vmatmul.f32.vlgmr.msra.gmra.mxu1 %v4340_v41  ;;  %v897_v4 = vand.u32 4294901760, %v4462_v47  ;;  %v892_v14 = vsub.f32 %v4449_v62, %v891_v19  ;;  %v927_v53 = vand.u32 4294901760, %v4528_v20  ;;  %v4552_v45 = vsub.f32 %v436_v0, %v4530_v7 }
  0xae   :  { %663 = vmatmul.f32.vlgmr.msra.gmra.mxu0 %v4327_v16  ;;  %858 = vmatpush.msrb.mxu1 %v857_v5  ;;  %v910_v25 = vsub.f32 %v4492_v8, %v909_v24  ;;  %v905_v18 = vand.u32 4294901760, %v904_v34 }
  0xaf   :  { %813 = vmatpush.msrb.mxu0 %v4367_v27  ;;  %1011 = vmatpush.msrb.mxu3 %v4374_v61  ;;  %v898_v2 = vsub.f32 %v4462_v47, %v897_v4  ;;  %v893_v12 = vand.u32 4294901760, %v892_v14  ;;  %v939_v0 = vand.u32 4294901760, %v4552_v45 }
  0xb0   :  { %864 = vmatpush.msrb.mxu1 %v863_v35  ;;  %956 = vmatpush.msrb.mxu2 %v4382_v37  ;;  %v4540_v35 = vsub.f32 %v438_v44, %v4518_v38  ;;  %v4562_v44 = vsub.f32 %v434_v57, %v4542_v58  ;;  %v1172_v37 = vld [vmem:[#allocation5 + $0x1d0] sm:$0xff] }
  0xb1   :  { %815 = vmatpush.msrb.mxu0 %v4374_v61  ;;  %1013 = vmatpush.msrb.mxu3 %v4384_v26  ;;  %v899_v5 = vand.u32 4294901760, %v898_v2  ;;  %v928_v2 = vsub.f32 %v4528_v20, %v927_v53 }
  0xb2   :  { %870 = vmatpush.msrb.mxu1 %v869_v30  ;;  %959 = vmatpush.msrb.mxu2 %v4392_v32  ;;  %v916_v30 = vsub.f32 %v4504_v36, %v915_v56  ;;  %v933_v14 = vand.u32 4294901760, %v4540_v35  ;;  %v945_v57 = vand.u32 4294901760, %v4562_v44 }
  0xb3   :  { %817 = vmatpush.msrb.mxu0 %v4384_v26  ;;  %1015 = vmatpush.msrb.mxu3 %v4394_v6  ;;  %v929_v34 = vand.u32 4294901760, %v928_v2 }
  0xb4   :  { %876 = vmatpush.msrb.mxu1 %v875_v50  ;;  %962 = vmatpush.msrb.mxu2 %v4403_v59  ;;  %v911_v50 = vand.u32 4294901760, %v910_v25 }
  0xb5   :  { %819 = vmatpush.msrb.mxu0 %v4394_v6  ;;  %1017 = vmatpush.msrb.mxu3 %v4405_v48 }
  0xb6   :  { %882 = vmatpush.msrb.mxu1 %v881_v43  ;;  %965 = vmatpush.msrb.mxu2 %v4414_v52  ;;  %v917_v43 = vand.u32 4294901760, %v916_v30 }
  0xb7   :  { %821 = vmatpush.msrb.mxu0 %v4405_v48  ;;  %1019 = vmatpush.msrb.mxu3 %v4416_v17 }
  0xb8   :  { %888 = vmatpush.msrb.mxu1 %v887_v42  ;;  %968 = vmatpush.msrb.mxu2 %v4430_v21  ;;  %v923_v42 = vand.u32 4294901760, %v922_v63 }
  0xb9   :  { %823 = vmatpush.msrb.mxu0 %v4416_v17  ;;  %1021 = vmatpush.msrb.mxu3 %v4420_v60 }
  0xba   :  { %894 = vmatpush.msrb.mxu1 %v893_v12  ;;  %971 = vmatpush.msrb.mxu2 %v4444_v9  ;;  %v934_v12 = vsub.f32 %v4540_v35, %v933_v14  ;;  %v1169_v9 = vld [vmem:[#allocation5 + $0x1a0] sm:$0xff] }
  0xbb   :  { %825 = vmatpush.msrb.mxu0 %v4420_v60  ;;  %1023 = vmatpush.msrb.mxu3 %v4434_v49 }
  0xbc   :  { %900 = vmatpush.msrb.mxu1 %v899_v5  ;;  %974 = vmatpush.msrb.mxu2 %v4449_v62  ;;  %v940_v5 = vsub.f32 %v4552_v45, %v939_v0  ;;  %v935_v25 = vand.u32 4294901760, %v934_v12  ;;  %v1164_v12 = vld [vmem:[#allocation5 + $0x150] sm:$0xff] }
  0xbd   :  { %827 = vmatpush.msrb.mxu0 %v4434_v49  ;;  %1025 = vmatpush.msrb.mxu3 %v4457_v28 }
  0xbe   :  { %906 = vmatpush.msrb.mxu1 %v905_v18  ;;  %977 = vmatpush.msrb.mxu2 %v4462_v47  ;;  %v946_v18 = vsub.f32 %v4562_v44, %v945_v57  ;;  %v941_v30 = vand.u32 4294901760, %v940_v5  ;;  %v4680_v47 = vand.u32 4294901760, %v1169_v9  ;;  %v4744_v5 = vand.u32 4294901760, %v1164_v12 }
  0xbf   :  { %829 = vmatpush.msrb.mxu0 %v4457_v28  ;;  %1027 = vmatpush.msrb.mxu3 %v4470_v33 }
  0xc0   :  { %912 = vmatpush.msrb.mxu1 %v911_v50  ;;  %980 = vmatpush.msrb.mxu2 %v4480_v22  ;;  %v947_v50 = vand.u32 4294901760, %v946_v18  ;;  %v4756_v18 = vsub.f32 %v1164_v12, %v4744_v5 }
  0xc1   :  { %831 = vmatpush.msrb.mxu0 %v4470_v33  ;;  %1029 = vmatpush.msrb.mxu3 %v4482_v54 }
  0xc2   :  { %918 = vmatpush.msrb.mxu1 %v917_v43  ;;  %983 = vmatpush.msrb.mxu2 %v4492_v8  ;;  %v1165_v43 = vld [vmem:[#allocation5 + $0x160] sm:$0xff] }
  0xc3   :  { %833 = vmatpush.msrb.mxu0 %v4482_v54  ;;  %1031 = vmatpush.msrb.mxu3 %v4494_v29 }
  0xc4   :  { %924 = vmatpush.msrb.mxu1 %v923_v42  ;;  %986 = vmatpush.msrb.mxu2 %v4504_v36 }
  0xc5   :  { %835 = vmatpush.msrb.mxu0 %v4494_v29  ;;  %1033 = vmatpush.msrb.mxu3 %v4506_v51 }
  0xc6   :  { %930 = vmatpush.msrb.mxu1 %v929_v34  ;;  %989 = vmatpush.msrb.mxu2 %v4516_v13 }
  0xc7   :  { %837 = vmatpush.msrb.mxu0 %v4506_v51  ;;  %1035 = vmatpush.msrb.mxu3 %v4518_v38 }
  0xc8   :  { %936 = vmatpush.msrb.mxu1 %v935_v25  ;;  %992 = vmatpush.msrb.mxu2 %v4528_v20  ;;  %v1163_v25 = vld [vmem:[#allocation5 + $0x140] sm:$0xff] }
  0xc9   :  { %839 = vmatpush.msrb.mxu0 %v4518_v38  ;;  %1037 = vmatpush.msrb.mxu3 %v4530_v7 }
  0xca   :  { %942 = vmatpush.msrb.mxu1 %v941_v30  ;;  %995 = vmatpush.msrb.mxu2 %v4540_v35  ;;  %v4758_v30 = vand.u32 4294901760, %v1163_v25 }
  0xcb   :  { %841 = vmatpush.msrb.mxu0 %v4530_v7  ;;  %1039 = vmatpush.msrb.mxu3 %v4542_v58 }
  0xcc   :  { %948 = vmatpush.msrb.mxu1 %v947_v50  ;;  %998 = vmatpush.msrb.mxu2 %v4552_v45 }
  0xcd   :  { %843 = vmatpush.msrb.mxu0 %v4542_v58  ;;  %950 = vmatmul.f32.vlgmr.msrb.gmra.mxu1 %v4315_v46 }
  0xce   :  { %1117 = vmatpush.msra.mxu1 %v4367_v27  ;;  %1001 = vmatpush.msrb.mxu2 %v4562_v44 }
  0xcf   :  { %1050 = vmatpush.msra.mxu0 %v855_v39  ;;  %1043 = vmatmul.f32.vlgmr.msrb.gmra.mxu3 %v4340_v41  ;;  %v1171_v39 = vld [vmem:[#allocation5 + $0x1c0] sm:$0xff] }
  0xd0   :  { %1119 = vmatpush.msra.mxu1 %v4374_v61  ;;  %849 = vmatmul.f32.vlgmr.msrb.gmra.mxu0 %v4365_v3  ;;  %v1174_v3 = vld [vmem:[#allocation5 + $0x1f0] sm:$0xff]  ;;  %v4657_v52 = vand.u32 4294901760, %v1171_v39 }
  0xd1   :  { %1054 = vmatpush.msra.mxu0 %v861_v55  ;;  %1004 = vmatmul.f32.vlgmr.msrb.gmra.mxu2 %v4327_v16  ;;  %v4626_v41 = vand.u32 4294901760, %v1174_v3  ;;  %v1173_v16 = vld [vmem:[#allocation5 + $0x1e0] sm:$0xff] }
  0xd2   :  { %1121 = vmatpush.msra.mxu1 %v4384_v26  ;;  %v4634_v61 = vand.u32 4294901760, %v1173_v16 }
  0xd3   :  { %1058 = vmatpush.msra.mxu0 %v867_v31  ;;  %v4632_v27 = vsub.f32 %v1174_v3, %v4626_v41  ;;  %1177 = vmatpush.msra.mxu2 %v4626_v41  ;;  %v1162_v3 = vld [vmem:[#allocation5 + $0x130] sm:$0xff] }
  0xd4   :  { %1123 = vmatpush.msra.mxu1 %v4394_v6  ;;  %v4642_v32 = vsub.f32 %v1173_v16, %v4634_v61  ;;  %v4644_v6 = vand.u32 4294901760, %v1172_v37 }
  0xd5   :  { %1062 = vmatpush.msra.mxu0 %v873_v1  ;;  %v1219_v26 = vand.u32 4294901760, %v4632_v27  ;;  %1179 = vmatpush.msra.mxu2 %v4634_v61 }
  0xd6   :  { %1125 = vmatpush.msra.mxu1 %v4405_v48  ;;  %v1225_v48 = vand.u32 4294901760, %v4642_v32  ;;  %v4655_v55 = vsub.f32 %v1172_v37, %v4644_v6  ;;  %v1279_v37 = vand.u32 4294901760, %v4756_v18 }
  0xd7   :  { %1066 = vmatpush.msra.mxu0 %v879_v15  ;;  %v1220_v59 = vsub.f32 %v4632_v27, %v1219_v26  ;;  %1181 = vmatpush.msra.mxu2 %v4644_v6 }
  0xd8   :  { %1127 = vmatpush.msra.mxu1 %v4416_v17  ;;  %v1170_v17 = vld [vmem:[#allocation5 + $0x1b0] sm:$0xff]  ;;  %v1226_v31 = vsub.f32 %v4642_v32, %v1225_v48  ;;  %v1231_v21 = vand.u32 4294901760, %v4655_v55 }
  0xd9   :  { %1070 = vmatpush.msra.mxu0 %v885_v11  ;;  %1183 = vmatpush.msra.mxu2 %v4657_v52  ;;  %v4672_v1 = vand.u32 4294901760, %v1170_v17 }
  0xda   :  { %1129 = vmatpush.msra.mxu1 %v4420_v60  ;;  %v1221_v60 = vand.u32 4294901760, %v1220_v59  ;;  %v1227_v62 = vand.u32 4294901760, %v1226_v31  ;;  %v1232_v15 = vsub.f32 %v4655_v55, %v1231_v21  ;;  %v4768_v59 = vand.u32 4294901760, %v1162_v3 }
  0xdb   :  { %1074 = vmatpush.msra.mxu0 %v891_v19  ;;  %v4684_v11 = vsub.f32 %v1170_v17, %v4672_v1  ;;  %1185 = vmatpush.msra.mxu2 %v4672_v1  ;;  %v1280_v31 = vsub.f32 %v4756_v18, %v1279_v37 }
  0xdc   :  { %1131 = vmatpush.msra.mxu1 %v4434_v49  ;;  %v4668_v49 = vsub.f32 %v1171_v39, %v4657_v52  ;;  %1222 = vmatpush.msra.mxu3 %v1221_v60  ;;  %v1233_v19 = vand.u32 4294901760, %v1232_v15  ;;  %v4766_v39 = vsub.f32 %v1163_v25, %v4758_v30  ;;  %v1161_v60 = vld [vmem:[#allocation5 + $0x120] sm:$0xff] }
  0xdd   :  { %1078 = vmatpush.msra.mxu0 %v897_v4  ;;  %v1243_v8 = vand.u32 4294901760, %v4684_v11  ;;  %1187 = vmatpush.msra.mxu2 %v4680_v47  ;;  %v4783_v15 = vand.u32 4294901760, %v1161_v60 }
  0xde   :  { %1133 = vmatpush.msra.mxu1 %v4457_v28  ;;  %v1237_v28 = vand.u32 4294901760, %v4668_v49  ;;  %1228 = vmatpush.msra.mxu3 %v1227_v62  ;;  %v4781_v62 = vsub.f32 %v1162_v3, %v4768_v59 }
  0xdf   :  { %1082 = vmatpush.msra.mxu0 %v903_v40 }
  0xe0   :  { %1135 = vmatpush.msra.mxu1 %v4470_v33  ;;  %v1168_v33 = vld [vmem:[#allocation5 + $0x190] sm:$0xff]  ;;  %v1238_v22 = vsub.f32 %v4668_v49, %v1237_v28  ;;  %1234 = vmatpush.msra.mxu3 %v1233_v19 }
  0xe1   :  { %1086 = vmatpush.msra.mxu0 %v909_v24  ;;  %v4695_v4 = vand.u32 4294901760, %v1168_v33  ;;  %v1160_v19 = vld [vmem:[#allocation5 + $0x110] sm:$0xff] }
  0xe2   :  { %1137 = vmatpush.msra.mxu1 %v4482_v54  ;;  %v4693_v54 = vsub.f32 %v1169_v9, %v4680_v47  ;;  %v1239_v40 = vand.u32 4294901760, %v1238_v22  ;;  %v1285_v9 = vand.u32 4294901760, %v4766_v39  ;;  %v1281_v22 = vand.u32 4294901760, %v1280_v31 }
  0xe3   :  { %1090 = vmatpush.msra.mxu0 %v915_v56  ;;  %v4704_v24 = vsub.f32 %v1168_v33, %v4695_v4  ;;  %v1166_v56 = vld [vmem:[#allocation5 + $0x170] sm:$0xff]  ;;  %1189 = vmatpush.msra.mxu2 %v4695_v4 }
  0xe4   :  { %1139 = vmatpush.msra.mxu1 %v4494_v29  ;;  %v1167_v29 = vld [vmem:[#allocation5 + $0x180] sm:$0xff]  ;;  %v1249_v36 = vand.u32 4294901760, %v4693_v54  ;;  %1240 = vmatpush.msra.mxu3 %v1239_v40  ;;  %v1291_v40 = vand.u32 4294901760, %v4781_v62 }
  0xe5   :  { %1094 = vmatpush.msra.mxu0 %v921_v23  ;;  %v4706_v13 = vand.u32 4294901760, %v1167_v29  ;;  %v1255_v23 = vand.u32 4294901760, %v4704_v24 }
  0xe6   :  { %1141 = vmatpush.msra.mxu1 %v4506_v51  ;;  %v1244_v51 = vsub.f32 %v4684_v11, %v1243_v8  ;;  %v1250_v20 = vsub.f32 %v4693_v54, %v1249_v36 }
  0xe7   :  { %1098 = vmatpush.msra.mxu0 %v927_v53  ;;  %v4720_v53 = vsub.f32 %v1167_v29, %v4706_v13  ;;  %1191 = vmatpush.msra.mxu2 %v4706_v13  ;;  %v1286_v29 = vsub.f32 %v4766_v39, %v1285_v9 }
  0xe8   :  { %1143 = vmatpush.msra.mxu1 %v4518_v38  ;;  %v4722_v38 = vand.u32 4294901760, %v1166_v56  ;;  %v1245_v63 = vand.u32 4294901760, %v1244_v51  ;;  %v1251_v35 = vand.u32 4294901760, %v1250_v20  ;;  %v4793_v51 = vsub.f32 %v1161_v60, %v4783_v15  ;;  %v1159_v20 = vld [vmem:[#allocation5 + $0x100] sm:$0xff] }
  0xe9   :  { %1102 = vmatpush.msra.mxu0 %v933_v14  ;;  %v1256_v14 = vsub.f32 %v4704_v24, %v1255_v23  ;;  %v1261_v2 = vand.u32 4294901760, %v4720_v53 }
  0xea   :  { %1145 = vmatpush.msra.mxu1 %v4530_v7  ;;  %v4733_v42 = vsub.f32 %v1166_v56, %v4722_v38  ;;  %1246 = vmatpush.msra.mxu3 %v1245_v63  ;;  %v4736_v7 = vand.u32 4294901760, %v1165_v43  ;;  %v4797_v56 = vand.u32 4294901760, %v1160_v19  ;;  %v1287_v63 = vand.u32 4294901760, %v1286_v29 }
  0xeb   :  { %1106 = vmatpush.msra.mxu0 %v939_v0  ;;  %v1257_v45 = vand.u32 4294901760, %v1256_v14  ;;  %v1262_v0 = vsub.f32 %v4720_v53, %v1261_v2  ;;  %1193 = vmatpush.msra.mxu2 %v4722_v38  ;;  %v4804_v14 = vand.u32 4294901760, %v1159_v20 }
  0xec   :  { %1147 = vmatpush.msra.mxu1 %v4542_v58  ;;  %v1267_v34 = vand.u32 4294901760, %v4733_v42  ;;  %1252 = vmatpush.msra.mxu3 %v1251_v35  ;;  %v4749_v58 = vsub.f32 %v1165_v43, %v4736_v7  ;;  %v1292_v43 = vsub.f32 %v4781_v62, %v1291_v40  ;;  %v1297_v35 = vand.u32 4294901760, %v4793_v51 }
  0xed   :  { %1110 = vmatpush.msra.mxu0 %v945_v57  ;;  %v1263_v44 = vand.u32 4294901760, %v1262_v0  ;;  %1195 = vmatpush.msra.mxu2 %v4736_v7  ;;  %v4809_v12 = vsub.f32 %v1160_v19, %v4797_v56  ;;  %v4816_v25 = vsub.f32 %v1159_v20, %v4804_v14 }
  0xee   :  { %1373 = vmatpush.msrb.mxu1 %v4626_v41  ;;  %v1268_v57 = vsub.f32 %v4733_v42, %v1267_v34  ;;  %1258 = vmatpush.msra.mxu3 %v1257_v45  ;;  %v1273_v50 = vand.u32 4294901760, %v4749_v58  ;;  %v1293_v45 = vand.u32 4294901760, %v1292_v43  ;;  %v1298_v0 = vsub.f32 %v4793_v51, %v1297_v35 }
  0xef   :  { %1320 = vmatpush.msrb.mxu0 %v4632_v27  ;;  %1197 = vmatpush.msra.mxu2 %v4744_v5  ;;  %v1309_v3 = vand.u32 4294901760, %v4816_v25 }
  0xf0   :  { %1375 = vmatpush.msrb.mxu1 %v4634_v61  ;;  %v1269_v16 = vand.u32 4294901760, %v1268_v57  ;;  %1264 = vmatpush.msra.mxu3 %v1263_v44  ;;  %v1274_v17 = vsub.f32 %v4749_v58, %v1273_v50  ;;  %v1303_v44 = vand.u32 4294901760, %v4809_v12  ;;  %v1299_v57 = vand.u32 4294901760, %v1298_v0  ;;  %v1528_v0 = vld [vmem:[#allocation5 + $0x280] sm:$0xff] }
  0xf1   :  { %1323 = vmatpush.msrb.mxu0 %v4642_v32  ;;  %1199 = vmatpush.msra.mxu2 %v4758_v30 }
  0xf2   :  { %1377 = vmatpush.msrb.mxu1 %v4644_v6  ;;  %1270 = vmatpush.msra.mxu3 %v1269_v16  ;;  %v1275_v33 = vand.u32 4294901760, %v1274_v17  ;;  %v1304_v16 = vsub.f32 %v4809_v12, %v1303_v44  ;;  %v1310_v17 = vsub.f32 %v4816_v25, %v1309_v3 }
  0xf3   :  { %1326 = vmatpush.msrb.mxu0 %v4655_v55  ;;  %1201 = vmatpush.msra.mxu2 %v4768_v59 }
  0xf4   :  { %1379 = vmatpush.msrb.mxu1 %v4657_v52  ;;  %1276 = vmatpush.msra.mxu3 %v1275_v33  ;;  %v1305_v60 = vand.u32 4294901760, %v1304_v16  ;;  %v1311_v31 = vand.u32 4294901760, %v1310_v17 }
  0xf5   :  { %1329 = vmatpush.msrb.mxu0 %v4668_v49  ;;  %1203 = vmatpush.msra.mxu2 %v4783_v15  ;;  %v4897_v49 = vld [vmem:[#allocation7] ss:$8 sm:$0x3] }
  0xf6   :  { %1381 = vmatpush.msrb.mxu1 %v4672_v1  ;;  %1282 = vmatpush.msra.mxu3 %v1281_v22 }
  0xf7   :  { %1332 = vmatpush.msrb.mxu0 %v4684_v11  ;;  %1205 = vmatpush.msra.mxu2 %v4797_v56 }
  0xf8   :  { %1383 = vmatpush.msrb.mxu1 %v4680_v47  ;;  %1288 = vmatpush.msra.mxu3 %v1287_v63 }
  0xf9   :  { %1335 = vmatpush.msrb.mxu0 %v4693_v54  ;;  %1207 = vmatpush.msra.mxu2 %v4804_v14 }
  0xfa   :  { %1385 = vmatpush.msrb.mxu1 %v4695_v4  ;;  %1294 = vmatpush.msra.mxu3 %v1293_v45 }
  0xfb   :  { %1338 = vmatpush.msrb.mxu0 %v4704_v24  ;;  %1414 = vmatpush.msrb.mxu2 %v1219_v26 }
  0xfc   :  { %1387 = vmatpush.msrb.mxu1 %v4706_v13  ;;  %1300 = vmatpush.msra.mxu3 %v1299_v57 }
  0xfd   :  { %1341 = vmatpush.msrb.mxu0 %v4720_v53  ;;  %1418 = vmatpush.msrb.mxu2 %v1225_v48  ;;  %v1532_v53 = vld [vmem:[#allocation5 + $0x2c0] sm:$0xff] }
  0xfe   :  { %1112 = vmatmul.f32.vlgmr.msra.gmra.mxu0 %v4315_v46  ;;  %1389 = vmatpush.msrb.mxu1 %v4722_v38 }
  0xff   :  { %1344 = vmatpush.msrb.mxu0 %v4733_v42  ;;  %1306 = vmatpush.msra.mxu3 %v1305_v60 }
 0x100   :  { %1422 = vmatpush.msrb.mxu2 %v1231_v21  ;;  %1149 = vmatmul.f32.vlgmr.msra.gmra.mxu1 %v4315_v46 }
 0x101   :  { %1347 = vmatpush.msrb.mxu0 %v4749_v58  ;;  %1312 = vmatpush.msra.mxu3 %v1311_v31 }
 0x102   :  { %1391 = vmatpush.msrb.mxu1 %v4736_v7  ;;  %1426 = vmatpush.msrb.mxu2 %v1237_v28  ;;  %v231_v46 = vpop.f32.mrf.mxu1 }
 0x103   :  { %1350 = vmatpush.msrb.mxu0 %v4756_v18  ;;  %1481 = vmatpush.msrb.mxu3 %v4626_v41 }
 0x104   :  { %1393 = vmatpush.msrb.mxu1 %v4744_v5  ;;  %1430 = vmatpush.msrb.mxu2 %v1243_v8  ;;  %v1534_v8 = vld [vmem:[#allocation5 + $0x2e0] sm:$0xff] }
 0x105   :  { %1353 = vmatpush.msrb.mxu0 %v4766_v39  ;;  %1483 = vmatpush.msrb.mxu3 %v4634_v61 }
 0x106   :  { %1395 = vmatpush.msrb.mxu1 %v4758_v30  ;;  %1434 = vmatpush.msrb.mxu2 %v1249_v36  ;;  %v1533_v36 = vld [vmem:[#allocation5 + $0x2d0] sm:$0xff] }
 0x107   :  { %1356 = vmatpush.msrb.mxu0 %v4781_v62  ;;  %1485 = vmatpush.msrb.mxu3 %v4644_v6 }
 0x108   :  { %1397 = vmatpush.msrb.mxu1 %v4768_v59  ;;  %1438 = vmatpush.msrb.mxu2 %v1255_v23  ;;  %v4907_v23 = vand.u32 4294901760, %v1533_v36 }
 0x109   :  { %1359 = vmatpush.msrb.mxu0 %v4793_v51  ;;  %1487 = vmatpush.msrb.mxu3 %v4657_v52 }
 0x10a   :  { %1399 = vmatpush.msrb.mxu1 %v4783_v15  ;;  %1442 = vmatpush.msrb.mxu2 %v1261_v2  ;;  %v430_v52 = vpop.f32.mrf.mxu1  ;;  %v1530_v2 = vld [vmem:[#allocation5 + $0x2a0] sm:$0xff] }
 0x10b   :  { %1362 = vmatpush.msrb.mxu0 %v4809_v12  ;;  %v130_v41 = vpop.f32.mrf.mxu0  ;;  %1489 = vmatpush.msrb.mxu3 %v4672_v1  ;;  %v285_v61 = vpop.f32.mrf.mxu2  ;;  %v467_v1 = vperm.slane %v4897_v49, 0  ;;  %v4913_v58 = vand.u32 4294901760, %v1530_v2 }
 0x10c   :  { %v232_v27 = vadd.f32 %v231_v46, %v130_v41  ;;  %1401 = vmatpush.msrb.mxu1 %v4797_v56  ;;  %1446 = vmatpush.msrb.mxu2 %v1267_v34  ;;  %v4909_v34 = vand.u32 4294901760, %v1532_v53  ;;  %v4964_v46 = vand.u32 4294901760, %v1528_v0 }
 0x10d   :  { %1365 = vmatpush.msrb.mxu0 %v4816_v25  ;;  %1491 = vmatpush.msrb.mxu3 %v4680_v47  ;;  %v324_v32 = vpop.f32.mrf.mxu3  ;;  %v4932_v62 = vsub.f32 %v1530_v2, %v4913_v58 }
 0x10e   :  { %v286_v26 = vadd.f32 %v285_v61, %v232_v27  ;;  %1403 = vmatpush.msrb.mxu1 %v4804_v14  ;;  %1450 = vmatpush.msrb.mxu2 %v1273_v50 }
 0x10f   :  { %1493 = vmatpush.msrb.mxu3 %v4695_v4  ;;  %v1535_v4 = vld [vmem:[#allocation5 + $0x2f0] sm:$0xff]  ;;  %v1610_v12 = vand.u32 4294901760, %v4932_v62 }
 0x110   :  { %v325_v6 = vadd.f32 %v324_v32, %v286_v26  ;;  %1454 = vmatpush.msrb.mxu2 %v1279_v37  ;;  %v4903_v24 = vand.u32 4294901760, %v1535_v4  ;;  %v4922_v37 = vsub.f32 %v1533_v36, %v4907_v23  ;;  %v4971_v26 = vsub.f32 %v1528_v0, %v4964_v46  ;;  %v1527_v32 = vld [vmem:[#allocation5 + $0x270] sm:$0xff] }
 0x111   :  { %1495 = vmatpush.msrb.mxu3 %v4706_v13  ;;  %v4905_v13 = vand.u32 4294901760, %v1534_v8  ;;  %v1611_v61 = vsub.f32 %v4932_v62, %v1610_v12 }
 0x112   :  { %1458 = vmatpush.msrb.mxu2 %v1285_v9  ;;  %1538 = vmatpush.msra.mxu0 %v4903_v24  ;;  %v1592_v29 = vand.u32 4294901760, %v4922_v37 }
 0x113   :  { %v393_v48 = vpop.f32.mrf.mxu0  ;;  %1497 = vmatpush.msrb.mxu3 %v4722_v38  ;;  %v1531_v38 = vld [vmem:[#allocation5 + $0x2b0] sm:$0xff]  ;;  %v4919_v50 = vsub.f32 %v1534_v8, %v4905_v13 }
 0x114   :  { %v394_v55 = vadd.f32 %v393_v48, %v325_v6  ;;  %1462 = vmatpush.msrb.mxu2 %v1291_v40  ;;  %1540 = vmatpush.msra.mxu0 %v4905_v13  ;;  %v4974_v48 = vand.u32 4294901760, %v1527_v32 }
 0x115   :  { %1499 = vmatpush.msrb.mxu3 %v4736_v7  ;;  %v1586_v22 = vand.u32 4294901760, %v4919_v50 }
 0x116   :  { %v4884_v21 = vadd.f32 %v430_v52, %v394_v55  ;;  %1466 = vmatpush.msrb.mxu2 %v1297_v35  ;;  %1542 = vmatpush.msra.mxu0 %v4907_v23 }
 0x117   :  { %1501 = vmatpush.msrb.mxu3 %v4744_v5  ;;  %v4911_v5 = vand.u32 4294901760, %v1531_v38  ;;  %v1587_v35 = vsub.f32 %v4919_v50, %v1586_v22 }
 0x118   :  { %6445 = vst [vmem:[#allocation12_spill] sm:$0xff] %v4884_v21  ;;  %1470 = vmatpush.msrb.mxu2 %v1303_v44  ;;  %1544 = vmatpush.msra.mxu0 %v4909_v34 }
 0x119   :  { %1503 = vmatpush.msrb.mxu3 %v4758_v30  ;;  %v4916_v30 = vsub.f32 %v1535_v4, %v4903_v24  ;;  %v4929_v9 = vsub.f32 %v1531_v38, %v4911_v5  ;;  %v1588_v57 = vand.u32 4294901760, %v1587_v35  ;;  %v1612_v4 = vand.u32 4294901760, %v1611_v61  ;;  %v1520_v61 = vld [vmem:[#allocation5 + $0x200] sm:$0xff] }
 0x11a   :  { %1474 = vmatpush.msrb.mxu2 %v1309_v3  ;;  %1546 = vmatpush.msra.mxu0 %v4911_v5 }
 0x11b   :  { %1505 = vmatpush.msrb.mxu3 %v4768_v59  ;;  %v4926_v59 = vsub.f32 %v1532_v53, %v4909_v34  ;;  %v1580_v19 = vand.u32 4294901760, %v4916_v30 }
 0x11c   :  { %1548 = vmatpush.msra.mxu0 %v4913_v58 }
 0x11d   :  { %1507 = vmatpush.msrb.mxu3 %v4783_v15  ;;  %v1529_v15 = vld [vmem:[#allocation5 + $0x290] sm:$0xff]  ;;  %v1598_v51 = vand.u32 4294901760, %v4926_v59  ;;  %v1581_v43 = vsub.f32 %v4916_v30, %v1580_v19 }
 0x11e   :  { %v4940_v20 = vand.u32 4294901760, %v1529_v15 }
 0x11f   :  { %1509 = vmatpush.msrb.mxu3 %v4797_v56  ;;  %v1604_v56 = vand.u32 4294901760, %v4929_v9  ;;  %v1582_v44 = vand.u32 4294901760, %v1581_v43  ;;  %v1599_v3 = vsub.f32 %v4926_v59, %v1598_v51  ;;  %v1525_v43 = vld [vmem:[#allocation5 + $0x250] sm:$0xff] }
 0x120   :  { %v4954_v45 = vsub.f32 %v1529_v15, %v4940_v20  ;;  %1550 = vmatpush.msra.mxu0 %v4940_v20  ;;  %v5023_v35 = vand.u32 4294901760, %v1525_v43 }
 0x121   :  { %v509_v28 = vpop.f32.mrf.mxu2  ;;  %1511 = vmatpush.msrb.mxu3 %v4804_v14  ;;  %v1593_v14 = vsub.f32 %v4922_v37, %v1592_v29  ;;  %v1605_v17 = vsub.f32 %v4929_v9, %v1604_v56  ;;  %1583 = vmatpush.msra.mxu1 %v1582_v44  ;;  %v1600_v27 = vand.u32 4294901760, %v1599_v3  ;;  %v1523_v3 = vld [vmem:[#allocation5 + $0x230] sm:$0xff] }
 0x122   :  { %v510_v47 = vadd.f32 %v509_v28, %v467_v1  ;;  %v1616_v31 = vand.u32 4294901760, %v4954_v45  ;;  %v1622_v1 = vand.u32 4294901760, %v4971_v26  ;;  %v1526_v28 = vld [vmem:[#allocation5 + $0x260] sm:$0xff]  ;;  %1552 = vmatpush.msra.mxu0 %v4964_v46 }
 0x123   :  { %v1594_v16 = vand.u32 4294901760, %v1593_v14  ;;  %1589 = vmatpush.msra.mxu1 %v1588_v57  ;;  %v1606_v55 = vand.u32 4294901760, %v1605_v17  ;;  %v5026_v14 = vsub.f32 %v1525_v43, %v5023_v35  ;;  %v1524_v57 = vld [vmem:[#allocation5 + $0x240] sm:$0xff] }
 0x124   :  { %v1617_v52 = vsub.f32 %v4954_v45, %v1616_v31  ;;  %v1623_v36 = vsub.f32 %v4971_v26, %v1622_v1  ;;  %1554 = vmatpush.msra.mxu0 %v4974_v48  ;;  %v5035_v17 = vand.u32 4294901760, %v1524_v57 }
 0x125   :  { %1595 = vmatpush.msra.mxu1 %v1594_v16  ;;  %v1640_v0 = vand.u32 4294901760, %v5026_v14  ;;  %v1522_v16 = vld [vmem:[#allocation5 + $0x220] sm:$0xff] }
 0x126   :  { %v610_v11 = vpop.f32.mrf.mxu3  ;;  %v1618_v2 = vand.u32 4294901760, %v1617_v52  ;;  %v1624_v15 = vand.u32 4294901760, %v1623_v36 }
 0x127   :  { %v611_v54 = vadd.f32 %v610_v11, %v510_v47  ;;  %v4982_v11 = vsub.f32 %v1527_v32, %v4974_v48  ;;  %1601 = vmatpush.msra.mxu1 %v1600_v27  ;;  %v1521_v27 = vld [vmem:[#allocation5 + $0x210] sm:$0xff] }
 0x128   :  { %v5041_v32 = vand.u32 4294901760, %v1521_v27 }
 0x129   :  { %v1628_v53 = vand.u32 4294901760, %v4982_v11  ;;  %1607 = vmatpush.msra.mxu1 %v1606_v55  ;;  %v1645_v55 = vsub.f32 %v1524_v57, %v5035_v17 }
 0x12a   :  { %v703_v7 = vpop.f32.mrf.mxu1 }
 0x12b   :  { %v664_v42 = vpop.f32.mrf.mxu0  ;;  %1613 = vmatpush.msra.mxu1 %v1612_v4 }
 0x12c   :  { %v665_v18 = vadd.f32 %v664_v42, %v611_v54  ;;  %v772_v39 = vpop.f32.mrf.mxu2  ;;  %v4984_v54 = vand.u32 4294901760, %v1526_v28 }
 0x12d   :  { %1619 = vmatpush.msra.mxu1 %v1618_v2 }
 0x12e   :  { %v704_v33 = vadd.f32 %v703_v7, %v665_v18  ;;  %v809_v40 = vpop.f32.mrf.mxu3  ;;  %v4992_v38 = vsub.f32 %v1526_v28, %v4984_v54  ;;  %v1629_v7 = vsub.f32 %v4982_v11, %v1628_v53  ;;  %1556 = vmatpush.msra.mxu0 %v4984_v54 }
 0x12f   :  { %1625 = vmatpush.msra.mxu1 %v1624_v15 }
 0x130   :  { %v773_v63 = vadd.f32 %v772_v39, %v704_v33  ;;  %v1634_v18 = vand.u32 4294901760, %v4992_v38  ;;  %1558 = vmatpush.msra.mxu0 %v5023_v35 }
 0x132   :  { %v810_v25 = vadd.f32 %v809_v40, %v773_v63  ;;  %v1635_v33 = vsub.f32 %v4992_v38, %v1634_v18  ;;  %v1630_v40 = vand.u32 4294901760, %v1629_v7  ;;  %1560 = vmatpush.msra.mxu0 %v5035_v17 }
 0x134   :  { %vm1153_vm1 = vcmp.gt.f32.partialorder %v810_v25, 0.0  ;;  %v1155_v60 = vmul.f32 0.2, %v810_v25  ;;  %v1636_v63 = vand.u32 4294901760, %v1635_v33  ;;  %1631 = vmatpush.msra.mxu1 %v1630_v40 }
 0x136   :  { %v1157_v41 = vsel %vm1153_vm1, %v810_v25, %v1155_v60  ;;  %1637 = vmatpush.msra.mxu1 %v1636_v63  ;;  %v1641_v25 = vsub.f32 %v5026_v14, %v1640_v0  ;;  %v5037_v60 = vand.u32 4294901760, %v1523_v3 }
 0x137   :  { %v1208_v6 = vand.u32 4294901760, %v1157_v41 }
 0x138   :  { %v1642_v44 = vand.u32 4294901760, %v1641_v25  ;;  %v1651_v52 = vsub.f32 %v1523_v3, %v5037_v60  ;;  %1562 = vmatpush.msra.mxu0 %v5037_v60 }
 0x139   :  { %v1209_v47 = vsub.f32 %v1157_v41, %v1208_v6  ;;  %1314 = vmatmul.f32.vlgmr.msra.gmra.mxu3 %v1208_v6  ;;  %v5039_v41 = vand.u32 4294901760, %v1522_v16 }
 0x13a   :  { %1734 = vmatpush.msra.mxu3 %v4903_v24  ;;  %1643 = vmatpush.msra.mxu1 %v1642_v44  ;;  %v1652_v36 = vand.u32 4294901760, %v1651_v52 }
 0x13b   :  { %1368 = vmatmul.f32.vlgmr.msrb.gmra.mxu0 %v1209_v47  ;;  %v1210_v8 = vand.u32 4294901760, %v1209_v47  ;;  %v1657_v28 = vsub.f32 %v1522_v16, %v5039_v41 }
 0x13c   :  { %1736 = vmatpush.msra.mxu3 %v4905_v13  ;;  %1564 = vmatpush.msra.mxu0 %v5039_v41 }
 0x13d   :  { %1407 = vmatmul.f32.vlgmr.msrb.gmra.mxu1 %v1210_v8  ;;  %v1211_v42 = vsub.f32 %v1209_v47, %v1210_v8  ;;  %v1663_v47 = vsub.f32 %v1521_v27, %v5041_v32  ;;  %v1646_v8 = vand.u32 4294901760, %v1645_v55  ;;  %v1658_v2 = vand.u32 4294901760, %v1657_v28 }
 0x13e   :  { %1738 = vmatpush.msra.mxu3 %v4907_v23  ;;  %1566 = vmatpush.msra.mxu0 %v5041_v32 }
 0x13f   :  { %v1212_v39 = vand.u32 4294901760, %v1211_v42  ;;  %v1664_v42 = vand.u32 4294901760, %v1663_v47  ;;  %v1647_v7 = vsub.f32 %v1645_v55, %v1646_v8  ;;  %v1659_v15 = vsub.f32 %v1657_v28, %v1658_v2 }
 0x140   :  { %1740 = vmatpush.msra.mxu3 %v4909_v34 }
 0x141   :  { %1213 = vmatmul.f32.vlgmr.msra.gmra.mxu2 %v1212_v39  ;;  %1513 = vmatmul.f32.vlgmr.msrb.gmra.mxu3 %v1208_v6  ;;  %v1653_v39 = vsub.f32 %v1651_v52, %v1652_v36  ;;  %v1648_v40 = vand.u32 4294901760, %v1647_v7  ;;  %v1665_v43 = vsub.f32 %v1663_v47, %v1664_v42  ;;  %v1660_v25 = vand.u32 4294901760, %v1659_v15  ;;  %v1886_v7 = vld [vmem:[#allocation5 + $0x350] sm:$0xff] }
 0x142   :  { %1681 = vmatpush.msra.mxu2 %v4916_v30  ;;  %1742 = vmatpush.msra.mxu3 %v4911_v5 }
 0x143   :  { %v1654_v63 = vand.u32 4294901760, %v1653_v39  ;;  %1649 = vmatpush.msra.mxu1 %v1648_v40  ;;  %v1666_v57 = vand.u32 4294901760, %v1665_v43  ;;  %v1885_v43 = vld [vmem:[#allocation5 + $0x340] sm:$0xff] }
 0x144   :  { %1684 = vmatpush.msra.mxu2 %v4919_v50  ;;  %1744 = vmatpush.msra.mxu3 %v4913_v58 }
 0x145   :  { %1655 = vmatpush.msra.mxu1 %v1654_v63 }
 0x146   :  { %1687 = vmatpush.msra.mxu2 %v4922_v37  ;;  %1746 = vmatpush.msra.mxu3 %v4940_v20 }
 0x147   :  { %1661 = vmatpush.msra.mxu1 %v1660_v25 }
 0x148   :  { %1690 = vmatpush.msra.mxu2 %v4926_v59  ;;  %1748 = vmatpush.msra.mxu3 %v4964_v46  ;;  %v1893_v59 = vld [vmem:[#allocation5 + $0x3c0] sm:$0xff] }
 0x149   :  { %1476 = vmatmul.f32.vlgmr.msrb.gmra.mxu2 %v1208_v6  ;;  %v5043_v6 = vand.u32 4294901760, %v1520_v61  ;;  %1667 = vmatpush.msra.mxu1 %v1666_v57  ;;  %v5203_v57 = vand.u32 4294901760, %v1885_v43 }
 0x14a   :  { %1693 = vmatpush.msra.mxu2 %v4929_v9  ;;  %1750 = vmatpush.msra.mxu3 %v4974_v48 }
 0x14b   :  { %v5052_v4 = vsub.f32 %v1520_v61, %v5043_v6  ;;  %1568 = vmatpush.msra.mxu0 %v5043_v6  ;;  %v1888_v61 = vld [vmem:[#allocation5 + $0x370] sm:$0xff] }
 0x14c   :  { %1696 = vmatpush.msra.mxu2 %v4932_v62  ;;  %1752 = vmatpush.msra.mxu3 %v4984_v54 }
 0x14d   :  { %v1670_v33 = vand.u32 4294901760, %v5052_v4  ;;  %1775 = vmatpush.msrb.mxu0 %v1580_v19  ;;  %v5122_v19 = vand.u32 4294901760, %v1893_v59 }
 0x14e   :  { %1699 = vmatpush.msra.mxu2 %v4954_v45  ;;  %1754 = vmatpush.msra.mxu3 %v5023_v35 }
 0x14f   :  { %v1671_v44 = vsub.f32 %v5052_v4, %v1670_v33  ;;  %1779 = vmatpush.msrb.mxu0 %v1586_v22  ;;  %v5136_v45 = vsub.f32 %v1893_v59, %v5122_v19 }
 0x150   :  { %1702 = vmatpush.msra.mxu2 %v4971_v26  ;;  %1756 = vmatpush.msra.mxu3 %v5035_v17 }
 0x151   :  { %v1672_v3 = vand.u32 4294901760, %v1671_v44  ;;  %1783 = vmatpush.msrb.mxu0 %v1592_v29  ;;  %v1892_v29 = vld [vmem:[#allocation5 + $0x3b0] sm:$0xff] }
 0x152   :  { %1705 = vmatpush.msra.mxu2 %v4982_v11  ;;  %1758 = vmatpush.msra.mxu3 %v5037_v60  ;;  %v1959_v11 = vand.u32 4294901760, %v5136_v45 }
 0x153   :  { %1673 = vmatpush.msra.mxu1 %v1672_v3  ;;  %1787 = vmatpush.msrb.mxu0 %v1598_v51 }
 0x154   :  { %1708 = vmatpush.msra.mxu2 %v4992_v38  ;;  %1760 = vmatpush.msra.mxu3 %v5039_v41 }
 0x155   :  { %1842 = vmatpush.msrb.mxu1 %v4903_v24  ;;  %1791 = vmatpush.msrb.mxu0 %v1604_v56  ;;  %v1896_v24 = vld [vmem:[#allocation5 + $0x3f0] sm:$0xff] }
 0x156   :  { %1711 = vmatpush.msra.mxu2 %v5026_v14  ;;  %1762 = vmatpush.msra.mxu3 %v5041_v32  ;;  %v1960_v14 = vsub.f32 %v5136_v45, %v1959_v11 }
 0x157   :  { %1844 = vmatpush.msrb.mxu1 %v4905_v13  ;;  %1795 = vmatpush.msrb.mxu0 %v1610_v12  ;;  %v5099_v13 = vand.u32 4294901760, %v1896_v24  ;;  %v5133_v12 = vand.u32 4294901760, %v1892_v29 }
 0x158   :  { %1714 = vmatpush.msra.mxu2 %v1645_v55  ;;  %1764 = vmatpush.msra.mxu3 %v5043_v6  ;;  %v1961_v27 = vand.u32 4294901760, %v1960_v14 }
 0x159   :  { %1846 = vmatpush.msrb.mxu1 %v4907_v23  ;;  %1799 = vmatpush.msrb.mxu0 %v1616_v31  ;;  %v1895_v23 = vld [vmem:[#allocation5 + $0x3e0] sm:$0xff] }
 0x15a   :  { %1717 = vmatpush.msra.mxu2 %v1651_v52  ;;  %v1891_v31 = vld [vmem:[#allocation5 + $0x3a0] sm:$0xff]  ;;  %v5173_v52 = vand.u32 4294901760, %v1888_v61 }
 0x15b   :  { %1848 = vmatpush.msrb.mxu1 %v4909_v34  ;;  %1803 = vmatpush.msrb.mxu0 %v1622_v1  ;;  %v5104_v34 = vsub.f32 %v1896_v24, %v5099_v13  ;;  %v5145_v1 = vsub.f32 %v1892_v29, %v5133_v12 }
 0x15c   :  { %1720 = vmatpush.msra.mxu2 %v1657_v28 }
 0x15d   :  { %1850 = vmatpush.msrb.mxu1 %v4911_v5  ;;  %1807 = vmatpush.msrb.mxu0 %v1628_v53  ;;  %v5106_v5 = vand.u32 4294901760, %v1895_v23  ;;  %v1941_v30 = vand.u32 4294901760, %v5104_v34  ;;  %v1965_v38 = vand.u32 4294901760, %v5145_v1 }
 0x15e   :  { %1723 = vmatpush.msra.mxu2 %v1663_v47  ;;  %v1887_v47 = vld [vmem:[#allocation5 + $0x360] sm:$0xff] }
 0x15f   :  { %1852 = vmatpush.msrb.mxu1 %v4913_v58  ;;  %1811 = vmatpush.msrb.mxu0 %v1634_v18  ;;  %v1894_v58 = vld [vmem:[#allocation5 + $0x3d0] sm:$0xff]  ;;  %v5114_v37 = vsub.f32 %v1895_v23, %v5106_v5  ;;  %v1942_v9 = vsub.f32 %v5104_v34, %v1941_v30  ;;  %v1966_v16 = vsub.f32 %v5145_v1, %v1965_v38 }
 0x160   :  { %1726 = vmatpush.msra.mxu2 %v5052_v4  ;;  %v5111_v50 = vand.u32 4294901760, %v1894_v58  ;;  %v1884_v23 = vld [vmem:[#allocation5 + $0x330] sm:$0xff] }
 0x161   :  { %1854 = vmatpush.msrb.mxu1 %v4940_v20  ;;  %1815 = vmatpush.msrb.mxu0 %v1640_v0  ;;  %v1947_v62 = vand.u32 4294901760, %v5114_v37  ;;  %v1943_v51 = vand.u32 4294901760, %v1942_v9  ;;  %v1889_v0 = vld [vmem:[#allocation5 + $0x380] sm:$0xff]  ;;  %v5213_v29 = vand.u32 4294901760, %v1884_v23 }
 0x162   :  { %1899 = vmatpush.msrb.mxu2 %v5099_v13  ;;  %v5125_v22 = vsub.f32 %v1894_v58, %v5111_v50 }
 0x163   :  { %1856 = vmatpush.msrb.mxu1 %v4964_v46  ;;  %1819 = vmatpush.msrb.mxu0 %v1646_v8  ;;  %v1948_v56 = vsub.f32 %v5114_v37, %v1947_v62 }
 0x164   :  { %1901 = vmatpush.msrb.mxu2 %v5106_v5  ;;  %v1953_v20 = vand.u32 4294901760, %v5125_v22  ;;  %1944 = vmatpush.msrb.mxu3 %v1943_v51  ;;  %v5216_v51 = vsub.f32 %v1885_v43, %v5203_v57 }
 0x165   :  { %1858 = vmatpush.msrb.mxu1 %v4974_v48  ;;  %1823 = vmatpush.msrb.mxu0 %v1652_v36  ;;  %v1949_v46 = vand.u32 4294901760, %v1948_v56  ;;  %v5142_v48 = vand.u32 4294901760, %v1891_v31  ;;  %v5182_v36 = vand.u32 4294901760, %v1887_v47  ;;  %v1883_v56 = vld [vmem:[#allocation5 + $0x320] sm:$0xff] }
 0x166   :  { %1903 = vmatpush.msrb.mxu2 %v5111_v50  ;;  %v1954_v26 = vsub.f32 %v5125_v22, %v1953_v20  ;;  %v6380_v14 = vand.u32 4294901760, %v5216_v51 }
 0x167   :  { %1860 = vmatpush.msrb.mxu1 %v4984_v54  ;;  %1827 = vmatpush.msrb.mxu0 %v1658_v2  ;;  %v1890_v54 = vld [vmem:[#allocation5 + $0x390] sm:$0xff]  ;;  %v5185_v2 = vsub.f32 %v1888_v61, %v5173_v52  ;;  %v5193_v40 = vsub.f32 %v1887_v47, %v5182_v36 }
 0x168   :  { %1905 = vmatpush.msrb.mxu2 %v5122_v19  ;;  %1950 = vmatpush.msrb.mxu3 %v1949_v46  ;;  %v1955_v53 = vand.u32 4294901760, %v1954_v26  ;;  %v5150_v18 = vand.u32 4294901760, %v1890_v54  ;;  %v5222_v26 = vand.u32 4294901760, %v1883_v56 }
 0x169   :  { %1862 = vmatpush.msrb.mxu1 %v5023_v35  ;;  %1831 = vmatpush.msrb.mxu0 %v1664_v42  ;;  %v5153_v35 = vsub.f32 %v1891_v31, %v5142_v48  ;;  %v1989_v15 = vand.u32 4294901760, %v5185_v2  ;;  %v6382_v44 = vand.u32 4294901760, %v5193_v40 }
 0x16a   :  { %1907 = vmatpush.msrb.mxu2 %v5133_v12  ;;  %1956 = vmatpush.msrb.mxu3 %v1955_v53  ;;  %v468_v53 = vperm.slane %v4897_v49, 1  ;;  %v2008_v49 = vsub.f32 %v5216_v51, %v6380_v14 }
 0x16b   :  { %1864 = vmatpush.msrb.mxu1 %v5035_v17  ;;  %1835 = vmatpush.msrb.mxu0 %v1670_v33  ;;  %v1971_v17 = vand.u32 4294901760, %v5153_v35  ;;  %v5190_v33 = vand.u32 4294901760, %v1886_v7  ;;  %v1990_v25 = vsub.f32 %v5185_v2, %v1989_v15  ;;  %v1996_v59 = vsub.f32 %v5193_v40, %v6382_v44 }
 0x16c   :  { %1909 = vmatpush.msrb.mxu2 %v5142_v48  ;;  %1962 = vmatpush.msrb.mxu3 %v1961_v27 }
 0x16d   :  { %1866 = vmatpush.msrb.mxu1 %v5037_v60  ;;  %v5163_v60 = vand.u32 4294901760, %v1889_v0  ;;  %v5206_v3 = vsub.f32 %v1886_v7, %v5190_v33  ;;  %v1991_v58 = vand.u32 4294901760, %v1990_v25  ;;  %v1997_v31 = vand.u32 4294901760, %v1996_v59  ;;  %v951_v25 = vpop.f32.mrf.mxu1 }
 0x16e   :  { %1911 = vmatpush.msrb.mxu2 %v5150_v18 }
 0x16f   :  { %1868 = vmatpush.msrb.mxu1 %v5039_v41  ;;  %v5166_v41 = vsub.f32 %v1890_v54, %v5150_v18  ;;  %v5176_v28 = vsub.f32 %v1889_v0, %v5163_v60  ;;  %v6381_v9 = vand.u32 4294901760, %v5206_v3  ;;  %v5225_v54 = vsub.f32 %v1884_v23, %v5213_v29  ;;  %v1882_v0 = vld [vmem:[#allocation5 + $0x310] sm:$0xff] }
 0x170   :  { %1913 = vmatpush.msrb.mxu2 %v5163_v60 }
 0x171   :  { %1870 = vmatpush.msrb.mxu1 %v5041_v32  ;;  %v1967_v32 = vand.u32 4294901760, %v1966_v16  ;;  %v1977_v55 = vand.u32 4294901760, %v5166_v41  ;;  %v1983_v42 = vand.u32 4294901760, %v5176_v28  ;;  %v2002_v46 = vsub.f32 %v5206_v3, %v6381_v9  ;;  %v850_v16 = vpop.f32.mrf.mxu0 }
 0x172   :  { %1915 = vmatpush.msrb.mxu2 %v5173_v52  ;;  %v6379_v61 = vand.u32 4294901760, %v5225_v54  ;;  %v851_v7 = vadd.f32 %v850_v16, %v468_v53 }
 0x173   :  { %1872 = vmatpush.msrb.mxu1 %v5043_v6  ;;  %v1972_v6 = vsub.f32 %v5153_v35, %v1971_v17  ;;  %v1978_v8 = vsub.f32 %v5166_v41, %v1977_v55  ;;  %1968 = vmatpush.msrb.mxu3 %v1967_v32  ;;  %v1984_v63 = vsub.f32 %v5176_v28, %v1983_v42  ;;  %v2003_v27 = vand.u32 4294901760, %v2002_v46 }
 0x174   :  { %1917 = vmatpush.msrb.mxu2 %v5182_v36  ;;  %v5231_v32 = vand.u32 4294901760, %v1882_v0  ;;  %v2014_v47 = vsub.f32 %v5225_v54, %v6379_v61 }
 0x175   :  { %v1973_v4 = vand.u32 4294901760, %v1972_v6  ;;  %v1979_v39 = vand.u32 4294901760, %v1978_v8  ;;  %v1985_v24 = vand.u32 4294901760, %v1984_v63  ;;  %v5234_v6 = vsub.f32 %v1883_v56, %v5222_v26  ;;  %v1881_v8 = vld [vmem:[#allocation5 + $0x300] sm:$0xff] }
 0x176   :  { %1919 = vmatpush.msrb.mxu2 %v5190_v33  ;;  %v5244_v63 = vand.u32 4294901760, %v1881_v8  ;;  %v5247_v43 = vsub.f32 %v1882_v0, %v5231_v32  ;;  %v1005_v0 = vpop.f32.mrf.mxu2 }
 0x177   :  { %1974 = vmatpush.msrb.mxu3 %v1973_v4  ;;  %v6378_v4 = vand.u32 4294901760, %v5234_v6 }
 0x178   :  { %1921 = vmatpush.msrb.mxu2 %v5203_v57  ;;  %v5255_v59 = vsub.f32 %v1881_v8, %v5244_v63  ;;  %v1044_v8 = vpop.f32.mrf.mxu3 }
 0x179   :  { %1980 = vmatpush.msrb.mxu3 %v1979_v39  ;;  %v2009_v39 = vand.u32 4294901760, %v2008_v49  ;;  %v2020_v23 = vsub.f32 %v5234_v6, %v6378_v4 }
 0x17a   :  { %1923 = vmatpush.msrb.mxu2 %v5213_v29  ;;  %v6383_v53 = vand.u32 4294901760, %v5255_v59 }
 0x17b   :  { %1986 = vmatpush.msrb.mxu3 %v1985_v24  ;;  %v2015_v24 = vand.u32 4294901760, %v2014_v47  ;;  %v2021_v56 = vand.u32 4294901760, %v2020_v23  ;;  %v1175_v23 = vld [vmem:[#allocation7 + $0x1] ss:$0 sm:$0xff] }
 0x17c   :  { %1925 = vmatpush.msrb.mxu2 %v5222_v26 }
 0x17d   :  { %1992 = vmatpush.msrb.mxu3 %v1991_v58  ;;  %v6377_v58 = vand.u32 4294901760, %v5247_v43 }
 0x17e   :  { %1927 = vmatpush.msrb.mxu2 %v5231_v32 }
 0x17f   :  { %1998 = vmatpush.msrb.mxu3 %v1997_v31  ;;  %v952_v31 = vadd.f32 %v951_v25, %v851_v7  ;;  %v2026_v46 = vsub.f32 %v5247_v43, %v6377_v58 }
 0x180   :  { %1929 = vmatpush.msrb.mxu2 %v5244_v63 }
 0x181   :  { %2004 = vmatpush.msrb.mxu3 %v2003_v27  ;;  %v2027_v16 = vand.u32 4294901760, %v2026_v46  ;;  %v2032_v27 = vsub.f32 %v5255_v59, %v6383_v53  ;;  %v1006_v49 = vadd.f32 %v1005_v0, %v952_v31 }
 0x183   :  { %2010 = vmatpush.msrb.mxu3 %v2009_v39  ;;  %v2033_v47 = vand.u32 4294901760, %v2032_v27  ;;  %v1045_v7 = vadd.f32 %v1044_v8, %v1006_v49  ;;  %v1113_v39 = vpop.f32.mrf.mxu0 }
 0x185   :  { %2016 = vmatpush.msrb.mxu3 %v2015_v24  ;;  %v1114_v25 = vadd.f32 %v1113_v39, %v1045_v7  ;;  %v1150_v24 = vpop.f32.mrf.mxu1 }
 0x187   :  { %2022 = vmatpush.msrb.mxu3 %v2021_v56  ;;  %v1151_v58 = vadd.f32 %v1150_v24, %v1114_v25 }
 0x189   :  { %2028 = vmatpush.msrb.mxu3 %v2027_v16  ;;  %v1156_v46 = vmul.f32 0.2, %v1151_v58  ;;  %vm1154_vm2 = vcmp.gt.f32.partialorder %v1151_v58, 0.0 }
 0x18b   :  { %2034 = vmatpush.msrb.mxu3 %v2033_v47  ;;  %v1158_v0 = vsel %vm1154_vm2, %v1151_v58, %v1156_v46 }
 0x18c   :  { %v5264_v49 = vand.u32 4294901760, %v1158_v0 }
 0x18e   :  { %v5267_v39 = vsub.f32 %v1158_v0, %v5264_v49 }
 0x1b8   :  { %v1369_v9 = vpop.f32.mrf.mxu0 }
 0x1ba   :  { %v1408_v53 = vpop.f32.mrf.mxu1 }
 0x1bc   :  { %v1315_v4 = vpop.f32.mrf.mxu3 }
 0x1c4   :  { %v1214_v61 = vpop.f32.mrf.mxu2  ;;  %v1514_v47 = vpop.f32.mrf.mxu3 }
 0x1c5   :  { %v1215_v14 = vadd.f32 %v1214_v61, %v1175_v23  ;;  %v2269_v23 = vld [vmem:[#allocation5 + $0x580] sm:$0xff] }
 0x1c7   :  { %v1316_v56 = vadd.f32 %v1315_v4, %v1215_v14 }
 0x1c9   :  { %v1370_v44 = vadd.f32 %v1369_v9, %v1316_v56 }
 0x1cb   :  { %v1409_v31 = vadd.f32 %v1408_v53, %v1370_v44  ;;  %v1932_v44 = vand.u32 4294901760, %v5267_v39 }
 0x1cc   :  { %v1477_v16 = vpop.f32.mrf.mxu2 }
 0x1cd   :  { %v1478_v27 = vadd.f32 %v1477_v16, %v1409_v31  ;;  %v1933_v53 = vsub.f32 %v5267_v39, %v1932_v44 }
 0x1cf   :  { %v1515_v8 = vadd.f32 %v1514_v47, %v1478_v27 }
 0x1d1   :  { %vm1517_vm3 = vcmp.gt.f32.partialorder %v1515_v8, 0.0  ;;  %v1518_v7 = vmul.f32 0.2, %v1515_v8 }
 0x1d3   :  { %v1519_v61 = vsel %vm1517_vm3, %v1515_v8, %v1518_v7  ;;  %v5421_v7 = vand.u32 4294901760, %v2269_v23 }
 0x1d4   :  { %v1569_v14 = vand.u32 4294901760, %v1519_v61 }
 0x1d6   :  { %1675 = vmatmul.f32.vlgmr.msra.gmra.mxu1 %v1569_v14  ;;  %v1570_v4 = vsub.f32 %v1519_v61, %v1569_v14  ;;  %v2267_v61 = vld [vmem:[#allocation5 + $0x560] sm:$0xff] }
 0x1d7   :  { %2095 = vmatpush.msra.mxu1 %v5099_v13 }
 0x1d8   :  { %1729 = vmatmul.f32.vlgmr.msra.gmra.mxu2 %v1570_v4  ;;  %v1571_v9 = vand.u32 4294901760, %v1570_v4 }
 0x1d9   :  { %2097 = vmatpush.msra.mxu1 %v5106_v5  ;;  %2136 = vmatpush.msra.mxu2 %v1941_v30  ;;  %v1934_v30 = vand.u32 4294901760, %v1933_v53 }
 0x1da   :  { %1768 = vmatmul.f32.vlgmr.msra.gmra.mxu3 %v1571_v9  ;;  %v1572_v58 = vsub.f32 %v1570_v4, %v1571_v9  ;;  %v2266_v9 = vld [vmem:[#allocation5 + $0x550] sm:$0xff] }
 0x1db   :  { %2099 = vmatpush.msra.mxu1 %v5111_v50  ;;  %2140 = vmatpush.msra.mxu2 %v1947_v62  ;;  %v6451_v62 = vand.u32 4294901760, %v5247_v43 }
 0x1dc   :  { %2203 = vmatpush.msra.mxu3 %v5099_v13  ;;  %v1573_v25 = vand.u32 4294901760, %v1572_v58  ;;  %v6446_v13 = vand.u32 4294901760, %v5193_v40  ;;  %v2265_v58 = vld [vmem:[#allocation5 + $0x540] sm:$0xff] }
 0x1dd   :  { %2101 = vmatpush.msra.mxu1 %v5122_v19  ;;  %2144 = vmatpush.msra.mxu2 %v1953_v20 }
 0x1de   :  { %2205 = vmatpush.msra.mxu3 %v5106_v5  ;;  %1574 = vmatmul.f32.vlgmr.msra.gmra.mxu0 %v1573_v25  ;;  %v6448_v5 = vand.u32 4294901760, %v5216_v51  ;;  %v5431_v25 = vsub.f32 %v2269_v23, %v5421_v7 }
 0x1df   :  { %1874 = vmatmul.f32.vlgmr.msrb.gmra.mxu1 %v1569_v14  ;;  %2042 = vmatpush.msra.mxu0 %v5104_v34  ;;  %v6447_v34 = vand.u32 4294901760, %v5206_v3 }
 0x1e0   :  { %2103 = vmatpush.msra.mxu1 %v5133_v12  ;;  %2148 = vmatpush.msra.mxu2 %v1959_v11 }
 0x1e1   :  { %2207 = vmatpush.msra.mxu3 %v5111_v50  ;;  %1935 = vmatmul.f32.vlgmr.msrb.gmra.mxu2 %v1934_v30  ;;  %v6449_v50 = vand.u32 4294901760, %v5225_v54  ;;  %v2264_v30 = vld [vmem:[#allocation5 + $0x530] sm:$0xff] }
 0x1e2   :  { %2045 = vmatpush.msra.mxu0 %v5114_v37  ;;  %2105 = vmatpush.msra.mxu1 %v5142_v48  ;;  %v6450_v37 = vand.u32 4294901760, %v5234_v6 }
 0x1e3   :  { %2152 = vmatpush.msra.mxu2 %v1965_v38  ;;  %2209 = vmatpush.msra.mxu3 %v5122_v19  ;;  %v6452_v19 = vand.u32 4294901760, %v5255_v59 }
 0x1e4   :  { %2036 = vmatmul.f32.vlgmr.msrb.gmra.mxu3 %v5264_v49  ;;  %2048 = vmatpush.msra.mxu0 %v5125_v22  ;;  %v1536_v22 = vld [vmem:[#allocation7 + $0x2] ss:$0 sm:$0xff] }
 0x1e5   :  { %2107 = vmatpush.msra.mxu1 %v5150_v18  ;;  %2156 = vmatpush.msra.mxu2 %v1971_v17 }
 0x1e6   :  { %2211 = vmatpush.msra.mxu3 %v5133_v12  ;;  %2051 = vmatpush.msra.mxu0 %v5136_v45 }
 0x1e7   :  { %2109 = vmatpush.msra.mxu1 %v5163_v60  ;;  %2160 = vmatpush.msra.mxu2 %v1977_v55  ;;  %v2276_v55 = vld [vmem:[#allocation5 + $0x5f0] sm:$0xff] }
 0x1e8   :  { %2213 = vmatpush.msra.mxu3 %v5142_v48  ;;  %1837 = vmatmul.f32.vlgmr.msrb.gmra.mxu0 %v1569_v14 }
 0x1e9   :  { %2054 = vmatpush.msra.mxu0 %v5145_v1  ;;  %2111 = vmatpush.msra.mxu1 %v5173_v52 }
 0x1ea   :  { %2164 = vmatpush.msra.mxu2 %v1983_v42  ;;  %2215 = vmatpush.msra.mxu3 %v5150_v18  ;;  %v2273_v42 = vld [vmem:[#allocation5 + $0x5c0] sm:$0xff] }
 0x1eb   :  { %2057 = vmatpush.msra.mxu0 %v5153_v35  ;;  %2113 = vmatpush.msra.mxu1 %v5182_v36 }
 0x1ec   :  { %2168 = vmatpush.msra.mxu2 %v1989_v15  ;;  %2217 = vmatpush.msra.mxu3 %v5163_v60 }
 0x1ed   :  { %2060 = vmatpush.msra.mxu0 %v5166_v41  ;;  %2115 = vmatpush.msra.mxu1 %v5190_v33 }
 0x1ee   :  { %2172 = vmatpush.msra.mxu2 %v6446_v13  ;;  %2219 = vmatpush.msra.mxu3 %v5173_v52  ;;  %v2275_v52 = vld [vmem:[#allocation5 + $0x5e0] sm:$0xff] }
 0x1ef   :  { %2063 = vmatpush.msra.mxu0 %v5176_v28  ;;  %2117 = vmatpush.msra.mxu1 %v5203_v57  ;;  %v2274_v28 = vld [vmem:[#allocation5 + $0x5d0] sm:$0xff] }
 0x1f0   :  { %2176 = vmatpush.msra.mxu2 %v6447_v34  ;;  %2221 = vmatpush.msra.mxu3 %v5182_v36  ;;  %v5361_v36 = vand.u32 4294901760, %v2276_v55  ;;  %v5365_v15 = vand.u32 4294901760, %v2274_v28 }
 0x1f1   :  { %2066 = vmatpush.msra.mxu0 %v5185_v2  ;;  %2119 = vmatpush.msra.mxu1 %v5213_v29  ;;  %v5363_v2 = vand.u32 4294901760, %v2275_v52 }
 0x1f2   :  { %2180 = vmatpush.msra.mxu2 %v6448_v5  ;;  %2223 = vmatpush.msra.mxu3 %v5190_v33  ;;  %v5367_v33 = vand.u32 4294901760, %v2273_v42 }
 0x1f3   :  { %2069 = vmatpush.msra.mxu0 %v5193_v40  ;;  %2121 = vmatpush.msra.mxu1 %v5222_v26  ;;  %v2272_v40 = vld [vmem:[#allocation5 + $0x5b0] sm:$0xff] }
 0x1f4   :  { %2184 = vmatpush.msra.mxu2 %v6449_v50  ;;  %2225 = vmatpush.msra.mxu3 %v5203_v57  ;;  %v2271_v57 = vld [vmem:[#allocation5 + $0x5a0] sm:$0xff]  ;;  %v5437_v50 = vand.u32 4294901760, %v2267_v61 }
 0x1f5   :  { %2072 = vmatpush.msra.mxu0 %v5206_v3  ;;  %2123 = vmatpush.msra.mxu1 %v5231_v32  ;;  %v2270_v3 = vld [vmem:[#allocation5 + $0x590] sm:$0xff] }
 0x1f6   :  { %2188 = vmatpush.msra.mxu2 %v6450_v37  ;;  %2227 = vmatpush.msra.mxu3 %v5213_v29  ;;  %v5370_v29 = vsub.f32 %v2276_v55, %v5361_v36  ;;  %v5394_v24 = vand.u32 4294901760, %v2270_v3  ;;  %v1897_v37 = vld [vmem:[#allocation7 + $0x3] ss:$0 sm:$0xff] }
 0x1f7   :  { %2075 = vmatpush.msra.mxu0 %v5216_v51  ;;  %2125 = vmatpush.msra.mxu1 %v5244_v63  ;;  %v5373_v51 = vsub.f32 %v2275_v52, %v5363_v2 }
 0x1f8   :  { %2192 = vmatpush.msra.mxu2 %v6451_v62  ;;  %2229 = vmatpush.msra.mxu3 %v5222_v26  ;;  %v5377_v26 = vand.u32 4294901760, %v2272_v40  ;;  %v5412_v47 = vsub.f32 %v2270_v3, %v5394_v24 }
 0x1f9   :  { %2129 = vmatmul.f32.vlgmr.msra.gmra.mxu1 %v1932_v44  ;;  %2078 = vmatpush.msra.mxu0 %v5225_v54  ;;  %v5380_v54 = vsub.f32 %v2274_v28, %v5365_v15 }
 0x1fa   :  { %2196 = vmatpush.msra.mxu2 %v6452_v19  ;;  %2231 = vmatpush.msra.mxu3 %v5231_v32  ;;  %v5383_v32 = vsub.f32 %v2273_v42, %v5367_v33  ;;  %v6389_v34 = vand.u32 4294901760, %v5412_v47 }
 0x1fb   :  { %2198 = vmatmul.f32.vlgmr.msra.gmra.mxu2 %v5264_v49  ;;  %2081 = vmatpush.msra.mxu0 %v5234_v6  ;;  %v5385_v6 = vand.u32 4294901760, %v2271_v57  ;;  %v6393_v56 = vand.u32 4294901760, %v5380_v54 }
 0x1fc   :  { %2233 = vmatpush.msra.mxu3 %v5244_v63  ;;  %v6396_v63 = vand.u32 4294901760, %v5370_v29  ;;  %2421 = vmatpush.msrb.mxu2 %v5370_v29  ;;  %v6392_v46 = vand.u32 4294901760, %v5383_v32  ;;  %v2357_v52 = vsub.f32 %v5412_v47, %v6389_v34 }
 0x1fd   :  { %2235 = vmatmul.f32.vlgmr.msra.gmra.mxu3 %v5264_v49  ;;  %2084 = vmatpush.msra.mxu0 %v5247_v43  ;;  %v6394_v43 = vand.u32 4294901760, %v5373_v51  ;;  %v5400_v31 = vsub.f32 %v2271_v57, %v5385_v6  ;;  %v2333_v49 = vsub.f32 %v5380_v54, %v6393_v56 }
 0x1fe   :  { %2474 = vmatpush.msrb.mxu3 %v5361_v36  ;;  %v2321_v0 = vsub.f32 %v5370_v29, %v6396_v63  ;;  %2424 = vmatpush.msrb.mxu2 %v5373_v51  ;;  %v2339_v8 = vsub.f32 %v5383_v32, %v6392_v46 }
 0x1ff   :  { %2087 = vmatpush.msra.mxu0 %v5255_v59  ;;  %v5392_v59 = vsub.f32 %v2272_v40, %v5377_v26  ;;  %v2327_v16 = vsub.f32 %v5373_v51, %v6394_v43  ;;  %v6390_v44 = vand.u32 4294901760, %v5400_v31  ;;  %v2334_v13 = vand.u32 4294901760, %v2333_v49  ;;  %v2261_v49 = vld [vmem:[#allocation5 + $0x500] sm:$0xff] }
 0x200   :  { %2090 = vmatmul.f32.vlgmr.msra.gmra.mxu0 %v5267_v39  ;;  %2476 = vmatpush.msrb.mxu3 %v5363_v2  ;;  %v2268_v39 = vld [vmem:[#allocation5 + $0x570] sm:$0xff]  ;;  %v2322_v14 = vand.u32 4294901760, %v2321_v0  ;;  %v2340_v19 = vand.u32 4294901760, %v2339_v8 }
 0x201   :  { %2278 = vmatpush.msrb.mxu0 %v5361_v36  ;;  %v6391_v27 = vand.u32 4294901760, %v5392_v59  ;;  %v2328_v4 = vand.u32 4294901760, %v2327_v16  ;;  %2427 = vmatpush.msrb.mxu2 %v5380_v54  ;;  %v5435_v5 = vand.u32 4294901760, %v2268_v39 }
 0x202   :  { %2478 = vmatpush.msrb.mxu3 %v5365_v15  ;;  %2323 = vmatpush.msrb.mxu1 %v2322_v14 }
 0x203   :  { %2280 = vmatpush.msrb.mxu0 %v5363_v2  ;;  %v2345_v53 = vsub.f32 %v5392_v59, %v6391_v27  ;;  %2430 = vmatpush.msrb.mxu2 %v5383_v32 }
 0x204   :  { %2480 = vmatpush.msrb.mxu3 %v5367_v33  ;;  %2329 = vmatpush.msrb.mxu1 %v2328_v4  ;;  %v2358_v4 = vand.u32 4294901760, %v2357_v52 }
 0x205   :  { %2282 = vmatpush.msrb.mxu0 %v5365_v15  ;;  %2433 = vmatpush.msrb.mxu2 %v5392_v59  ;;  %v2346_v55 = vand.u32 4294901760, %v2345_v53  ;;  %v2258_v53 = vld [vmem:[#allocation5 + $0x4d0] sm:$0xff] }
 0x206   :  { %2482 = vmatpush.msrb.mxu3 %v5377_v26  ;;  %2335 = vmatpush.msrb.mxu1 %v2334_v13 }
 0x207   :  { %2284 = vmatpush.msrb.mxu0 %v5367_v33  ;;  %2436 = vmatpush.msrb.mxu2 %v5400_v31 }
 0x208   :  { %2484 = vmatpush.msrb.mxu3 %v5385_v6  ;;  %2341 = vmatpush.msrb.mxu1 %v2340_v19  ;;  %v5503_v19 = vand.u32 4294901760, %v2261_v49 }
 0x209   :  { %2286 = vmatpush.msrb.mxu0 %v5377_v26  ;;  %2439 = vmatpush.msrb.mxu2 %v5412_v47 }
 0x20a   :  { %2486 = vmatpush.msrb.mxu3 %v5394_v24  ;;  %2347 = vmatpush.msrb.mxu1 %v2346_v55 }
 0x20b   :  { %2288 = vmatpush.msrb.mxu0 %v5385_v6  ;;  %2442 = vmatpush.msrb.mxu2 %v5431_v25 }
 0x20c   :  { %2488 = vmatpush.msrb.mxu3 %v5421_v7 }
 0x20d   :  { %2290 = vmatpush.msrb.mxu0 %v5394_v24 }
 0x20e   :  { %2490 = vmatpush.msrb.mxu3 %v5435_v5 }
 0x20f   :  { %2292 = vmatpush.msrb.mxu0 %v5421_v7 }
 0x210   :  { %2492 = vmatpush.msrb.mxu3 %v5437_v50 }
 0x211   :  { %2294 = vmatpush.msrb.mxu0 %v5435_v5 }
 0x213   :  { %2296 = vmatpush.msrb.mxu0 %v5437_v50 }
 0x253   :  { %v1676_v45 = vpop.f32.mrf.mxu1 }
 0x25b   :  { %v1575_v20 = vpop.f32.mrf.mxu0  ;;  %v1730_v1 = vpop.f32.mrf.mxu2 }
 0x25c   :  { %v1576_v12 = vadd.f32 %v1575_v20, %v1536_v22  ;;  %v1875_v60 = vpop.f32.mrf.mxu1  ;;  %v6387_v22 = vand.u32 4294901760, %v5431_v25  ;;  %v5442_v20 = vand.u32 4294901760, %v2266_v9 }
 0x25d   :  { %v1769_v38 = vpop.f32.mrf.mxu3 }
 0x25e   :  { %v1677_v48 = vadd.f32 %v1676_v45, %v1576_v12  ;;  %v5444_v12 = vand.u32 4294901760, %v2265_v58  ;;  %v2351_v45 = vsub.f32 %v5400_v31, %v6390_v44  ;;  %v2363_v40 = vsub.f32 %v5431_v25, %v6387_v22  ;;  %2494 = vmatpush.msrb.mxu3 %v5442_v20  ;;  %2298 = vmatpush.msrb.mxu0 %v5442_v20 }
 0x25f   :  { %v5536_v44 = vsub.f32 %v2261_v49, %v5503_v19 }
 0x260   :  { %v1731_v11 = vadd.f32 %v1730_v1, %v1677_v48  ;;  %v5451_v48 = vsub.f32 %v2268_v39, %v5435_v5  ;;  %v5454_v1 = vsub.f32 %v2267_v61, %v5437_v50  ;;  %v2352_v23 = vand.u32 4294901760, %v2351_v45  ;;  %v2260_v61 = vld [vmem:[#allocation5 + $0x4f0] sm:$0xff]  ;;  %v2257_v45 = vld [vmem:[#allocation5 + $0x4c0] sm:$0xff]  ;;  %2496 = vmatpush.msrb.mxu3 %v5444_v12  ;;  %2300 = vmatpush.msrb.mxu0 %v5444_v12 }
 0x261   :  { %v2364_v13 = vand.u32 4294901760, %v2363_v40  ;;  %v5530_v22 = vand.u32 4294901760, %v2257_v45 }
 0x262   :  { %v1770_v18 = vadd.f32 %v1769_v38, %v1731_v11  ;;  %v5456_v11 = vand.u32 4294901760, %v2264_v30  ;;  %v2263_v38 = vld [vmem:[#allocation5 + $0x520] sm:$0xff]  ;;  %v6385_v28 = vand.u32 4294901760, %v5451_v48  ;;  %v6384_v57 = vand.u32 4294901760, %v5454_v1  ;;  %2353 = vmatpush.msrb.mxu1 %v2352_v23  ;;  %2445 = vmatpush.msrb.mxu2 %v5451_v48 }
 0x263   :  { %v5477_v3 = vand.u32 4294901760, %v2263_v38 }
 0x264   :  { %v1936_v62 = vpop.f32.mrf.mxu2  ;;  %v5481_v0 = vsub.f32 %v2264_v30, %v5456_v11  ;;  %2359 = vmatpush.msrb.mxu1 %v2358_v4  ;;  %2448 = vmatpush.msrb.mxu2 %v5454_v1 }
 0x265   :  { %v1838_v35 = vpop.f32.mrf.mxu0  ;;  %2498 = vmatpush.msrb.mxu3 %v5456_v11  ;;  %2302 = vmatpush.msrb.mxu0 %v5456_v11 }
 0x266   :  { %v1839_v17 = vadd.f32 %v1838_v35, %v1770_v18  ;;  %v5461_v18 = vsub.f32 %v2266_v9, %v5442_v20  ;;  %v5464_v35 = vsub.f32 %v2265_v58, %v5444_v12  ;;  %v2369_v9 = vsub.f32 %v5451_v48, %v6385_v28  ;;  %v2259_v58 = vld [vmem:[#allocation5 + $0x4e0] sm:$0xff]  ;;  %2365 = vmatpush.msrb.mxu1 %v2364_v13  ;;  %v2254_v13 = vld [vmem:[#allocation5 + $0x490] sm:$0xff] }
 0x267   :  { %v2037_v42 = vpop.f32.mrf.mxu3  ;;  %v6395_v55 = vand.u32 4294901760, %v5481_v0  ;;  %v5522_v23 = vand.u32 4294901760, %v2259_v58  ;;  %2500 = vmatpush.msrb.mxu3 %v5477_v3  ;;  %2304 = vmatpush.msrb.mxu0 %v5477_v3 }
 0x268   :  { %v5359_v41 = vadd.f32 %v1875_v60, %v1839_v17  ;;  %v2262_v17 = vld [vmem:[#allocation5 + $0x510] sm:$0xff]  ;;  %v1937_v60 = vadd.f32 %v1936_v62, %v1897_v37  ;;  %v6386_v8 = vand.u32 4294901760, %v5461_v18  ;;  %v6388_v39 = vand.u32 4294901760, %v5464_v35  ;;  %2451 = vmatpush.msrb.mxu2 %v5461_v18 }
 0x269   :  { %v5483_v16 = vand.u32 4294901760, %v2262_v17  ;;  %v5496_v37 = vsub.f32 %v5454_v1, %v6384_v57  ;;  %v5501_v62 = vsub.f32 %v2263_v38, %v5477_v3  ;;  %v2370_v28 = vand.u32 4294901760, %v2369_v9 }
 0x26a   :  { %6453 = vst [vmem:[#allocation13_spill] sm:$0xff] %v5359_v41  ;;  %v2038_v14 = vadd.f32 %v2037_v42, %v1937_v60  ;;  %v5510_v42 = vand.u32 4294901760, %v2260_v61  ;;  %v2381_v38 = vsub.f32 %v5461_v18, %v6386_v8  ;;  %v5518_v57 = vsub.f32 %v5464_v35, %v6388_v39  ;;  %2454 = vmatpush.msrb.mxu2 %v5464_v35 }
 0x26b   :  { %6454 = vst [vmem:[#allocation14_spill] sm:$0xff] %v5483_v16  ;;  %v5508_v52 = vsub.f32 %v2262_v17, %v5483_v16  ;;  %v5524_v17 = vand.u32 4294901760, %v2258_v53  ;;  %v6397_v34 = vand.u32 4294901760, %v5501_v62  ;;  %v5539_v4 = vsub.f32 %v2259_v58, %v5522_v23  ;;  %2371 = vmatpush.msrb.mxu1 %v2370_v28  ;;  %v2252_v58 = vld [vmem:[#allocation5 + $0x470] sm:$0xff]  ;;  %2502 = vmatpush.msrb.mxu3 %v5483_v16  ;;  %v2251_v28 = vld [vmem:[#allocation5 + $0x460] sm:$0xff] }
 0x26c   :  { %v5528_v8 = vsub.f32 %v2260_v61, %v5510_v42  ;;  %v2255_v61 = vld [vmem:[#allocation5 + $0x4a0] sm:$0xff]  ;;  %v2393_v49 = vsub.f32 %v5481_v0, %v6395_v55  ;;  %v2388_v43 = vand.u32 4294901760, %v5518_v57  ;;  %2457 = vmatpush.msrb.mxu2 %v5481_v0  ;;  %2306 = vmatpush.msrb.mxu0 %v5483_v16 }
 0x26d   :  { %6456 = vst [vmem:[#allocation17_spill] sm:$0xff] %v5539_v4  ;;  %v5542_v9 = vsub.f32 %v2258_v53, %v5524_v17  ;;  %v5557_v53 = vsub.f32 %v2257_v45, %v5530_v22  ;;  %v5561_v55 = vand.u32 4294901760, %v2255_v61  ;;  %v2399_v63 = vsub.f32 %v5501_v62, %v6397_v34  ;;  %v2253_v57 = vld [vmem:[#allocation5 + $0x480] sm:$0xff]  ;;  %2504 = vmatpush.msrb.mxu3 %v5503_v19 }
 0x26e   :  { %6455 = vst [vmem:[#allocation15_spill] sm:$0xff] %v5528_v8  ;;  %v6398_v27 = vand.u32 4294901760, %v5528_v8  ;;  %v2394_v34 = vand.u32 4294901760, %v2393_v49  ;;  %2460 = vmatpush.msrb.mxu2 %v5501_v62  ;;  %v5594_v21 = vand.u32 4294901760, %v2253_v57  ;;  %v2249_v16 = vld [vmem:[#allocation5 + $0x440] sm:$0xff]  ;;  %2308 = vmatpush.msrb.mxu0 %v5503_v19 }
 0x26f   :  { %6457 = vst [vmem:[#allocation18_spill] sm:$0xff] %v5542_v9  ;;  %v5592_v49 = vsub.f32 %v2255_v61, %v5561_v55  ;;  %v2400_v61 = vand.u32 4294901760, %v2399_v63 }
 0x270   :  { %2463 = vmatpush.msrb.mxu2 %v5508_v52 }
 0x272   :  { %2466 = vmatpush.msrb.mxu2 %v5536_v44 }
 0x274   :  { %2619 = vmatpush.msra.mxu2 %v5510_v42 }
 0x276   :  { %v2130_v40 = vpop.f32.mrf.mxu1  ;;  %2621 = vmatpush.msra.mxu2 %v5522_v23 }
 0x278   :  { %2623 = vmatpush.msra.mxu2 %v5524_v17 }
 0x27a   :  { %2625 = vmatpush.msra.mxu2 %v5530_v22 }
 0x27d   :  { %v2091_v30 = vpop.f32.mrf.mxu0 }
 0x27e   :  { %v2092_v60 = vadd.f32 %v2091_v30, %v2038_v14  ;;  %v2256_v14 = vld [vmem:[#allocation5 + $0x4b0] sm:$0xff]  ;;  %v2199_v39 = vpop.f32.mrf.mxu2 }
 0x27f   :  { %v5547_v46 = vand.u32 4294901760, %v2256_v14 }
 0x280   :  { %v2131_v30 = vadd.f32 %v2130_v40, %v2092_v60  ;;  %v2376_v40 = vand.u32 4294901760, %v5496_v37  ;;  %v2236_v56 = vpop.f32.mrf.mxu3 }
 0x281   :  { %2627 = vmatpush.msra.mxu2 %v5547_v46 }
 0x282   :  { %v2200_v60 = vadd.f32 %v2199_v39, %v2131_v30  ;;  %v6401_v39 = vand.u32 4294901760, %v5539_v4  ;;  %v2382_v30 = vand.u32 4294901760, %v2381_v38  ;;  %2377 = vmatpush.msrb.mxu1 %v2376_v40  ;;  %v5575_v38 = vsub.f32 %v2256_v14, %v5547_v46 }
 0x283   :  { %v6459_v14 = vand.u32 4294901760, %v5508_v52  ;;  %2629 = vmatpush.msra.mxu2 %v5561_v55 }
 0x284   :  { %v2237_v37 = vadd.f32 %v2236_v56, %v2200_v60  ;;  %v2662_v56 = vsub.f32 %v5528_v8, %v6398_v27  ;;  %v5577_v60 = vand.u32 4294901760, %v2254_v13  ;;  %v2668_v27 = vsub.f32 %v5539_v4, %v6401_v39  ;;  %2383 = vmatpush.msrb.mxu1 %v2382_v30 }
 0x285   :  { %v2405_v10 = vsub.f32 %v5508_v52, %v6459_v14  ;;  %v6460_v39 = vand.u32 4294901760, %v5536_v44 }
 0x286   :  { %v2240_v45 = vmul.f32 0.2, %v2237_v37  ;;  %vm2239_vm4 = vcmp.gt.f32.partialorder %v2237_v37, 0.0  ;;  %v2663_v30 = vand.u32 4294901760, %v2662_v56  ;;  %2389 = vmatpush.msrb.mxu1 %v2388_v43  ;;  %v5607_v8 = vsub.f32 %v2254_v13, %v5577_v60  ;;  %v2250_v43 = vld [vmem:[#allocation5 + $0x450] sm:$0xff]  ;;  %2631 = vmatpush.msra.mxu2 %v5577_v60 }
 0x287   :  { %v6462_v56 = vand.u32 4294901760, %v5557_v53  ;;  %v2406_v63 = vand.u32 4294901760, %v2405_v10  ;;  %v5619_v13 = vsub.f32 %v2253_v57, %v5594_v21  ;;  %v6463_v10 = vand.u32 4294901760, %v5575_v38 }
 0x288   :  { %v5585_v40 = vsel %vm2239_vm4, %v2237_v37, %v2240_v45  ;;  %v2411_v37 = vsub.f32 %v5536_v44, %v6460_v39  ;;  %v6461_v45 = vand.u32 4294901760, %v5542_v9  ;;  %v2669_v39 = vand.u32 4294901760, %v2668_v27  ;;  %2395 = vmatpush.msrb.mxu1 %v2394_v34  ;;  %2664 = vmatpush.msra.mxu3 %v2663_v30 }
 0x289   :  { %6458 = vst [vmem:[#allocation19_spill] sm:$0xff] %v5585_v40  ;;  %2242 = vrot.lane.b32.xlu0 %v5585_v40, %s3856_s0  ;;  %v5609_v40 = vand.u32 4294901760, %v2252_v58  ;;  %v2686_v34 = vsub.f32 %v5575_v38, %v6463_v10  ;;  %v5632_v4 = vand.u32 4294901760, %v2250_v43  ;;  %v6464_v30 = vand.u32 4294901760, %v5370_v29  ;;  %2633 = vmatpush.msra.mxu2 %v5594_v21 }
 0x28a   :  { %v2674_v14 = vsub.f32 %v5542_v9, %v6461_v45  ;;  %v2680_v45 = vsub.f32 %v5557_v53, %v6462_v56  ;;  %v5621_v9 = vand.u32 4294901760, %v2251_v28  ;;  %v2412_v41 = vand.u32 4294901760, %v2411_v37  ;;  %2401 = vmatpush.msrb.mxu1 %v2400_v61  ;;  %2670 = vmatpush.msra.mxu3 %v2669_v39 }
 0x28b   :  { %v5630_v57 = vsub.f32 %v2252_v58, %v5609_v40  ;;  %2515 = vmatpush.msra.mxu0 %v6464_v30  ;;  %v2703_v10 = vand.u32 4294901760, %v5619_v13  ;;  %v5644_v58 = vand.u32 4294901760, %v2249_v16  ;;  %v6466_v39 = vand.u32 4294901760, %v5373_v51  ;;  %2635 = vmatpush.msra.mxu2 %v5609_v40 }
 0x28c   :  { %v2675_v27 = vand.u32 4294901760, %v2674_v14  ;;  %v2681_v37 = vand.u32 4294901760, %v2680_v45  ;;  %2407 = vmatpush.msrb.mxu1 %v2406_v63  ;;  %v6465_v14 = vand.u32 4294901760, %v5592_v49  ;;  %v5642_v56 = vsub.f32 %v2251_v28, %v5621_v9 }
 0x28d   :  { %2519 = vmatpush.msra.mxu0 %v6466_v39  ;;  %v2687_v29 = vand.u32 4294901760, %v2686_v34  ;;  %v6467_v45 = vand.u32 4294901760, %v5607_v8  ;;  %v2709_v30 = vand.u32 4294901760, %v5630_v57  ;;  %v2704_v28 = vsub.f32 %v5619_v13, %v2703_v10  ;;  %2637 = vmatpush.msra.mxu2 %v5621_v9 }
 0x28e   :  { %v2692_v61 = vsub.f32 %v5592_v49, %v6465_v14  ;;  %2676 = vmatpush.msra.mxu3 %v2675_v27  ;;  %2413 = vmatpush.msrb.mxu1 %v2412_v41  ;;  %v5654_v14 = vsub.f32 %v2250_v43, %v5632_v4  ;;  %v6468_v41 = vand.u32 4294901760, %v5380_v54  ;;  %v2715_v27 = vand.u32 4294901760, %v5642_v56 }
 0x28f   :  { %v2698_v63 = vsub.f32 %v5607_v8, %v6467_v45  ;;  %v5665_v34 = vsub.f32 %v2249_v16, %v5644_v58  ;;  %v2710_v43 = vsub.f32 %v5630_v57, %v2709_v30  ;;  %v2705_v16 = vand.u32 4294901760, %v2704_v28  ;;  %2639 = vmatpush.msra.mxu2 %v5632_v4 }
 0x290   :  { %2582 = vmatpush.msra.mxu1 %v5361_v36  ;;  %2682 = vmatpush.msra.mxu3 %v2681_v37  ;;  %v2693_v51 = vand.u32 4294901760, %v2692_v61  ;;  %v6469_v36 = vand.u32 4294901760, %v5383_v32  ;;  %v2721_v37 = vand.u32 4294901760, %v5654_v14  ;;  %v2716_v32 = vsub.f32 %v5642_v56, %v2715_v27 }
 0x291   :  { %2523 = vmatpush.msra.mxu0 %v6468_v41  ;;  %v2699_v54 = vand.u32 4294901760, %v2698_v63  ;;  %v2727_v61 = vand.u32 4294901760, %v5665_v34  ;;  %v2711_v39 = vand.u32 4294901760, %v2710_v43  ;;  %v2248_v63 = vld [vmem:[#allocation5 + $0x430] sm:$0xff]  ;;  %2641 = vmatpush.msra.mxu2 %v5644_v58 }
 0x292   :  { %2584 = vmatpush.msra.mxu1 %v5363_v2  ;;  %2688 = vmatpush.msra.mxu3 %v2687_v29  ;;  %v6470_v2 = vand.u32 4294901760, %v5392_v59  ;;  %v2722_v59 = vsub.f32 %v5654_v14, %v2721_v37  ;;  %v6472_v29 = vand.u32 4294901760, %v5412_v47  ;;  %v6474_v47 = vand.u32 4294901760, %v5451_v48 }
 0x293   :  { %2527 = vmatpush.msra.mxu0 %v6469_v36  ;;  %v2728_v45 = vsub.f32 %v5665_v34, %v2727_v61  ;;  %v6478_v48 = vand.u32 4294901760, %v5481_v0  ;;  %v2246_v0 = vld [vmem:[#allocation5 + $0x410] sm:$0xff] }
 0x294   :  { %2586 = vmatpush.msra.mxu1 %v5365_v15  ;;  %2694 = vmatpush.msra.mxu3 %v2693_v51  ;;  %v6471_v15 = vand.u32 4294901760, %v5400_v31  ;;  %v6473_v31 = vand.u32 4294901760, %v5431_v25  ;;  %v6476_v25 = vand.u32 4294901760, %v5461_v18  ;;  %v6482_v18 = vld [vmem:[#allocation14_spill] sm:$0xff] }
 0x295   :  { %2531 = vmatpush.msra.mxu0 %v6470_v2  ;;  %v2729_v41 = vand.u32 4294901760, %v2728_v45 }
 0x296   :  { %2588 = vmatpush.msra.mxu1 %v5367_v33  ;;  %2700 = vmatpush.msra.mxu3 %v2699_v54  ;;  %v2717_v33 = vand.u32 4294901760, %v2716_v32 }
 0x297   :  { %2535 = vmatpush.msra.mxu0 %v6471_v15 }
 0x298   :  { %2590 = vmatpush.msra.mxu1 %v5377_v26  ;;  %2706 = vmatpush.msra.mxu3 %v2705_v16  ;;  %v2723_v26 = vand.u32 4294901760, %v2722_v59 }
 0x299   :  { %2539 = vmatpush.msra.mxu0 %v6472_v29 }
 0x29a   :  { %2592 = vmatpush.msra.mxu1 %v5385_v6  ;;  %2712 = vmatpush.msra.mxu3 %v2711_v39  ;;  %v6475_v6 = vand.u32 4294901760, %v5454_v1  ;;  %v6480_v1 = vand.u32 4294901760, %v5508_v52 }
 0x29b   :  { %2543 = vmatpush.msra.mxu0 %v6473_v31 }
 0x29c   :  { %2594 = vmatpush.msra.mxu1 %v5394_v24  ;;  %2718 = vmatpush.msra.mxu3 %v2717_v33  ;;  %v5711_v24 = vand.u32 4294901760, %v2248_v63  ;;  %v6483_v33 = vld [vmem:[#allocation13_spill] sm:$0xff] }
 0x29d   :  { %2547 = vmatpush.msra.mxu0 %v6474_v47  ;;  %v1879_v45 = vmul.f32 0.2, %v6483_v33  ;;  %vm1878_vm5 = vcmp.gt.f32.partialorder %v6483_v33, 0.0 }
 0x29e   :  { %2596 = vmatpush.msra.mxu1 %v5421_v7  ;;  %2724 = vmatpush.msra.mxu3 %v2723_v26  ;;  %v6477_v7 = vand.u32 4294901760, %v5464_v35 }
 0x29f   :  { %2551 = vmatpush.msra.mxu0 %v6475_v6  ;;  %2643 = vmatpush.msra.mxu2 %v5711_v24  ;;  %v1880_v31 = vsel %vm1878_vm5, %v6483_v33, %v1879_v45 }
 0x2a0   :  { %2598 = vmatpush.msra.mxu1 %v5435_v5  ;;  %2730 = vmatpush.msra.mxu3 %v2729_v41  ;;  %v6479_v5 = vand.u32 4294901760, %v5501_v62  ;;  %v5740_v62 = vand.u32 4294901760, %v2246_v0  ;;  %v5773_v26 = vand.u32 4294901760, %v1880_v31 }
 0x2a1   :  { %2555 = vmatpush.msra.mxu0 %v6476_v25 }
 0x2a2   :  { %2600 = vmatpush.msra.mxu1 %v5437_v50  ;;  %v6481_v50 = vand.u32 4294901760, %v5536_v44  ;;  %v5753_v28 = vsub.f32 %v2246_v0, %v5740_v62  ;;  %v5777_v6 = vsub.f32 %v1880_v31, %v5773_v26 }
 0x2a3   :  { %2559 = vmatpush.msra.mxu0 %v6477_v7 }
 0x2a4   :  { %2602 = vmatpush.msra.mxu1 %v5442_v20  ;;  %v2247_v20 = vld [vmem:[#allocation5 + $0x420] sm:$0xff]  ;;  %v2745_v43 = vand.u32 4294901760, %v5753_v28 }
 0x2a5   :  { %2563 = vmatpush.msra.mxu0 %v6478_v48  ;;  %v5733_v35 = vand.u32 4294901760, %v2247_v20  ;;  %v2652_v48 = vand.u32 4294901760, %v5777_v6 }
 0x2a6   :  { %2604 = vmatpush.msra.mxu1 %v5444_v12  ;;  %v5736_v12 = vsub.f32 %v2248_v63, %v5711_v24  ;;  %v2746_v32 = vsub.f32 %v5753_v28, %v2745_v43  ;;  %v6484_v63 = vld [vmem:[#allocation19_spill] sm:$0xff] }
 0x2a7   :  { %2567 = vmatpush.msra.mxu0 %v6479_v5  ;;  %2645 = vmatpush.msra.mxu2 %v5733_v35  ;;  %v5743_v44 = vsub.f32 %v2247_v20, %v5733_v35  ;;  %v6487_v20 = vld [vmem:[#allocation17_spill] sm:$0xff] }
 0x2a8   :  { %2606 = vmatpush.msra.mxu1 %v5456_v11  ;;  %v2733_v11 = vand.u32 4294901760, %v5736_v12  ;;  %v2747_v39 = vand.u32 4294901760, %v2746_v32  ;;  %v6488_v0 = vand.u32 4294901760, %v6487_v20  ;;  %v6491_v32 = vand.u32 4294901760, %v5557_v53 }
 0x2a9   :  { %2571 = vmatpush.msra.mxu0 %v6480_v1  ;;  %2647 = vmatpush.msra.mxu2 %v5740_v62  ;;  %v2739_v52 = vand.u32 4294901760, %v5743_v44  ;;  %v6485_v1 = vld [vmem:[#allocation15_spill] sm:$0xff] }
 0x2aa   :  { %2608 = vmatpush.msra.mxu1 %v5477_v3  ;;  %v2245_v3 = vld [vmem:[#allocation5 + $0x400] sm:$0xff] }
 0x2ab   :  { %2575 = vmatpush.msra.mxu0 %v6481_v50  ;;  %v5750_v51 = vand.u32 4294901760, %v2245_v3  ;;  %v2740_v54 = vsub.f32 %v5743_v44, %v2739_v52  ;;  %v6486_v50 = vand.u32 4294901760, %v6485_v1 }
 0x2ac   :  { %2610 = vmatpush.msra.mxu1 %v6482_v18 }
 0x2ad   :  { %2649 = vmatpush.msra.mxu2 %v5750_v51  ;;  %v5761_v2 = vsub.f32 %v2245_v3, %v5750_v51  ;;  %v2741_v16 = vand.u32 4294901760, %v2740_v54  ;;  %v2653_v3 = vsub.f32 %v5777_v6, %v2652_v48 }
 0x2ae   :  { %2612 = vmatpush.msra.mxu1 %v5503_v19  ;;  %v2734_v19 = vsub.f32 %v5736_v12, %v2733_v11 }
 0x2af   :  { %v2751_v15 = vand.u32 4294901760, %v5761_v2 }
 0x2b0   :  { %v2735_v36 = vand.u32 4294901760, %v2734_v19 }
 0x2b1   :  { %v2752_v59 = vsub.f32 %v5761_v2, %v2751_v15 }
 0x2b2   :  { %2736 = vmatpush.msra.mxu3 %v2735_v36  ;;  %v6489_v36 = vld [vmem:[#allocation18_spill] sm:$0xff] }
 0x2b3   :  { %v2753_v29 = vand.u32 4294901760, %v2752_v59  ;;  %v6490_v54 = vand.u32 4294901760, %v6489_v36 }
 0x2b4   :  { %2742 = vmatpush.msra.mxu3 %v2741_v16  ;;  %v2654_v16 = vand.u32 4294901760, %v2653_v3 }
 0x2b6   :  { %2748 = vmatpush.msra.mxu3 %v2747_v39  ;;  %v6493_v39 = vand.u32 4294901760, %v5592_v49 }
 0x2b8   :  { %2754 = vmatpush.msra.mxu3 %v2753_v29  ;;  %v2972_v29 = vld [vmem:[#allocation5 + $0x6d0] sm:$0xff] }
 0x2b9   :  { %v5828_v45 = vand.u32 4294901760, %v2972_v29 }
 0x2fb   :  { %v2243_v47 = vpop.permute.xlu0 %2242 }
 0x2fc   :  { %v2244_v41 = vmax.f32 %v6484_v63, %v2243_v47 }
 0x2fe   :  { %v2309_v25 = vand.u32 4294901760, %v2244_v41 }
 0x300   :  { %v2310_v7 = vsub.f32 %v2244_v41, %v2309_v25  ;;  %2415 = vmatmul.f32.vlgmr.msrb.gmra.mxu1 %v2309_v25  ;;  %v2966_v41 = vld [vmem:[#allocation5 + $0x670] sm:$0xff] }
 0x301   :  { %2815 = vmatpush.msrb.mxu1 %v5510_v42 }
 0x302   :  { %v2311_v5 = vand.u32 4294901760, %v2310_v7  ;;  %2469 = vmatmul.f32.vlgmr.msrb.gmra.mxu2 %v2310_v7 }
 0x303   :  { %2817 = vmatpush.msrb.mxu1 %v5522_v23  ;;  %2856 = vmatpush.msrb.mxu2 %v6486_v50  ;;  %v2964_v50 = vld [vmem:[#allocation5 + $0x650] sm:$0xff] }
 0x304   :  { %v2312_v18 = vsub.f32 %v2310_v7, %v2311_v5  ;;  %2508 = vmatmul.f32.vlgmr.msrb.gmra.mxu3 %v2311_v5  ;;  %v5904_v5 = vand.u32 4294901760, %v2966_v41 }
 0x305   :  { %2819 = vmatpush.msrb.mxu1 %v5524_v17  ;;  %2860 = vmatpush.msrb.mxu2 %v6488_v0  ;;  %v2963_v0 = vld [vmem:[#allocation5 + $0x640] sm:$0xff] }
 0x306   :  { %2923 = vmatpush.msrb.mxu3 %v5510_v42  ;;  %v2313_v19 = vand.u32 4294901760, %v2312_v18  ;;  %v6492_v42 = vand.u32 4294901760, %v5575_v38 }
 0x307   :  { %2821 = vmatpush.msrb.mxu1 %v5530_v22  ;;  %2864 = vmatpush.msrb.mxu2 %v6490_v54  ;;  %v5944_v54 = vand.u32 4294901760, %v2963_v0 }
 0x308   :  { %2925 = vmatpush.msrb.mxu3 %v5522_v23  ;;  %2314 = vmatmul.f32.vlgmr.msrb.gmra.mxu0 %v2313_v19  ;;  %v2974_v23 = vld [vmem:[#allocation5 + $0x6f0] sm:$0xff] }
 0x309   :  { %2614 = vmatmul.f32.vlgmr.msra.gmra.mxu1 %v2309_v25  ;;  %2762 = vmatpush.msrb.mxu0 %v6485_v1  ;;  %v5812_v59 = vand.u32 4294901760, %v2974_v23  ;;  %v2962_v19 = vld [vmem:[#allocation5 + $0x630] sm:$0xff] }
 0x30a   :  { %2823 = vmatpush.msrb.mxu1 %v5547_v46  ;;  %2868 = vmatpush.msrb.mxu2 %v6491_v32 }
 0x30b   :  { %2927 = vmatpush.msrb.mxu3 %v5524_v17  ;;  %2655 = vmatmul.f32.vlgmr.msra.gmra.mxu2 %v2654_v16  ;;  %v2973_v17 = vld [vmem:[#allocation5 + $0x6e0] sm:$0xff] }
 0x30c   :  { %2765 = vmatpush.msrb.mxu0 %v6487_v20  ;;  %2825 = vmatpush.msrb.mxu1 %v5561_v55  ;;  %v5818_v33 = vand.u32 4294901760, %v2973_v17 }
 0x30d   :  { %2872 = vmatpush.msrb.mxu2 %v6492_v42  ;;  %2929 = vmatpush.msrb.mxu3 %v5530_v22  ;;  %v6494_v22 = vand.u32 4294901760, %v5607_v8 }
 0x30e   :  { %2756 = vmatmul.f32.vlgmr.msra.gmra.mxu3 %v5773_v26  ;;  %2768 = vmatpush.msrb.mxu0 %v6489_v36 }
 0x30f   :  { %2827 = vmatpush.msrb.mxu1 %v5577_v60  ;;  %2876 = vmatpush.msrb.mxu2 %v6493_v39  ;;  %v2960_v39 = vld [vmem:[#allocation5 + $0x610] sm:$0xff] }
 0x310   :  { %2931 = vmatpush.msrb.mxu3 %v5547_v46  ;;  %2771 = vmatpush.msrb.mxu0 %v5557_v53  ;;  %v2971_v46 = vld [vmem:[#allocation5 + $0x6c0] sm:$0xff]  ;;  %v5826_v53 = vsub.f32 %v2974_v23, %v5812_v59  ;;  %v5956_v23 = vand.u32 4294901760, %v2962_v19 }
 0x311   :  { %2829 = vmatpush.msrb.mxu1 %v5594_v21  ;;  %2880 = vmatpush.msrb.mxu2 %v6494_v22 }
 0x312   :  { %2933 = vmatpush.msrb.mxu3 %v5561_v55  ;;  %2577 = vmatmul.f32.vlgmr.msra.gmra.mxu0 %v2309_v25  ;;  %v2970_v55 = vld [vmem:[#allocation5 + $0x6b0] sm:$0xff] }
 0x313   :  { %2774 = vmatpush.msrb.mxu0 %v5575_v38  ;;  %2831 = vmatpush.msrb.mxu1 %v5609_v40  ;;  %v5836_v38 = vsub.f32 %v2973_v17, %v5818_v33 }
 0x314   :  { %2884 = vmatpush.msrb.mxu2 %v2703_v10  ;;  %2935 = vmatpush.msrb.mxu3 %v5577_v60  ;;  %v5838_v10 = vand.u32 4294901760, %v2971_v46  ;;  %v3018_v60 = vand.u32 4294901760, %v5826_v53 }
 0x315   :  { %2777 = vmatpush.msrb.mxu0 %v5592_v49  ;;  %2833 = vmatpush.msrb.mxu1 %v5621_v9  ;;  %v5847_v49 = vsub.f32 %v2972_v29, %v5828_v45  ;;  %v5966_v29 = vsub.f32 %v2963_v0, %v5944_v54 }
 0x316   :  { %2888 = vmatpush.msrb.mxu2 %v2709_v30  ;;  %2937 = vmatpush.msrb.mxu3 %v5594_v21  ;;  %v5849_v21 = vand.u32 4294901760, %v2970_v55  ;;  %v2969_v30 = vld [vmem:[#allocation5 + $0x6a0] sm:$0xff] }
 0x317   :  { %2780 = vmatpush.msrb.mxu0 %v5607_v8  ;;  %2835 = vmatpush.msrb.mxu1 %v5632_v4  ;;  %v2968_v8 = vld [vmem:[#allocation5 + $0x690] sm:$0xff]  ;;  %v5862_v31 = vand.u32 4294901760, %v2969_v30 }
 0x318   :  { %2892 = vmatpush.msrb.mxu2 %v2715_v27  ;;  %2939 = vmatpush.msrb.mxu3 %v5609_v40  ;;  %v3024_v40 = vand.u32 4294901760, %v5836_v38  ;;  %v5858_v27 = vsub.f32 %v2971_v46, %v5838_v10  ;;  %v5872_v47 = vsub.f32 %v2970_v55, %v5849_v21  ;;  %v2959_v55 = vld [vmem:[#allocation5 + $0x600] sm:$0xff] }
 0x319   :  { %2783 = vmatpush.msrb.mxu0 %v5619_v13  ;;  %2837 = vmatpush.msrb.mxu1 %v5644_v58  ;;  %v2967_v13 = vld [vmem:[#allocation5 + $0x680] sm:$0xff] }
 0x31a   :  { %2896 = vmatpush.msrb.mxu2 %v2721_v37  ;;  %2941 = vmatpush.msrb.mxu3 %v5621_v9  ;;  %v3019_v9 = vsub.f32 %v5826_v53, %v3018_v60  ;;  %v3030_v37 = vand.u32 4294901760, %v5847_v49  ;;  %v5885_v63 = vand.u32 4294901760, %v2967_v13  ;;  %v3042_v25 = vand.u32 4294901760, %v5872_v47 }
 0x31b   :  { %2786 = vmatpush.msrb.mxu0 %v5630_v57  ;;  %2839 = vmatpush.msrb.mxu1 %v5711_v24  ;;  %v5874_v57 = vand.u32 4294901760, %v2968_v8 }
 0x31c   :  { %2900 = vmatpush.msrb.mxu2 %v2727_v61  ;;  %2943 = vmatpush.msrb.mxu3 %v5632_v4  ;;  %v3025_v4 = vsub.f32 %v5836_v38, %v3024_v40  ;;  %v3036_v61 = vand.u32 4294901760, %v5858_v27  ;;  %v5913_v1 = vsub.f32 %v2967_v13, %v5885_v63  ;;  %v5978_v13 = vsub.f32 %v2962_v19, %v5956_v23 }
 0x31d   :  { %2789 = vmatpush.msrb.mxu0 %v5642_v56  ;;  %2841 = vmatpush.msrb.mxu1 %v5733_v35  ;;  %v5890_v56 = vsub.f32 %v2969_v30, %v5862_v31  ;;  %v5900_v7 = vsub.f32 %v2968_v8, %v5874_v57 }
 0x31e   :  { %2904 = vmatpush.msrb.mxu2 %v2733_v11  ;;  %2945 = vmatpush.msrb.mxu3 %v5644_v58  ;;  %v3020_v58 = vand.u32 4294901760, %v3019_v9  ;;  %v3031_v11 = vsub.f32 %v5847_v49, %v3030_v37  ;;  %v3060_v3 = vand.u32 4294901760, %v5913_v1  ;;  %v5980_v9 = vand.u32 4294901760, %v2960_v39 }
 0x31f   :  { %2792 = vmatpush.msrb.mxu0 %v5654_v14  ;;  %2843 = vmatpush.msrb.mxu1 %v5740_v62  ;;  %v2965_v14 = vld [vmem:[#allocation5 + $0x660] sm:$0xff]  ;;  %v3054_v20 = vand.u32 4294901760, %v5900_v7 }
 0x320   :  { %2908 = vmatpush.msrb.mxu2 %v2739_v52  ;;  %2947 = vmatpush.msrb.mxu3 %v5711_v24  ;;  %v3026_v24 = vand.u32 4294901760, %v3025_v4  ;;  %v3037_v52 = vsub.f32 %v5858_v27, %v3036_v61  ;;  %v5919_v18 = vand.u32 4294901760, %v2965_v14  ;;  %v3084_v4 = vand.u32 4294901760, %v5966_v29 }
 0x321   :  { %2795 = vmatpush.msrb.mxu0 %v5665_v34  ;;  %2845 = vmatpush.msrb.mxu1 %v5750_v51  ;;  %v3048_v34 = vand.u32 4294901760, %v5890_v56  ;;  %v3055_v32 = vsub.f32 %v5900_v7, %v3054_v20 }
 0x322   :  { %2912 = vmatpush.msrb.mxu2 %v2745_v43  ;;  %2949 = vmatpush.msrb.mxu3 %v5733_v35  ;;  %v3032_v35 = vand.u32 4294901760, %v3031_v11  ;;  %v3043_v43 = vsub.f32 %v5872_v47, %v3042_v25  ;;  %v5942_v36 = vsub.f32 %v2965_v14, %v5919_v18 }
 0x323   :  { %2849 = vmatmul.f32.vlgmr.msrb.gmra.mxu1 %v2652_v48  ;;  %2798 = vmatpush.msrb.mxu0 %v5736_v12  ;;  %v5930_v12 = vsub.f32 %v2966_v41, %v5904_v5  ;;  %v5932_v48 = vand.u32 4294901760, %v2964_v50 }
 0x324   :  { %3021 = vmatpush.msra.mxu1 %v3020_v58  ;;  %2916 = vmatpush.msrb.mxu2 %v2751_v15  ;;  %v3038_v15 = vand.u32 4294901760, %v3037_v52  ;;  %v3044_v16 = vand.u32 4294901760, %v3043_v43  ;;  %v3072_v22 = vand.u32 4294901760, %v5942_v36  ;;  %v5992_v58 = vand.u32 4294901760, %v2959_v55 }
 0x325   :  { %2951 = vmatpush.msrb.mxu3 %v5740_v62  ;;  %2918 = vmatmul.f32.vlgmr.msrb.gmra.mxu2 %v5773_v26  ;;  %v3049_v62 = vsub.f32 %v5890_v56, %v3048_v34  ;;  %v5954_v42 = vsub.f32 %v2964_v50, %v5932_v48  ;;  %v6002_v52 = vsub.f32 %v2960_v39, %v5980_v9 }
 0x326   :  { %3027 = vmatpush.msra.mxu1 %v3026_v24  ;;  %3119 = vmatpush.msra.mxu2 %v5826_v53  ;;  %v3090_v24 = vand.u32 4294901760, %v5978_v13  ;;  %v6012_v0 = vsub.f32 %v2959_v55, %v5992_v58  ;;  %v6495_v55 = vld [vmem:[#allocation12_spill] sm:$0xff] }
 0x327   :  { %2801 = vmatpush.msrb.mxu0 %v5743_v44  ;;  %2953 = vmatpush.msrb.mxu3 %v5750_v51  ;;  %v2961_v44 = vld [vmem:[#allocation5 + $0x620] sm:$0xff]  ;;  %v3066_v51 = vand.u32 4294901760, %v5930_v12  ;;  %v3050_v17 = vand.u32 4294901760, %v3049_v62  ;;  %v3078_v8 = vand.u32 4294901760, %v5954_v42  ;;  %v3102_v62 = vand.u32 4294901760, %v6002_v52 }
 0x328   :  { %2955 = vmatmul.f32.vlgmr.msrb.gmra.mxu3 %v5773_v26  ;;  %3033 = vmatpush.msra.mxu1 %v3032_v35  ;;  %v3061_v26 = vsub.f32 %v5913_v1, %v3060_v3  ;;  %v5968_v46 = vand.u32 4294901760, %v2961_v44  ;;  %v3085_v35 = vsub.f32 %v5966_v29, %v3084_v4  ;;  %v3091_v19 = vsub.f32 %v5978_v13, %v3090_v24 }
 0x329   :  { %3122 = vmatpush.msra.mxu2 %v5836_v38  ;;  %3172 = vmatpush.msra.mxu3 %v5812_v59  ;;  %v3067_v30 = vsub.f32 %v5930_v12, %v3066_v51  ;;  %v3079_v14 = vsub.f32 %v5954_v42, %v3078_v8  ;;  %v3103_v39 = vsub.f32 %v6002_v52, %v3102_v62 }
 0x32a   :  { %2804 = vmatpush.msrb.mxu0 %v5753_v28  ;;  %3039 = vmatpush.msra.mxu1 %v3038_v15  ;;  %v3056_v28 = vand.u32 4294901760, %v3055_v32  ;;  %v5990_v41 = vsub.f32 %v2961_v44, %v5968_v46  ;;  %v3108_v44 = vand.u32 4294901760, %v6012_v0 }
 0x32b   :  { %3125 = vmatpush.msra.mxu2 %v5847_v49  ;;  %3174 = vmatpush.msra.mxu3 %v5818_v33  ;;  %v3068_v11 = vand.u32 4294901760, %v3067_v30  ;;  %v3080_v15 = vand.u32 4294901760, %v3079_v14  ;;  %v6041_v30 = vand.u32 4294901760, %v6495_v55 }
 0x32c   :  { %2807 = vmatpush.msrb.mxu0 %v5761_v2  ;;  %3045 = vmatpush.msra.mxu1 %v3044_v16  ;;  %v3062_v2 = vand.u32 4294901760, %v3061_v26  ;;  %v3096_v43 = vand.u32 4294901760, %v5990_v41  ;;  %v3086_v16 = vand.u32 4294901760, %v3085_v35  ;;  %v3092_v26 = vand.u32 4294901760, %v3091_v19  ;;  %v3360_v35 = vld [vmem:[#allocation5 + $0x7c0] sm:$0xff] }
 0x32d   :  { %2810 = vmatmul.f32.vlgmr.msrb.gmra.mxu0 %v5777_v6  ;;  %3128 = vmatpush.msra.mxu2 %v5858_v27  ;;  %v3073_v6 = vsub.f32 %v5942_v36, %v3072_v22 }
 0x32e   :  { %2976 = vmatpush.msra.mxu0 %v5812_v59  ;;  %3176 = vmatpush.msra.mxu3 %v5828_v45  ;;  %v3097_v32 = vsub.f32 %v5990_v41, %v3096_v43 }
 0x32f   :  { %3051 = vmatpush.msra.mxu1 %v3050_v17  ;;  %3131 = vmatpush.msra.mxu2 %v5872_v47  ;;  %v3074_v50 = vand.u32 4294901760, %v3073_v6 }
 0x330   :  { %2978 = vmatpush.msra.mxu0 %v5818_v33  ;;  %3178 = vmatpush.msra.mxu3 %v5838_v10  ;;  %v3098_v17 = vand.u32 4294901760, %v3097_v32  ;;  %v3356_v32 = vld [vmem:[#allocation5 + $0x780] sm:$0xff] }
 0x331   :  { %3057 = vmatpush.msra.mxu1 %v3056_v28  ;;  %3134 = vmatpush.msra.mxu2 %v5890_v56  ;;  %v3109_v28 = vsub.f32 %v6012_v0, %v3108_v44 }
 0x332   :  { %2980 = vmatpush.msra.mxu0 %v5828_v45  ;;  %3180 = vmatpush.msra.mxu3 %v5849_v21 }
 0x333   :  { %3063 = vmatpush.msra.mxu1 %v3062_v2  ;;  %3137 = vmatpush.msra.mxu2 %v5900_v7  ;;  %v3104_v2 = vand.u32 4294901760, %v3103_v39  ;;  %v3110_v6 = vand.u32 4294901760, %v3109_v28 }
 0x334   :  { %2982 = vmatpush.msra.mxu0 %v5838_v10  ;;  %3182 = vmatpush.msra.mxu3 %v5862_v31 }
 0x335   :  { %3069 = vmatpush.msra.mxu1 %v3068_v11  ;;  %3140 = vmatpush.msra.mxu2 %v5913_v1  ;;  %v3008_v11 = vsub.f32 %v6495_v55, %v6041_v30 }
 0x336   :  { %2984 = vmatpush.msra.mxu0 %v5849_v21  ;;  %3184 = vmatpush.msra.mxu3 %v5874_v57 }
 0x337   :  { %3075 = vmatpush.msra.mxu1 %v3074_v50  ;;  %3143 = vmatpush.msra.mxu2 %v5930_v12  ;;  %v3009_v14 = vand.u32 4294901760, %v3008_v11 }
 0x338   :  { %2986 = vmatpush.msra.mxu0 %v5862_v31  ;;  %3186 = vmatpush.msra.mxu3 %v5885_v63 }
 0x339   :  { %3081 = vmatpush.msra.mxu1 %v3080_v15  ;;  %3146 = vmatpush.msra.mxu2 %v5942_v36  ;;  %v3010_v50 = vsub.f32 %v3008_v11, %v3009_v14  ;;  %v6126_v15 = vand.u32 4294901760, %v3360_v35 }
 0x33a   :  { %2988 = vmatpush.msra.mxu0 %v5874_v57  ;;  %3188 = vmatpush.msra.mxu3 %v5904_v5 }
 0x33b   :  { %3087 = vmatpush.msra.mxu1 %v3086_v16  ;;  %3149 = vmatpush.msra.mxu2 %v5954_v42  ;;  %v3357_v16 = vld [vmem:[#allocation5 + $0x790] sm:$0xff]  ;;  %v6146_v28 = vsub.f32 %v3360_v35, %v6126_v15 }
 0x33c   :  { %2990 = vmatpush.msra.mxu0 %v5885_v63  ;;  %3190 = vmatpush.msra.mxu3 %v5919_v18 }
 0x33d   :  { %3093 = vmatpush.msra.mxu1 %v3092_v26  ;;  %3152 = vmatpush.msra.mxu2 %v5966_v29 }
 0x33e   :  { %2992 = vmatpush.msra.mxu0 %v5904_v5  ;;  %3192 = vmatpush.msra.mxu3 %v5932_v48 }
 0x33f   :  { %3099 = vmatpush.msra.mxu1 %v3098_v17  ;;  %3155 = vmatpush.msra.mxu2 %v5978_v13  ;;  %v6142_v17 = vand.u32 4294901760, %v3357_v16 }
 0x340   :  { %2994 = vmatpush.msra.mxu0 %v5919_v18  ;;  %3194 = vmatpush.msra.mxu3 %v5944_v54 }
 0x341   :  { %3105 = vmatpush.msra.mxu1 %v3104_v2  ;;  %3158 = vmatpush.msra.mxu2 %v5990_v41  ;;  %v3361_v41 = vld [vmem:[#allocation5 + $0x7d0] sm:$0xff] }
 0x342   :  { %2996 = vmatpush.msra.mxu0 %v5932_v48  ;;  %3196 = vmatpush.msra.mxu3 %v5956_v23 }
 0x343   :  { %3111 = vmatpush.msra.mxu1 %v3110_v6  ;;  %3161 = vmatpush.msra.mxu2 %v6002_v52  ;;  %v6124_v52 = vand.u32 4294901760, %v3361_v41 }
 0x344   :  { %2998 = vmatpush.msra.mxu0 %v5944_v54  ;;  %3198 = vmatpush.msra.mxu3 %v5968_v46 }
 0x345   :  { %3113 = vmatmul.f32.vlgmr.msra.gmra.mxu1 %v6041_v30  ;;  %3164 = vmatpush.msra.mxu2 %v6012_v0  ;;  %v3358_v0 = vld [vmem:[#allocation5 + $0x7a0] sm:$0xff]  ;;  %v6139_v39 = vsub.f32 %v3361_v41, %v6124_v52 }
 0x346   :  { %3280 = vmatpush.msrb.mxu1 %v5812_v59  ;;  %3000 = vmatpush.msra.mxu0 %v5956_v23  ;;  %v3011_v59 = vand.u32 4294901760, %v3010_v50  ;;  %v3426_v50 = vand.u32 4294901760, %v6146_v28 }
 0x347   :  { %3200 = vmatpush.msra.mxu3 %v5980_v9  ;;  %3167 = vmatmul.f32.vlgmr.msra.gmra.mxu2 %v3008_v11  ;;  %v3420_v11 = vand.u32 4294901760, %v6139_v39 }
 0x348   :  { %3282 = vmatpush.msrb.mxu1 %v5818_v33  ;;  %3002 = vmatpush.msra.mxu0 %v5968_v46 }
 0x349   :  { %3202 = vmatpush.msra.mxu3 %v5992_v58 }
 0x34a   :  { %3206 = vmatmul.f32.vlgmr.msra.gmra.mxu3 %v3009_v14  ;;  %3284 = vmatpush.msrb.mxu1 %v5828_v45  ;;  %v6158_v14 = vand.u32 4294901760, %v3356_v32 }
 0x34b   :  { %3004 = vmatpush.msra.mxu0 %v5980_v9 }
 0x34c   :  { %3286 = vmatpush.msrb.mxu1 %v5838_v10 }
 0x34d   :  { %3006 = vmatpush.msra.mxu0 %v5992_v58 }
 0x34e   :  { %3012 = vmatmul.f32.vlgmr.msra.gmra.mxu0 %v3011_v59  ;;  %3288 = vmatpush.msrb.mxu1 %v5849_v21 }
 0x34f   :  { %3213 = vmatpush.msrb.mxu0 %v3018_v60 }
 0x350   :  { %3290 = vmatpush.msrb.mxu1 %v5862_v31 }
 0x351   :  { %3217 = vmatpush.msrb.mxu0 %v3024_v40 }
 0x352   :  { %3292 = vmatpush.msrb.mxu1 %v5874_v57 }
 0x353   :  { %3221 = vmatpush.msrb.mxu0 %v3030_v37 }
 0x354   :  { %3294 = vmatpush.msrb.mxu1 %v5885_v63 }
 0x355   :  { %3225 = vmatpush.msrb.mxu0 %v3036_v61 }
 0x356   :  { %3296 = vmatpush.msrb.mxu1 %v5904_v5 }
 0x357   :  { %3229 = vmatpush.msrb.mxu0 %v3042_v25 }
 0x358   :  { %3298 = vmatpush.msrb.mxu1 %v5919_v18 }
 0x359   :  { %3233 = vmatpush.msrb.mxu0 %v3048_v34 }
 0x35a   :  { %3300 = vmatpush.msrb.mxu1 %v5932_v48 }
 0x35b   :  { %3237 = vmatpush.msrb.mxu0 %v3054_v20 }
 0x35c   :  { %3302 = vmatpush.msrb.mxu1 %v5944_v54 }
 0x35d   :  { %3241 = vmatpush.msrb.mxu0 %v3060_v3 }
 0x35e   :  { %3304 = vmatpush.msrb.mxu1 %v5956_v23 }
 0x35f   :  { %3245 = vmatpush.msrb.mxu0 %v3066_v51 }
 0x360   :  { %3306 = vmatpush.msrb.mxu1 %v5968_v46  ;;  %v3317_v46 = vld [vmem:[#allocation7 + $0x4] ss:$0 sm:$0xff] }
 0x361   :  { %3249 = vmatpush.msrb.mxu0 %v3072_v22 }
 0x362   :  { %3308 = vmatpush.msrb.mxu1 %v5980_v9  ;;  %v3363_v9 = vld [vmem:[#allocation5 + $0x7f0] sm:$0xff] }
 0x363   :  { %3253 = vmatpush.msrb.mxu0 %v3078_v8 }
 0x364   :  { %3310 = vmatpush.msrb.mxu1 %v5992_v58  ;;  %v6120_v58 = vand.u32 4294901760, %v3363_v9 }
 0x365   :  { %3257 = vmatpush.msrb.mxu0 %v3084_v4  ;;  %3312 = vmatmul.f32.vlgmr.msrb.gmra.mxu1 %v6041_v30  ;;  %v3362_v4 = vld [vmem:[#allocation5 + $0x7e0] sm:$0xff] }
 0x366   :  { %3366 = vmatpush.msrb.mxu2 %v6120_v58  ;;  %3562 = vmatpush.msra.mxu1 %v6120_v58 }
 0x367   :  { %3261 = vmatpush.msrb.mxu0 %v3090_v24  ;;  %v6122_v24 = vand.u32 4294901760, %v3362_v4 }
 0x369   :  { %3265 = vmatpush.msrb.mxu0 %v3096_v43  ;;  %v3359_v43 = vld [vmem:[#allocation5 + $0x7b0] sm:$0xff]  ;;  %v6136_v26 = vsub.f32 %v3362_v4, %v6122_v24  ;;  %3368 = vmatpush.msrb.mxu2 %v6122_v24 }
 0x36a   :  { %v6128_v19 = vand.u32 4294901760, %v3359_v43  ;;  %3564 = vmatpush.msra.mxu1 %v6122_v24 }
 0x36b   :  { %3269 = vmatpush.msrb.mxu0 %v3102_v62  ;;  %v6130_v62 = vand.u32 4294901760, %v3358_v0  ;;  %v3414_v6 = vand.u32 4294901760, %v6136_v26  ;;  %3370 = vmatpush.msrb.mxu2 %v6124_v52 }
 0x36c   :  { %v6149_v55 = vsub.f32 %v3359_v43, %v6128_v19  ;;  %3566 = vmatpush.msra.mxu1 %v6124_v52  ;;  %v6496_v43 = vld [vmem:[#allocation16_spill] sm:$0xff] }
 0x36d   :  { %3273 = vmatpush.msrb.mxu0 %v3108_v44  ;;  %v6133_v44 = vsub.f32 %v3363_v9, %v6120_v58  ;;  %3372 = vmatpush.msrb.mxu2 %v6126_v15  ;;  %vm3319_vm6 = vcmp.lt.s32.totalorder %v6496_v43, 32 }
 0x36e   :  { %3275 = vmatmul.f32.vlgmr.msrb.gmra.mxu0 %v6041_v30  ;;  %v6152_v30 = vsub.f32 %v3358_v0, %v6130_v62  ;;  %v3432_v59 = vand.u32 4294901760, %v6149_v55  ;;  %3568 = vmatpush.msra.mxu1 %v6126_v15 }
 0x36f   :  { %v3408_v2 = vand.u32 4294901760, %v6133_v44  ;;  %3509 = vmatpush.msra.mxu0 %v6133_v44  ;;  %3374 = vmatpush.msrb.mxu2 %v6128_v19 }
 0x370   :  { %3570 = vmatpush.msra.mxu1 %v6128_v19 }
 0x371   :  { %3512 = vmatpush.msra.mxu0 %v6136_v26  ;;  %3376 = vmatpush.msrb.mxu2 %v6130_v62 }
 0x372   :  { %3572 = vmatpush.msra.mxu1 %v6130_v62 }
 0x373   :  { %3515 = vmatpush.msra.mxu0 %v6139_v39  ;;  %3378 = vmatpush.msrb.mxu2 %v6142_v17 }
 0x374   :  { %3574 = vmatpush.msra.mxu1 %v6142_v17 }
 0x375   :  { %3518 = vmatpush.msra.mxu0 %v6146_v28  ;;  %3380 = vmatpush.msrb.mxu2 %v6158_v14 }
 0x376   :  { %3576 = vmatpush.msra.mxu1 %v6158_v14 }
 0x377   :  { %3521 = vmatpush.msra.mxu0 %v6149_v55 }
 0x379   :  { %3524 = vmatpush.msra.mxu0 %v6152_v30 }
 0x37d   :  { %v2416_v53 = vpop.f32.mrf.mxu1 }
 0x385   :  { %v2315_v33 = vpop.f32.mrf.mxu0  ;;  %v2470_v38 = vpop.f32.mrf.mxu2 }
 0x386   :  { %v2417_v45 = vadd.f32 %v2416_v53, %v2315_v33  ;;  %v2615_v21 = vpop.f32.mrf.mxu1  ;;  %v6164_v33 = vsub.f32 %v3357_v16, %v6142_v17  ;;  %v3409_v53 = vsub.f32 %v6133_v44, %v3408_v2 }
 0x387   :  { %v2509_v60 = vpop.f32.mrf.mxu3 }
 0x388   :  { %v2471_v10 = vadd.f32 %v2470_v38, %v2417_v45  ;;  %v3415_v45 = vsub.f32 %v6136_v26, %v3414_v6  ;;  %v3421_v38 = vsub.f32 %v6139_v39, %v3420_v11  ;;  %3527 = vmatpush.msra.mxu0 %v6164_v33 }
 0x38a   :  { %v2510_v40 = vadd.f32 %v2509_v60, %v2471_v10  ;;  %v3438_v10 = vand.u32 4294901760, %v6152_v30  ;;  %v3355_v60 = vld [vmem:[#allocation5 + $0x770] sm:$0xff] }
 0x38e   :  { %v2656_v31 = vpop.f32.mrf.mxu2 }
 0x38f   :  { %v2578_v49 = vpop.f32.mrf.mxu0 }
 0x390   :  { %v2579_v27 = vadd.f32 %v2578_v49, %v2510_v40  ;;  %v3354_v49 = vld [vmem:[#allocation5 + $0x760] sm:$0xff]  ;;  %v3410_v40 = vand.u32 4294901760, %v3409_v53 }
 0x391   :  { %v2757_v57 = vpop.f32.mrf.mxu3 }
 0x392   :  { %v2616_v47 = vadd.f32 %v2615_v21, %v2579_v27  ;;  %v3353_v21 = vld [vmem:[#allocation5 + $0x750] sm:$0xff]  ;;  %v3416_v27 = vand.u32 4294901760, %v3415_v45  ;;  %3411 = vmatpush.msrb.mxu3 %v3410_v40  ;;  %v3352_v45 = vld [vmem:[#allocation5 + $0x740] sm:$0xff] }
 0x394   :  { %v2657_v63 = vadd.f32 %v2656_v31, %v2616_v47  ;;  %v3427_v31 = vsub.f32 %v6146_v28, %v3426_v50  ;;  %v3433_v47 = vsub.f32 %v6149_v55, %v3432_v59  ;;  %3417 = vmatpush.msrb.mxu3 %v3416_v27 }
 0x396   :  { %v2758_v7 = vadd.f32 %v2757_v57, %v2657_v63  ;;  %v3444_v57 = vand.u32 4294901760, %v6164_v33  ;;  %v6194_v63 = vand.u32 4294901760, %v3355_v60 }
 0x398   :  { %3382 = vmatpush.msrb.mxu2 %v6194_v63  ;;  %3578 = vmatpush.msra.mxu1 %v6194_v63 }
 0x3a0   :  { %v2850_v61 = vpop.f32.mrf.mxu1 }
 0x3a8   :  { %v2919_v56 = vpop.f32.mrf.mxu2 }
 0x3aa   :  { %v2811_v37 = vpop.f32.mrf.mxu0 }
 0x3ab   :  { %v2956_v5 = vpop.f32.mrf.mxu3  ;;  %v2812_v34 = vadd.f32 %v2811_v37, %v2758_v7  ;;  %v6185_v37 = vsub.f32 %v3356_v32, %v6158_v14  ;;  %v3439_v7 = vsub.f32 %v6152_v30, %v3438_v10  ;;  %v3343_v30 = vld [vmem:[#allocation7 + $0x6] ss:$0 sm:$0xff] }
 0x3ad   :  { %v2851_v12 = vadd.f32 %v2850_v61, %v2812_v34  ;;  %v3422_v61 = vand.u32 4294901760, %v3421_v38  ;;  %v6207_v34 = vsub.f32 %v3355_v60, %v6194_v63  ;;  %3530 = vmatpush.msra.mxu0 %v6185_v37  ;;  %v6258_v38 = vand.u32 4294901760, %v3352_v45  ;;  %v3351_v60 = vld [vmem:[#allocation5 + $0x730] sm:$0xff] }
 0x3af   :  { %v2920_v36 = vadd.f32 %v2919_v56, %v2851_v12  ;;  %v6196_v56 = vand.u32 4294901760, %v3354_v49  ;;  %3423 = vmatpush.msrb.mxu3 %v3422_v61  ;;  %v3445_v12 = vsub.f32 %v6164_v33, %v3444_v57  ;;  %3533 = vmatpush.msra.mxu0 %v6207_v34 }
 0x3b1   :  { %v2957_v22 = vadd.f32 %v2956_v5, %v2920_v36  ;;  %v3428_v5 = vand.u32 4294901760, %v3427_v31  ;;  %v3440_v36 = vand.u32 4294901760, %v3439_v7  ;;  %3384 = vmatpush.msrb.mxu2 %v6196_v56  ;;  %3580 = vmatpush.msra.mxu1 %v6196_v56 }
 0x3b3   :  { %3429 = vmatpush.msrb.mxu3 %v3428_v5 }
 0x3c2   :  { %v3114_v1 = vpop.f32.mrf.mxu1 }
 0x3ca   :  { %v3168_v20 = vpop.f32.mrf.mxu2 }
 0x3cb   :  { %v3013_v25 = vpop.f32.mrf.mxu0 }
 0x3cc   :  { %v3115_v18 = vadd.f32 %v3114_v1, %v3013_v25  ;;  %v6198_v25 = vand.u32 4294901760, %v3353_v21  ;;  %v3450_v1 = vand.u32 4294901760, %v6185_v37 }
 0x3cd   :  { %v3207_v3 = vpop.f32.mrf.mxu3 }
 0x3ce   :  { %v3169_v48 = vadd.f32 %v3168_v20, %v3115_v18  ;;  %v6211_v18 = vsub.f32 %v3354_v49, %v6196_v56  ;;  %v3434_v20 = vand.u32 4294901760, %v3433_v47  ;;  %3386 = vmatpush.msrb.mxu2 %v6198_v25  ;;  %3582 = vmatpush.msra.mxu1 %v6198_v25  ;;  %v6261_v49 = vsub.f32 %v3352_v45, %v6258_v38  ;;  %v3349_v47 = vld [vmem:[#allocation5 + $0x710] sm:$0xff] }
 0x3d0   :  { %v3208_v54 = vadd.f32 %v3207_v3, %v3169_v48  ;;  %v3456_v48 = vand.u32 4294901760, %v6207_v34  ;;  %v6221_v3 = vsub.f32 %v3353_v21, %v6198_v25  ;;  %3435 = vmatpush.msrb.mxu3 %v3434_v20  ;;  %3536 = vmatpush.msra.mxu0 %v6211_v18  ;;  %v6263_v21 = vand.u32 4294901760, %v3351_v60 }
 0x3d1   :  { %3388 = vmatpush.msrb.mxu2 %v6258_v38  ;;  %3584 = vmatpush.msra.mxu1 %v6258_v38  ;;  %v3474_v40 = vand.u32 4294901760, %v6261_v49  ;;  %v6283_v20 = vand.u32 4294901760, %v3349_v47 }
 0x3d2   :  { %3441 = vmatpush.msrb.mxu3 %v3440_v36  ;;  %3539 = vmatpush.msra.mxu0 %v6221_v3  ;;  %v6269_v27 = vsub.f32 %v3351_v60, %v6263_v21 }
 0x3d3   :  { %3390 = vmatpush.msrb.mxu2 %v6263_v21  ;;  %3586 = vmatpush.msra.mxu1 %v6263_v21  ;;  %v3475_v61 = vsub.f32 %v6261_v49, %v3474_v40 }
 0x3d4   :  { %3542 = vmatpush.msra.mxu0 %v6261_v49  ;;  %v3480_v7 = vand.u32 4294901760, %v6269_v27 }
 0x3d5   :  { %v3476_v36 = vand.u32 4294901760, %v3475_v61 }
 0x3d6   :  { %3545 = vmatpush.msra.mxu0 %v6269_v27 }
 0x3e2   :  { %v3313_v23 = vpop.f32.mrf.mxu1 }
 0x3eb   :  { %v3276_v51 = vpop.f32.mrf.mxu0 }
 0x3ec   :  { %v3277_v42 = vadd.f32 %v3276_v51, %v3208_v54  ;;  %v3451_v54 = vsub.f32 %v6185_v37, %v3450_v1  ;;  %v3462_v51 = vand.u32 4294901760, %v6211_v18 }
 0x3ee   :  { %v3314_v29 = vadd.f32 %v3313_v23, %v3277_v42  ;;  %v3446_v42 = vand.u32 4294901760, %v3445_v12  ;;  %v3457_v23 = vsub.f32 %v6207_v34, %v3456_v48  ;;  %v3348_v12 = vld [vmem:[#allocation5 + $0x700] sm:$0xff] }
 0x3f0   :  { %v3316_v8 = vadd.f32 %v3314_v29, %v2957_v22  ;;  %v3468_v22 = vand.u32 4294901760, %v6221_v3  ;;  %v3452_v29 = vand.u32 4294901760, %v3451_v54  ;;  %3447 = vmatpush.msrb.mxu3 %v3446_v42  ;;  %v3481_v54 = vsub.f32 %v6269_v27, %v3480_v7 }
 0x3f2   :  { %v6117_v13 = vadd.f32 %v3317_v46, %v3316_v8  ;;  %v3463_v46 = vsub.f32 %v6211_v18, %v3462_v51  ;;  %v3458_v8 = vand.u32 4294901760, %v3457_v23  ;;  %v3469_v9 = vsub.f32 %v6221_v3, %v3468_v22  ;;  %3453 = vmatpush.msrb.mxu3 %v3452_v29 }
 0x3f3   :  { %v3491_v23 = vsub.f32 %v3349_v47, %v6283_v20  ;;  %v6293_v29 = vand.u32 4294901760, %v3348_v12 }
 0x3f4   :  { %3320 = vadd.xlane.f32.xlu1 %v6117_v13  ;;  %v3464_v35 = vand.u32 4294901760, %v3463_v46  ;;  %3459 = vmatpush.msrb.mxu3 %v3458_v8  ;;  %v3470_v16 = vand.u32 4294901760, %v3469_v9  ;;  %v3482_v46 = vand.u32 4294901760, %v3481_v54 }
 0x3f5   :  { %v3492_v9 = vand.u32 4294901760, %v3491_v23 }
 0x3f6   :  { %3465 = vmatpush.msrb.mxu3 %v3464_v35 }
 0x3f7   :  { %v3493_v35 = vsub.f32 %v3491_v23, %v3492_v9 }
 0x3f8   :  { %3471 = vmatpush.msrb.mxu3 %v3470_v16 }
 0x3fa   :  { %3477 = vmatpush.msrb.mxu3 %v3476_v36 }
 0x3fc   :  { %3483 = vmatpush.msrb.mxu3 %v3482_v46 }
 0x467   :  { %v3321_v4 = vpop.xlane.xlu1 %3320 }
 0x468   :  { %v3322_v41 = vmul.f32 0.03125, %v3321_v4  ;;  %v3497_v4 = vsub.f32 %v3348_v12, %v6293_v29 }
 0x46a   :  { %v3323_v0 = vsub.f32 %v6117_v13, %v3322_v41  ;;  %v3350_v13 = vld [vmem:[#allocation5 + $0x720] sm:$0xff]  ;;  %v3498_v43 = vand.u32 4294901760, %v3497_v4 }
 0x46b   :  { %v6271_v31 = vand.u32 4294901760, %v3350_v13 }
 0x46c   :  { %v6254_v32 = vsel %vm3319_vm6, %v3323_v0, 0.0  ;;  %v3494_v0 = vand.u32 4294901760, %v3493_v35  ;;  %v3499_v16 = vsub.f32 %v3497_v4, %v3498_v43 }
 0x46d   :  { %v3325_v53 = vmul.f32 %v6254_v32, %v6254_v32  ;;  %v6281_v5 = vsub.f32 %v3350_v13, %v6271_v31  ;;  %3392 = vmatpush.msrb.mxu2 %v6271_v31  ;;  %3588 = vmatpush.msra.mxu1 %v6271_v31 }
 0x46f   :  { %3326 = vadd.xlane.f32.xlu1 %v3325_v53  ;;  %v3486_v42 = vand.u32 4294901760, %v6281_v5  ;;  %3394 = vmatpush.msrb.mxu2 %v6283_v20  ;;  %v3500_v53 = vand.u32 4294901760, %v3499_v16 }
 0x470   :  { %3548 = vmatpush.msra.mxu0 %v6281_v5  ;;  %3590 = vmatpush.msra.mxu1 %v6283_v20 }
 0x471   :  { %v3487_v8 = vsub.f32 %v6281_v5, %v3486_v42  ;;  %3396 = vmatpush.msrb.mxu2 %v6293_v29 }
 0x472   :  { %3551 = vmatpush.msra.mxu0 %v3491_v23  ;;  %3592 = vmatpush.msra.mxu1 %v6293_v29 }
 0x473   :  { %v3488_v41 = vand.u32 4294901760, %v3487_v8  ;;  %3603 = vmatpush.msra.mxu2 %v3408_v2 }
 0x474   :  { %3554 = vmatpush.msra.mxu0 %v3497_v4 }
 0x475   :  { %3489 = vmatpush.msrb.mxu3 %v3488_v41  ;;  %3607 = vmatpush.msra.mxu2 %v3414_v6 }
 0x477   :  { %3495 = vmatpush.msrb.mxu3 %v3494_v0  ;;  %3611 = vmatpush.msra.mxu2 %v3420_v11 }
 0x479   :  { %3615 = vmatpush.msra.mxu2 %v3426_v50  ;;  %3501 = vmatpush.msrb.mxu3 %v3500_v53 }
 0x47b   :  { %3670 = vmatpush.msra.mxu3 %v6120_v58  ;;  %3619 = vmatpush.msra.mxu2 %v3432_v59 }
 0x47d   :  { %3672 = vmatpush.msra.mxu3 %v6122_v24  ;;  %3623 = vmatpush.msra.mxu2 %v3438_v10 }
 0x47f   :  { %3674 = vmatpush.msra.mxu3 %v6124_v52  ;;  %3627 = vmatpush.msra.mxu2 %v3444_v57  ;;  %v3364_v57 = vld [vmem:[#allocation7 + $0x7] ss:$0 sm:$0xff] }
 0x481   :  { %3676 = vmatpush.msra.mxu3 %v6126_v15  ;;  %3631 = vmatpush.msra.mxu2 %v3450_v1 }
 0x483   :  { %3678 = vmatpush.msra.mxu3 %v6128_v19  ;;  %3635 = vmatpush.msra.mxu2 %v3456_v48 }
 0x485   :  { %3680 = vmatpush.msra.mxu3 %v6130_v62  ;;  %3639 = vmatpush.msra.mxu2 %v3462_v51 }
 0x487   :  { %3682 = vmatpush.msra.mxu3 %v6142_v17  ;;  %3643 = vmatpush.msra.mxu2 %v3468_v22  ;;  %v3341_v17 = vld [vmem:[#allocation7 + $0x5] ss:$0 sm:$0xff] }
 0x489   :  { %3684 = vmatpush.msra.mxu3 %v6158_v14  ;;  %3647 = vmatpush.msra.mxu2 %v3474_v40 }
 0x48b   :  { %3686 = vmatpush.msra.mxu3 %v6194_v63  ;;  %3651 = vmatpush.msra.mxu2 %v3480_v7 }
 0x48d   :  { %3688 = vmatpush.msra.mxu3 %v6196_v56  ;;  %3655 = vmatpush.msra.mxu2 %v3486_v42 }
 0x48f   :  { %3690 = vmatpush.msra.mxu3 %v6198_v25  ;;  %3659 = vmatpush.msra.mxu2 %v3492_v9 }
 0x491   :  { %3692 = vmatpush.msra.mxu3 %v6258_v38  ;;  %3663 = vmatpush.msra.mxu2 %v3498_v43 }
 0x493   :  { %3694 = vmatpush.msra.mxu3 %v6263_v21 }
 0x495   :  { %3696 = vmatpush.msra.mxu3 %v6271_v31 }
 0x497   :  { %3698 = vmatpush.msra.mxu3 %v6283_v20 }
 0x499   :  { %3700 = vmatpush.msra.mxu3 %v6293_v29 }
 0x4e2   :  { %v3327_v44 = vpop.xlane.xlu1 %3326 }
 0x4e3   :  { %v3328_v26 = vmul.f32 0.03125, %v3327_v44 }
 0x4e5   :  { %v3329_v58 = vadd.f32 1e-05, %v3328_v26 }
 0x4e7   :  { %3742 = vrsqrt.f32 %v3329_v58  ;;  %vm3336_vm8 = vweird.f32 %v3329_v58 }
 0x4ed   :  { %v3743_v24 = vpop.eup %3742 }
 0x4ee   :  { %v3331_v52 = vmul.f32 %v3743_v24, %v3329_v58  ;;  %vm3337_vm7 = vweird.f32 %v3743_v24 }
 0x4ef   :  { %vm3338_vm9 = vmor %vm3336_vm8, %vm3337_vm7 }
 0x4f0   :  { %v3332_v15 = vmul.f32 %v3743_v24, %v3331_v52 }
 0x4f2   :  { %v3333_v19 = vmul.f32 0.5, %v3332_v15 }
 0x4f4   :  { %v3334_v62 = vsub.f32 1.5, %v3333_v19 }
 0x4f6   :  { %v3335_v39 = vmul.f32 %v3743_v24, %v3334_v62 }
 0x4f8   :  { %v3339_v28 = vsel %vm3338_vm9, %v3743_v24, %v3335_v39 }
 0x4f9   :  { %v3340_v55 = vmul.f32 %v3339_v28, %v6254_v32 }
 0x4fb   :  { %v3342_v2 = vmul.f32 %v3341_v17, %v3340_v55 }
 0x4fd   :  { %v3344_v6 = vadd.f32 %v3343_v30, %v3342_v2 }
 0x4ff   :  { %vm3345_vm10 = vcmp.gt.f32.partialorder %v3344_v6, 0.0  ;;  %v3346_v11 = vmul.f32 0.2, %v3344_v6 }
 0x501   :  { %v3347_v14 = vsel %vm3345_vm10, %v3344_v6, %v3346_v11 }
 0x502   :  { %v3397_v50 = vand.u32 4294901760, %v3347_v14 }
 0x504   :  { %3503 = vmatmul.f32.vlgmr.msrb.gmra.mxu3 %v3397_v50  ;;  %v3398_v59 = vsub.f32 %v3347_v14, %v3397_v50 }
 0x506   :  { %3557 = vmatmul.f32.vlgmr.msra.gmra.mxu0 %v3398_v59  ;;  %v3399_v33 = vand.u32 4294901760, %v3398_v59 }
 0x508   :  { %3596 = vmatmul.f32.vlgmr.msra.gmra.mxu1 %v3399_v33  ;;  %v3400_v10 = vsub.f32 %v3398_v59, %v3399_v33 }
 0x50a   :  { %v3401_v37 = vand.u32 4294901760, %v3400_v10 }
 0x50c   :  { %3402 = vmatmul.f32.vlgmr.msrb.gmra.mxu2 %v3401_v37  ;;  %3702 = vmatmul.f32.vlgmr.msra.gmra.mxu3 %v3397_v50 }
 0x514   :  { %3665 = vmatmul.f32.vlgmr.msra.gmra.mxu2 %v3397_v50 }
 0x583   :  { %v3558_v34 = vpop.f32.mrf.mxu0 }
 0x585   :  { %v3597_v48 = vpop.f32.mrf.mxu1 }
 0x587   :  { %v3504_v63 = vpop.f32.mrf.mxu3 }
 0x58f   :  { %v3403_v56 = vpop.f32.mrf.mxu2  ;;  %v3703_v32 = vpop.f32.mrf.mxu3 }
 0x590   :  { %v3404_v25 = vadd.f32 %v3403_v56, %v3364_v57 }
 0x592   :  { %v3505_v1 = vadd.f32 %v3504_v63, %v3404_v25 }
 0x594   :  { %v3559_v18 = vadd.f32 %v3558_v34, %v3505_v1 }
 0x596   :  { %v3598_v3 = vadd.f32 %v3597_v48, %v3559_v18 }
 0x597   :  { %v3666_v51 = vpop.f32.mrf.mxu2 }
 0x598   :  { %v3667_v22 = vadd.f32 %v3666_v51, %v3598_v3 }
 0x59a   :  { %v3704_v45 = vadd.f32 %v3703_v32, %v3667_v22 }
 0x59c   :  { %3706 = vst [vmem:[#allocation8] sm:$0xff] %v3704_v45 }
 0x59d   :  { %3717 = dma.vmem_to_hbm [thread:$0]  %s3713_s13, 128, %s3715_s16, [#allocation4]  }
 0x59e   :  { %3844 = dma.done.wait [#allocation4], 128  }
 0x59f   :  { %3845 = vsyncadd [#allocation4], 4294967168 }
 0x5a0   :  { %3722 = vsyncpa [#allocation3], 1 }
 0x5a1   :  { %3723 = vsyncpa [#allocation6], 1 }
 0x5a2   :  { %3724 = vsyncpa [#allocation4], 1 }

</bundles_post_ra>
